<compile_context>
chip_gen: v7x
topology: tpu7x:2x2x1
jax: 0.10.0
libtpu: 0.0.40
codegen_flags: <defaults>
</compile_context>

<pallas_src>
import jax
import jax.numpy as jnp
from jax.experimental import pallas as pl
from jax.experimental.pallas import tpu as pltpu

ROW = 30          # forced by the conv stack flattening to channel=84
CHANNEL = 84
NEG_SLOPE = 0.01  # nn.LeakyReLU default

# small synthetic embedding sizes (dataset-dependent in the original)
B = 2
U_DIM = 32    # user_embedding_size
A_DIM = 24    # audio_embedding_size
T_DIM = 20    # text_embedding_size
ME_DIM = 40   # meta_embedding_size


# ----------------------------------------------------------------------------
# The single fused kernel: encoders -> (collapsed) attention -> fusion convs
# (as Toeplitz matmuls) -> babel_i / babel_u -> ffn.
# ----------------------------------------------------------------------------
def _babel_fused_kernel(*refs):
    (x1, xa, xt, xm,
     wu1, bu1, wu2, bu2,
     wa1, ba1, wa2, ba2,
     wt1, bt1, wt2, bt2,
     wm1, bm1, wm2, bm2,
     w1se, w1m, cb1, w2c, cb2,
     wi1, bi1, wi2, bi2, wi3, bi3,
     wub1, bub1, wub2, bub2, wub3, bub3,
     wf1a, wf1b, wf1c, bf1, wf2r, bf2,
     out_ref, out1_ref, out2_ref) = refs

    def leaky(x):
        return jnp.where(x >= 0, x, NEG_SLOPE * x)

    def lin(x, w, b):
        return jnp.dot(x, w[...], preferred_element_type=jnp.float32) + b[...]

    # ---- encoders (user full; audio/text/meta produce only their used
    #      [200:300] output chunk via pre-sliced second-layer weights) ----
    outu = leaky(lin(leaky(lin(x1[...], wu1, bu1)), wu2, bu2))   # (B, 84)
    a2 = leaky(lin(leaky(lin(xa[...], wa1, ba1)), wa2, ba2))     # (B, 100)
    t2 = leaky(lin(leaky(lin(xt[...], wt1, bt1)), wt2, bt2))     # (B, 100)
    m2 = leaky(lin(leaky(lin(xm[...], wm1, bm1)), wm2, bm2))     # (B, 100)

    # ---- attention block collapses exactly: exp(q,k,v) == v-row broadcast ----
    # ma = 0.5*(sa+ima) = 0.5*(a2+m2); mt = 0.5*(st+itm) = 0.5*(t2+m2)
    se = 0.25 * (a2 + m2) * (t2 + m2)                            # (B, 100)
    # fusion conv input row (repeated ROW times) is [se | m2]

    # ---- fusion convs as Toeplitz matmuls (exact for identical rows) ----
    c1 = leaky(jnp.dot(se, w1se[...], preferred_element_type=jnp.float32)
               + jnp.dot(m2, w1m[...], preferred_element_type=jnp.float32)
               + cb1[...])                                       # (B, 91)
    c2 = leaky(jnp.dot(c1, w2c[...], preferred_element_type=jnp.float32)
               + cb2[...])                                       # (B, 42)
    # flattened conv output == [c2 | c2]; handled by the summed babel_u weight

    # ---- babel_i(outu) ----
    out1 = leaky(lin(leaky(lin(leaky(lin(outu, wi1, bi1)), wi2, bi2)), wi3, bi3))

    # ---- babel_u([c2|c2]) : first layer uses column-summed (42,200) weight ----
    out2 = leaky(lin(leaky(lin(leaky(lin(c2, wub1, bub1)), wub2, bub2)), wub3, bub3))

    # ---- ffn on concat(out1, out2, m2) via split first-layer weights ----
    f = (jnp.dot(out1, wf1a[...], preferred_element_type=jnp.float32)
         + jnp.dot(out2, wf1b[...], preferred_element_type=jnp.float32)
         + jnp.dot(m2, wf1c[...], preferred_element_type=jnp.float32)
         + bf1[...])
    f = jnp.maximum(f, 0.0)
    # final 164->1 layer as VPU mul + lane reduce (avoids an N=1 MXU matmul)
    out = jnp.sum(f * wf2r[...], axis=-1, keepdims=True) + bf2[...]

    out_ref[...] = out
    out1_ref[...] = out1
    out2_ref[...] = out2


def babelnet_forward(fused_params, x1, xa, xt, xm):
    b = x1.shape[0]
    out_shapes = (
        jax.ShapeDtypeStruct((b, 1), jnp.float32),
        jax.ShapeDtypeStruct((b, 100), jnp.float32),
        jax.ShapeDtypeStruct((b, 100), jnp.float32),
    )
    return pl.pallas_call(
        _babel_fused_kernel,
        out_shape=out_shapes,
        # no grid: one invocation, all operands fully resident in VMEM
        compiler_params=pltpu.CompilerParams(vmem_limit_bytes=32 * 1024 * 1024),
    )(x1, xa, xt, xm, *fused_params)


# ----------------------------------------------------------------------------
# parameters (deterministic, kaiming-normal weights / 0.01 bias for Linear)
# ----------------------------------------------------------------------------
def init_params(key):
    keys = iter(jax.random.split(key, 24))

    def lin(fan_in, fan_out):
        w = jax.random.normal(next(keys), (fan_in, fan_out), jnp.float32)
        w = w * (2.0 / fan_in) ** 0.5
        b = jnp.full((fan_out,), 0.01, jnp.float32)
        return (w, b)

    return {
        "enc_user": [lin(U_DIM, 1024), lin(1024, CHANNEL)],
        "enc_audio": [lin(A_DIM, 600), lin(600, 300)],
        "enc_text": [lin(T_DIM, 256), lin(256, 300)],
        "enc_meta": [lin(ME_DIM, 1600), lin(1600, 300)],
        "babel_u": [lin(CHANNEL, 200), lin(200, 256), lin(256, 100)],
        "babel_i": [lin(CHANNEL, 200), lin(200, 256), lin(256, 100)],
        "ffn": [lin(300, 164), lin(164, 1)],
        "conv1_w": jax.random.normal(next(keys), (20, 20), jnp.float32) * 0.05,
        "conv1_b": jnp.zeros((1,), jnp.float32),
        "conv2_w": jax.random.normal(next(keys), (5, 50), jnp.float32) * 0.06,
        "conv2_b": jnp.zeros((1,), jnp.float32),
    }


def _toeplitz(wsum, in_len, out_len, stride):
    """T[i, o] = wsum[i - stride*o] for valid taps, else 0.  vec @ T == 1-D conv."""
    k = wsum.shape[0]
    i = jnp.arange(in_len)[:, None]
    o = jnp.arange(out_len)[None, :]
    idx = i - stride * o
    valid = (idx >= 0) & (idx < k)
    return jnp.where(valid, wsum[jnp.clip(idx, 0, k - 1)], 0.0).astype(jnp.float32)


def prepare_fused_params(p):
    """One-time (host/XLA) weight preprocessing for the fused kernel."""
    def row(b):
        return b.reshape(1, -1)

    (wu1, bu1), (wu2, bu2) = p["enc_user"]
    (wa1, ba1), (wa2, ba2) = p["enc_audio"]
    (wt1, bt1), (wt2, bt2) = p["enc_text"]
    (wm1, bm1), (wm2, bm2) = p["enc_meta"]

    # only the [:,200:300] chunk of these encoders reaches the outputs (exact)
    wa2c, ba2c = wa2[:, 200:300], ba2[200:300]
    wt2c, bt2c = wt2[:, 200:300], bt2[200:300]
    wm2c, bm2c = wm2[:, 200:300], bm2[200:300]

    # 2-D convs reduce to 1-D convs (identical rows) -> Toeplitz matmuls
    w1sum = jnp.sum(p["conv1_w"], axis=0)                    # (20,)
    w2sum = jnp.sum(p["conv2_w"], axis=0)                    # (50,)
    tz1 = _toeplitz(w1sum, 200, 91, 2)                       # (200, 91)
    tz2 = _toeplitz(w2sum, 91, 42, 1)                        # (91, 42)
    w1se, w1m = tz1[0:100], tz1[100:200]
    cb1 = jnp.full((1, 91), p["conv1_b"][0], jnp.float32)
    cb2 = jnp.full((1, 42), p["conv2_b"][0], jnp.float32)

    (wi1, bi1), (wi2, bi2), (wi3, bi3) = p["babel_i"]
    (wub1, bub1), (wub2, bub2), (wub3, bub3) = p["babel_u"]
    # flattened conv output is [c2 | c2] -> sum the two 42-row halves
    wub1e = wub1[0:42] + wub1[42:84]                         # (42, 200)

    (wf1, bf1), (wf2, bf2) = p["ffn"]
    wf1a, wf1b, wf1c = wf1[0:100], wf1[100:200], wf1[200:300]
    wf2r = wf2.reshape(1, -1)                                # (1, 164)

    return (
        wu1, row(bu1), wu2, row(bu2),
        wa1, row(ba1), wa2c, row(ba2c),
        wt1, row(bt1), wt2c, row(bt2c),
        wm1, row(bm1), wm2c, row(bm2c),
        w1se, w1m, cb1, tz2, cb2,
        wi1, row(bi1), wi2, row(bi2), wi3, row(bi3),
        wub1e, row(bub1), wub2, row(bub2), wub3, row(bub3),
        wf1a, wf1b, wf1c, row(bf1), wf2r, row(bf2),
    )


# ----------------------------------------------------------------------------
# pure-JAX reference with the ORIGINAL (un-collapsed) semantics, used to
# verify that the algebraic simplifications are exact.
# ----------------------------------------------------------------------------
def _reference_forward(p, x1, x2):
    def leaky(x):
        return jnp.where(x >= 0, x, NEG_SLOPE * x)

    def seq(x, layers, acts):
        for (w, b), act in zip(layers, acts):
            x = x @ w + b
            if act == "leaky":
                x = leaky(x)
            elif act == "relu":
                x = jnp.maximum(x, 0.0)
        return x

    outu = seq(x1, p["enc_user"], ["leaky", "leaky"])
    outa = seq(x2[1], p["enc_audio"], ["leaky", "leaky"])
    outt = seq(x2[2], p["enc_text"], ["leaky", "leaky"])
    outm = seq(x2[4], p["enc_meta"], ["leaky", "leaky"])
    a0, a1, a2 = outa[:, :100], outa[:, 100:200], outa[:, 200:]
    t0, t1, t2 = outt[:, :100], outt[:, 100:200], outt[:, 200:]
    m0, m1, m2 = outm[:, :100], outm[:, 100:200], outm[:, 200:]

    def rep(v):
        return jnp.broadcast_to(v[:, None, :], (v.shape[0], ROW, 100))

    def expf(q, k, v):
        z = jnp.einsum("bij,bkj->bik", q, k)
        norm = jnp.power(jnp.sum(jnp.abs(z) ** 10, axis=1, keepdims=True), 0.1)
        z = z / jnp.maximum(norm, 1e-12)
        z = jax.nn.softmax(z, axis=1)
        return jnp.einsum("bik,bkj->bij", z, v)

    q_t, k_t, v_t = rep(t0), rep(t1), rep(t2)
    q_a, k_a, v_a = rep(a0), rep(a1), rep(a2)
    q_m, k_m, v_m = rep(m0), rep(m1), rep(m2)
    st = expf(q_t, k_t, v_t)
    sm = expf(q_m, k_m, v_m)
    sa = expf(q_a, k_a, v_a)
    itm = expf(q_t, k_m, v_m)
    ima = expf(q_a, k_m, v_m)
    # ita / iat computed in PyTorch but never used -> omitted
    outi = jnp.concatenate([0.5 * (sa + ima) * 0.5 * (st + itm), sm], axis=2)

    x = outi[:, None, :, :]
    dn = ("NCHW", "OIHW", "NCHW")
    c1 = jax.lax.conv_general_dilated(x, p["conv1_w"][None, None], (2, 2),
                                      "VALID", dimension_numbers=dn)
    c1 = leaky(c1 + p["conv1_b"][0])
    c2 = jax.lax.conv_general_dilated(c1, p["conv2_w"][None, None], (1, 1),
                                      "VALID", dimension_numbers=dn)
    c2 = leaky(c2 + p["conv2_b"][0])

    out1 = seq(outu, p["babel_i"], ["leaky"] * 3)
    out2 = seq(c2.reshape(x1.shape[0], -1), p["babel_u"], ["leaky"] * 3)
    diff = jnp.concatenate([out1, out2, m2], axis=1)
    out = seq(diff, p["ffn"], ["relu", "none"])
    return out, out1, out2


if __name__ == "__main__":
    key = jax.random.PRNGKey(0)
    kp, k1, k2, k3, k4, k5, k6 = jax.random.split(key, 7)
    params = init_params(kp)
    fused = prepare_fused_params(params)

    x1 = jax.random.normal(k1, (B, U_DIM), jnp.float32)
    x2 = (
        jax.random.normal(k2, (B, 8), jnp.float32),      # x2[0] item (unused)
        jax.random.normal(k3, (B, A_DIM), jnp.float32),  # x2[1] audio
        jax.random.normal(k4, (B, T_DIM), jnp.float32),  # x2[2] text
        jax.random.normal(k5, (B, 8), jnp.float32),      # x2[3] unused
        jax.random.normal(k6, (B, ME_DIM), jnp.float32), # x2[4] meta
    )

    fwd = jax.jit(babelnet_forward)
    out, out1, out2 = fwd(fused, x1, x2[1], x2[2], x2[4])
    jax.block_until_ready((out, out1, out2))

    assert out.shape == (B, 1)
    assert out1.shape == (B, 100)
    assert out2.shape == (B, 100)
    assert bool(jnp.all(jnp.isfinite(out)))

    # verify the fused/simplified kernel against the literal forward pass
    with jax.default_matmul_precision("highest"):
        ref_out, ref_out1, ref_out2 = _reference_forward(params, x1, x2)
    for got, want in zip((out, out1, out2), (ref_out, ref_out1, ref_out2)):
        assert bool(jnp.allclose(got, want, rtol=5e-2, atol=5e-2)), \
            float(jnp.max(jnp.abs(got - want)))

    print("KERNEL_OK")
</pallas_src>

<mosaic_0001>
module attributes {stable_mosaic.version = 11 : i64} {
  func.func @_babel_fused_kernel(%arg0: memref<2x32xf32, #tpu.memory_space<vmem>>, %arg1: memref<2x24xf32, #tpu.memory_space<vmem>>, %arg2: memref<2x20xf32, #tpu.memory_space<vmem>>, %arg3: memref<2x40xf32, #tpu.memory_space<vmem>>, %arg4: memref<32x1024xf32, #tpu.memory_space<vmem>>, %arg5: memref<1x1024xf32, #tpu.memory_space<vmem>>, %arg6: memref<1024x84xf32, #tpu.memory_space<vmem>>, %arg7: memref<1x84xf32, #tpu.memory_space<vmem>>, %arg8: memref<24x600xf32, #tpu.memory_space<vmem>>, %arg9: memref<1x600xf32, #tpu.memory_space<vmem>>, %arg10: memref<600x100xf32, #tpu.memory_space<vmem>>, %arg11: memref<1x100xf32, #tpu.memory_space<vmem>>, %arg12: memref<20x256xf32, #tpu.memory_space<vmem>>, %arg13: memref<1x256xf32, #tpu.memory_space<vmem>>, %arg14: memref<256x100xf32, #tpu.memory_space<vmem>>, %arg15: memref<1x100xf32, #tpu.memory_space<vmem>>, %arg16: memref<40x1600xf32, #tpu.memory_space<vmem>>, %arg17: memref<1x1600xf32, #tpu.memory_space<vmem>>, %arg18: memref<1600x100xf32, #tpu.memory_space<vmem>>, %arg19: memref<1x100xf32, #tpu.memory_space<vmem>>, %arg20: memref<100x91xf32, #tpu.memory_space<vmem>>, %arg21: memref<100x91xf32, #tpu.memory_space<vmem>>, %arg22: memref<1x91xf32, #tpu.memory_space<vmem>>, %arg23: memref<91x42xf32, #tpu.memory_space<vmem>>, %arg24: memref<1x42xf32, #tpu.memory_space<vmem>>, %arg25: memref<84x200xf32, #tpu.memory_space<vmem>>, %arg26: memref<1x200xf32, #tpu.memory_space<vmem>>, %arg27: memref<200x256xf32, #tpu.memory_space<vmem>>, %arg28: memref<1x256xf32, #tpu.memory_space<vmem>>, %arg29: memref<256x100xf32, #tpu.memory_space<vmem>>, %arg30: memref<1x100xf32, #tpu.memory_space<vmem>>, %arg31: memref<42x200xf32, #tpu.memory_space<vmem>>, %arg32: memref<1x200xf32, #tpu.memory_space<vmem>>, %arg33: memref<200x256xf32, #tpu.memory_space<vmem>>, %arg34: memref<1x256xf32, #tpu.memory_space<vmem>>, %arg35: memref<256x100xf32, #tpu.memory_space<vmem>>, %arg36: memref<1x100xf32, #tpu.memory_space<vmem>>, %arg37: memref<100x164xf32, #tpu.memory_space<vmem>>, %arg38: memref<100x164xf32, #tpu.memory_space<vmem>>, %arg39: memref<100x164xf32, #tpu.memory_space<vmem>>, %arg40: memref<1x164xf32, #tpu.memory_space<vmem>>, %arg41: memref<1x164xf32, #tpu.memory_space<vmem>>, %arg42: memref<1x1xf32, #tpu.memory_space<vmem>>, %arg43: memref<2x1xf32, #tpu.memory_space<vmem>>, %arg44: memref<2x100xf32, #tpu.memory_space<vmem>>, %arg45: memref<2x100xf32, #tpu.memory_space<vmem>>) attributes {dimension_semantics = [], scalar_prefetch = 0 : i64, scratch_operands = 0 : i64, tpu.core_type = #tpu.core_type<tc>} {
    %c0 = arith.constant 0 : index
    %c0_0 = arith.constant 0 : index
    %0 = vector.load %arg0[%c0, %c0_0] : memref<2x32xf32, #tpu.memory_space<vmem>>, vector<2x32xf32>
    %c0_1 = arith.constant 0 : index
    %c0_2 = arith.constant 0 : index
    %1 = vector.load %arg4[%c0_1, %c0_2] : memref<32x1024xf32, #tpu.memory_space<vmem>>, vector<32x1024xf32>
    %cst = arith.constant dense<0.000000e+00> : vector<2x1024xf32>
    %2 = tpu.matmul %0, %1, %cst {dimension_numbers = #tpu.dot_dimension_numbers<[1], [0], [0], [1], [0, 0, 1, 1], [], []>} : vector<2x32xf32>, vector<32x1024xf32>, vector<2x1024xf32> -> vector<2x1024xf32>
    %c0_3 = arith.constant 0 : index
    %c0_4 = arith.constant 0 : index
    %3 = vector.load %arg5[%c0_3, %c0_4] : memref<1x1024xf32, #tpu.memory_space<vmem>>, vector<1x1024xf32>
    %4 = vector.broadcast %3 : vector<1x1024xf32> to vector<2x1024xf32>
    %5 = arith.addf %2, %4 : vector<2x1024xf32>
    %cst_5 = arith.constant 0.000000e+00 : f32
    %6 = vector.broadcast %cst_5 : f32 to vector<2x1024xf32>
    %7 = arith.cmpf oge, %5, %6 : vector<2x1024xf32>
    %cst_6 = arith.constant 0.00999999977 : f32
    %8 = vector.broadcast %cst_6 : f32 to vector<2x1024xf32>
    %9 = arith.mulf %8, %5 : vector<2x1024xf32>
    %10 = arith.select %7, %5, %9 : vector<2x1024xi1>, vector<2x1024xf32>
    %c0_7 = arith.constant 0 : index
    %c0_8 = arith.constant 0 : index
    %11 = vector.load %arg6[%c0_7, %c0_8] : memref<1024x84xf32, #tpu.memory_space<vmem>>, vector<1024x84xf32>
    %cst_9 = arith.constant dense<0.000000e+00> : vector<2x84xf32>
    %12 = tpu.matmul %10, %11, %cst_9 {dimension_numbers = #tpu.dot_dimension_numbers<[1], [0], [0], [1], [0, 0, 1, 1], [], []>} : vector<2x1024xf32>, vector<1024x84xf32>, vector<2x84xf32> -> vector<2x84xf32>
    %c0_10 = arith.constant 0 : index
    %c0_11 = arith.constant 0 : index
    %13 = vector.load %arg7[%c0_10, %c0_11] : memref<1x84xf32, #tpu.memory_space<vmem>>, vector<1x84xf32>
    %14 = vector.broadcast %13 : vector<1x84xf32> to vector<2x84xf32>
    %15 = arith.addf %12, %14 : vector<2x84xf32>
    %cst_12 = arith.constant 0.000000e+00 : f32
    %16 = vector.broadcast %cst_12 : f32 to vector<2x84xf32>
    %17 = arith.cmpf oge, %15, %16 : vector<2x84xf32>
    %cst_13 = arith.constant 0.00999999977 : f32
    %18 = vector.broadcast %cst_13 : f32 to vector<2x84xf32>
    %19 = arith.mulf %18, %15 : vector<2x84xf32>
    %20 = arith.select %17, %15, %19 : vector<2x84xi1>, vector<2x84xf32>
    %c0_14 = arith.constant 0 : index
    %c0_15 = arith.constant 0 : index
    %21 = vector.load %arg1[%c0_14, %c0_15] : memref<2x24xf32, #tpu.memory_space<vmem>>, vector<2x24xf32>
    %c0_16 = arith.constant 0 : index
    %c0_17 = arith.constant 0 : index
    %22 = vector.load %arg8[%c0_16, %c0_17] : memref<24x600xf32, #tpu.memory_space<vmem>>, vector<24x600xf32>
    %cst_18 = arith.constant dense<0.000000e+00> : vector<2x600xf32>
    %23 = tpu.matmul %21, %22, %cst_18 {dimension_numbers = #tpu.dot_dimension_numbers<[1], [0], [0], [1], [0, 0, 1, 1], [], []>} : vector<2x24xf32>, vector<24x600xf32>, vector<2x600xf32> -> vector<2x600xf32>
    %c0_19 = arith.constant 0 : index
    %c0_20 = arith.constant 0 : index
    %24 = vector.load %arg9[%c0_19, %c0_20] : memref<1x600xf32, #tpu.memory_space<vmem>>, vector<1x600xf32>
    %25 = vector.broadcast %24 : vector<1x600xf32> to vector<2x600xf32>
    %26 = arith.addf %23, %25 : vector<2x600xf32>
    %cst_21 = arith.constant 0.000000e+00 : f32
    %27 = vector.broadcast %cst_21 : f32 to vector<2x600xf32>
    %28 = arith.cmpf oge, %26, %27 : vector<2x600xf32>
    %cst_22 = arith.constant 0.00999999977 : f32
    %29 = vector.broadcast %cst_22 : f32 to vector<2x600xf32>
    %30 = arith.mulf %29, %26 : vector<2x600xf32>
    %31 = arith.select %28, %26, %30 : vector<2x600xi1>, vector<2x600xf32>
    %c0_23 = arith.constant 0 : index
    %c0_24 = arith.constant 0 : index
    %32 = vector.load %arg10[%c0_23, %c0_24] : memref<600x100xf32, #tpu.memory_space<vmem>>, vector<600x100xf32>
    %cst_25 = arith.constant dense<0.000000e+00> : vector<2x100xf32>
    %33 = tpu.matmul %31, %32, %cst_25 {dimension_numbers = #tpu.dot_dimension_numbers<[1], [0], [0], [1], [0, 0, 1, 1], [], []>} : vector<2x600xf32>, vector<600x100xf32>, vector<2x100xf32> -> vector<2x100xf32>
    %c0_26 = arith.constant 0 : index
    %c0_27 = arith.constant 0 : index
    %34 = vector.load %arg11[%c0_26, %c0_27] : memref<1x100xf32, #tpu.memory_space<vmem>>, vector<1x100xf32>
    %35 = vector.broadcast %34 : vector<1x100xf32> to vector<2x100xf32>
    %36 = arith.addf %33, %35 : vector<2x100xf32>
    %cst_28 = arith.constant 0.000000e+00 : f32
    %37 = vector.broadcast %cst_28 : f32 to vector<2x100xf32>
    %38 = arith.cmpf oge, %36, %37 : vector<2x100xf32>
    %cst_29 = arith.constant 0.00999999977 : f32
    %39 = vector.broadcast %cst_29 : f32 to vector<2x100xf32>
    %40 = arith.mulf %39, %36 : vector<2x100xf32>
    %41 = arith.select %38, %36, %40 : vector<2x100xi1>, vector<2x100xf32>
    %c0_30 = arith.constant 0 : index
    %c0_31 = arith.constant 0 : index
    %42 = vector.load %arg2[%c0_30, %c0_31] : memref<2x20xf32, #tpu.memory_space<vmem>>, vector<2x20xf32>
    %c0_32 = arith.constant 0 : index
    %c0_33 = arith.constant 0 : index
    %43 = vector.load %arg12[%c0_32, %c0_33] : memref<20x256xf32, #tpu.memory_space<vmem>>, vector<20x256xf32>
    %cst_34 = arith.constant dense<0.000000e+00> : vector<2x256xf32>
    %44 = tpu.matmul %42, %43, %cst_34 {dimension_numbers = #tpu.dot_dimension_numbers<[1], [0], [0], [1], [0, 0, 1, 1], [], []>} : vector<2x20xf32>, vector<20x256xf32>, vector<2x256xf32> -> vector<2x256xf32>
    %c0_35 = arith.constant 0 : index
    %c0_36 = arith.constant 0 : index
    %45 = vector.load %arg13[%c0_35, %c0_36] : memref<1x256xf32, #tpu.memory_space<vmem>>, vector<1x256xf32>
    %46 = vector.broadcast %45 : vector<1x256xf32> to vector<2x256xf32>
    %47 = arith.addf %44, %46 : vector<2x256xf32>
    %cst_37 = arith.constant 0.000000e+00 : f32
    %48 = vector.broadcast %cst_37 : f32 to vector<2x256xf32>
    %49 = arith.cmpf oge, %47, %48 : vector<2x256xf32>
    %cst_38 = arith.constant 0.00999999977 : f32
    %50 = vector.broadcast %cst_38 : f32 to vector<2x256xf32>
    %51 = arith.mulf %50, %47 : vector<2x256xf32>
    %52 = arith.select %49, %47, %51 : vector<2x256xi1>, vector<2x256xf32>
    %c0_39 = arith.constant 0 : index
    %c0_40 = arith.constant 0 : index
    %53 = vector.load %arg14[%c0_39, %c0_40] : memref<256x100xf32, #tpu.memory_space<vmem>>, vector<256x100xf32>
    %cst_41 = arith.constant dense<0.000000e+00> : vector<2x100xf32>
    %54 = tpu.matmul %52, %53, %cst_41 {dimension_numbers = #tpu.dot_dimension_numbers<[1], [0], [0], [1], [0, 0, 1, 1], [], []>} : vector<2x256xf32>, vector<256x100xf32>, vector<2x100xf32> -> vector<2x100xf32>
    %c0_42 = arith.constant 0 : index
    %c0_43 = arith.constant 0 : index
    %55 = vector.load %arg15[%c0_42, %c0_43] : memref<1x100xf32, #tpu.memory_space<vmem>>, vector<1x100xf32>
    %56 = vector.broadcast %55 : vector<1x100xf32> to vector<2x100xf32>
    %57 = arith.addf %54, %56 : vector<2x100xf32>
    %cst_44 = arith.constant 0.000000e+00 : f32
    %58 = vector.broadcast %cst_44 : f32 to vector<2x100xf32>
    %59 = arith.cmpf oge, %57, %58 : vector<2x100xf32>
    %cst_45 = arith.constant 0.00999999977 : f32
    %60 = vector.broadcast %cst_45 : f32 to vector<2x100xf32>
    %61 = arith.mulf %60, %57 : vector<2x100xf32>
    %62 = arith.select %59, %57, %61 : vector<2x100xi1>, vector<2x100xf32>
    %c0_46 = arith.constant 0 : index
    %c0_47 = arith.constant 0 : index
    %63 = vector.load %arg3[%c0_46, %c0_47] : memref<2x40xf32, #tpu.memory_space<vmem>>, vector<2x40xf32>
    %c0_48 = arith.constant 0 : index
    %c0_49 = arith.constant 0 : index
    %64 = vector.load %arg16[%c0_48, %c0_49] : memref<40x1600xf32, #tpu.memory_space<vmem>>, vector<40x1600xf32>
    %cst_50 = arith.constant dense<0.000000e+00> : vector<2x1600xf32>
    %65 = tpu.matmul %63, %64, %cst_50 {dimension_numbers = #tpu.dot_dimension_numbers<[1], [0], [0], [1], [0, 0, 1, 1], [], []>} : vector<2x40xf32>, vector<40x1600xf32>, vector<2x1600xf32> -> vector<2x1600xf32>
    %c0_51 = arith.constant 0 : index
    %c0_52 = arith.constant 0 : index
    %66 = vector.load %arg17[%c0_51, %c0_52] : memref<1x1600xf32, #tpu.memory_space<vmem>>, vector<1x1600xf32>
    %67 = vector.broadcast %66 : vector<1x1600xf32> to vector<2x1600xf32>
    %68 = arith.addf %65, %67 : vector<2x1600xf32>
    %cst_53 = arith.constant 0.000000e+00 : f32
    %69 = vector.broadcast %cst_53 : f32 to vector<2x1600xf32>
    %70 = arith.cmpf oge, %68, %69 : vector<2x1600xf32>
    %cst_54 = arith.constant 0.00999999977 : f32
    %71 = vector.broadcast %cst_54 : f32 to vector<2x1600xf32>
    %72 = arith.mulf %71, %68 : vector<2x1600xf32>
    %73 = arith.select %70, %68, %72 : vector<2x1600xi1>, vector<2x1600xf32>
    %c0_55 = arith.constant 0 : index
    %c0_56 = arith.constant 0 : index
    %74 = vector.load %arg18[%c0_55, %c0_56] : memref<1600x100xf32, #tpu.memory_space<vmem>>, vector<1600x100xf32>
    %cst_57 = arith.constant dense<0.000000e+00> : vector<2x100xf32>
    %75 = tpu.matmul %73, %74, %cst_57 {dimension_numbers = #tpu.dot_dimension_numbers<[1], [0], [0], [1], [0, 0, 1, 1], [], []>} : vector<2x1600xf32>, vector<1600x100xf32>, vector<2x100xf32> -> vector<2x100xf32>
    %c0_58 = arith.constant 0 : index
    %c0_59 = arith.constant 0 : index
    %76 = vector.load %arg19[%c0_58, %c0_59] : memref<1x100xf32, #tpu.memory_space<vmem>>, vector<1x100xf32>
    %77 = vector.broadcast %76 : vector<1x100xf32> to vector<2x100xf32>
    %78 = arith.addf %75, %77 : vector<2x100xf32>
    %cst_60 = arith.constant 0.000000e+00 : f32
    %79 = vector.broadcast %cst_60 : f32 to vector<2x100xf32>
    %80 = arith.cmpf oge, %78, %79 : vector<2x100xf32>
    %cst_61 = arith.constant 0.00999999977 : f32
    %81 = vector.broadcast %cst_61 : f32 to vector<2x100xf32>
    %82 = arith.mulf %81, %78 : vector<2x100xf32>
    %83 = arith.select %80, %78, %82 : vector<2x100xi1>, vector<2x100xf32>
    %84 = arith.addf %41, %83 : vector<2x100xf32>
    %cst_62 = arith.constant 2.500000e-01 : f32
    %85 = vector.broadcast %cst_62 : f32 to vector<2x100xf32>
    %86 = arith.mulf %85, %84 : vector<2x100xf32>
    %87 = arith.addf %62, %83 : vector<2x100xf32>
    %88 = arith.mulf %86, %87 : vector<2x100xf32>
    %c0_63 = arith.constant 0 : index
    %c0_64 = arith.constant 0 : index
    %89 = vector.load %arg20[%c0_63, %c0_64] : memref<100x91xf32, #tpu.memory_space<vmem>>, vector<100x91xf32>
    %cst_65 = arith.constant dense<0.000000e+00> : vector<2x91xf32>
    %90 = tpu.matmul %88, %89, %cst_65 {dimension_numbers = #tpu.dot_dimension_numbers<[1], [0], [0], [1], [0, 0, 1, 1], [], []>} : vector<2x100xf32>, vector<100x91xf32>, vector<2x91xf32> -> vector<2x91xf32>
    %c0_66 = arith.constant 0 : index
    %c0_67 = arith.constant 0 : index
    %91 = vector.load %arg21[%c0_66, %c0_67] : memref<100x91xf32, #tpu.memory_space<vmem>>, vector<100x91xf32>
    %cst_68 = arith.constant dense<0.000000e+00> : vector<2x91xf32>
    %92 = tpu.matmul %83, %91, %cst_68 {dimension_numbers = #tpu.dot_dimension_numbers<[1], [0], [0], [1], [0, 0, 1, 1], [], []>} : vector<2x100xf32>, vector<100x91xf32>, vector<2x91xf32> -> vector<2x91xf32>
    %93 = arith.addf %90, %92 : vector<2x91xf32>
    %c0_69 = arith.constant 0 : index
    %c0_70 = arith.constant 0 : index
    %94 = vector.load %arg22[%c0_69, %c0_70] : memref<1x91xf32, #tpu.memory_space<vmem>>, vector<1x91xf32>
    %95 = vector.broadcast %94 : vector<1x91xf32> to vector<2x91xf32>
    %96 = arith.addf %93, %95 : vector<2x91xf32>
    %cst_71 = arith.constant 0.000000e+00 : f32
    %97 = vector.broadcast %cst_71 : f32 to vector<2x91xf32>
    %98 = arith.cmpf oge, %96, %97 : vector<2x91xf32>
    %cst_72 = arith.constant 0.00999999977 : f32
    %99 = vector.broadcast %cst_72 : f32 to vector<2x91xf32>
    %100 = arith.mulf %99, %96 : vector<2x91xf32>
    %101 = arith.select %98, %96, %100 : vector<2x91xi1>, vector<2x91xf32>
    %c0_73 = arith.constant 0 : index
    %c0_74 = arith.constant 0 : index
    %102 = vector.load %arg23[%c0_73, %c0_74] : memref<91x42xf32, #tpu.memory_space<vmem>>, vector<91x42xf32>
    %cst_75 = arith.constant dense<0.000000e+00> : vector<2x42xf32>
    %103 = tpu.matmul %101, %102, %cst_75 {dimension_numbers = #tpu.dot_dimension_numbers<[1], [0], [0], [1], [0, 0, 1, 1], [], []>} : vector<2x91xf32>, vector<91x42xf32>, vector<2x42xf32> -> vector<2x42xf32>
    %c0_76 = arith.constant 0 : index
    %c0_77 = arith.constant 0 : index
    %104 = vector.load %arg24[%c0_76, %c0_77] : memref<1x42xf32, #tpu.memory_space<vmem>>, vector<1x42xf32>
    %105 = vector.broadcast %104 : vector<1x42xf32> to vector<2x42xf32>
    %106 = arith.addf %103, %105 : vector<2x42xf32>
    %cst_78 = arith.constant 0.000000e+00 : f32
    %107 = vector.broadcast %cst_78 : f32 to vector<2x42xf32>
    %108 = arith.cmpf oge, %106, %107 : vector<2x42xf32>
    %cst_79 = arith.constant 0.00999999977 : f32
    %109 = vector.broadcast %cst_79 : f32 to vector<2x42xf32>
    %110 = arith.mulf %109, %106 : vector<2x42xf32>
    %111 = arith.select %108, %106, %110 : vector<2x42xi1>, vector<2x42xf32>
    %c0_80 = arith.constant 0 : index
    %c0_81 = arith.constant 0 : index
    %112 = vector.load %arg25[%c0_80, %c0_81] : memref<84x200xf32, #tpu.memory_space<vmem>>, vector<84x200xf32>
    %cst_82 = arith.constant dense<0.000000e+00> : vector<2x200xf32>
    %113 = tpu.matmul %20, %112, %cst_82 {dimension_numbers = #tpu.dot_dimension_numbers<[1], [0], [0], [1], [0, 0, 1, 1], [], []>} : vector<2x84xf32>, vector<84x200xf32>, vector<2x200xf32> -> vector<2x200xf32>
    %c0_83 = arith.constant 0 : index
    %c0_84 = arith.constant 0 : index
    %114 = vector.load %arg26[%c0_83, %c0_84] : memref<1x200xf32, #tpu.memory_space<vmem>>, vector<1x200xf32>
    %115 = vector.broadcast %114 : vector<1x200xf32> to vector<2x200xf32>
    %116 = arith.addf %113, %115 : vector<2x200xf32>
    %cst_85 = arith.constant 0.000000e+00 : f32
    %117 = vector.broadcast %cst_85 : f32 to vector<2x200xf32>
    %118 = arith.cmpf oge, %116, %117 : vector<2x200xf32>
    %cst_86 = arith.constant 0.00999999977 : f32
    %119 = vector.broadcast %cst_86 : f32 to vector<2x200xf32>
    %120 = arith.mulf %119, %116 : vector<2x200xf32>
    %121 = arith.select %118, %116, %120 : vector<2x200xi1>, vector<2x200xf32>
    %c0_87 = arith.constant 0 : index
    %c0_88 = arith.constant 0 : index
    %122 = vector.load %arg27[%c0_87, %c0_88] : memref<200x256xf32, #tpu.memory_space<vmem>>, vector<200x256xf32>
    %cst_89 = arith.constant dense<0.000000e+00> : vector<2x256xf32>
    %123 = tpu.matmul %121, %122, %cst_89 {dimension_numbers = #tpu.dot_dimension_numbers<[1], [0], [0], [1], [0, 0, 1, 1], [], []>} : vector<2x200xf32>, vector<200x256xf32>, vector<2x256xf32> -> vector<2x256xf32>
    %c0_90 = arith.constant 0 : index
    %c0_91 = arith.constant 0 : index
    %124 = vector.load %arg28[%c0_90, %c0_91] : memref<1x256xf32, #tpu.memory_space<vmem>>, vector<1x256xf32>
    %125 = vector.broadcast %124 : vector<1x256xf32> to vector<2x256xf32>
    %126 = arith.addf %123, %125 : vector<2x256xf32>
    %cst_92 = arith.constant 0.000000e+00 : f32
    %127 = vector.broadcast %cst_92 : f32 to vector<2x256xf32>
    %128 = arith.cmpf oge, %126, %127 : vector<2x256xf32>
    %cst_93 = arith.constant 0.00999999977 : f32
    %129 = vector.broadcast %cst_93 : f32 to vector<2x256xf32>
    %130 = arith.mulf %129, %126 : vector<2x256xf32>
    %131 = arith.select %128, %126, %130 : vector<2x256xi1>, vector<2x256xf32>
    %c0_94 = arith.constant 0 : index
    %c0_95 = arith.constant 0 : index
    %132 = vector.load %arg29[%c0_94, %c0_95] : memref<256x100xf32, #tpu.memory_space<vmem>>, vector<256x100xf32>
    %cst_96 = arith.constant dense<0.000000e+00> : vector<2x100xf32>
    %133 = tpu.matmul %131, %132, %cst_96 {dimension_numbers = #tpu.dot_dimension_numbers<[1], [0], [0], [1], [0, 0, 1, 1], [], []>} : vector<2x256xf32>, vector<256x100xf32>, vector<2x100xf32> -> vector<2x100xf32>
    %c0_97 = arith.constant 0 : index
    %c0_98 = arith.constant 0 : index
    %134 = vector.load %arg30[%c0_97, %c0_98] : memref<1x100xf32, #tpu.memory_space<vmem>>, vector<1x100xf32>
    %135 = vector.broadcast %134 : vector<1x100xf32> to vector<2x100xf32>
    %136 = arith.addf %133, %135 : vector<2x100xf32>
    %cst_99 = arith.constant 0.000000e+00 : f32
    %137 = vector.broadcast %cst_99 : f32 to vector<2x100xf32>
    %138 = arith.cmpf oge, %136, %137 : vector<2x100xf32>
    %cst_100 = arith.constant 0.00999999977 : f32
    %139 = vector.broadcast %cst_100 : f32 to vector<2x100xf32>
    %140 = arith.mulf %139, %136 : vector<2x100xf32>
    %141 = arith.select %138, %136, %140 : vector<2x100xi1>, vector<2x100xf32>
    %c0_101 = arith.constant 0 : index
    %c0_102 = arith.constant 0 : index
    %142 = vector.load %arg31[%c0_101, %c0_102] : memref<42x200xf32, #tpu.memory_space<vmem>>, vector<42x200xf32>
    %cst_103 = arith.constant dense<0.000000e+00> : vector<2x200xf32>
    %143 = tpu.matmul %111, %142, %cst_103 {dimension_numbers = #tpu.dot_dimension_numbers<[1], [0], [0], [1], [0, 0, 1, 1], [], []>} : vector<2x42xf32>, vector<42x200xf32>, vector<2x200xf32> -> vector<2x200xf32>
    %c0_104 = arith.constant 0 : index
    %c0_105 = arith.constant 0 : index
    %144 = vector.load %arg32[%c0_104, %c0_105] : memref<1x200xf32, #tpu.memory_space<vmem>>, vector<1x200xf32>
    %145 = vector.broadcast %144 : vector<1x200xf32> to vector<2x200xf32>
    %146 = arith.addf %143, %145 : vector<2x200xf32>
    %cst_106 = arith.constant 0.000000e+00 : f32
    %147 = vector.broadcast %cst_106 : f32 to vector<2x200xf32>
    %148 = arith.cmpf oge, %146, %147 : vector<2x200xf32>
    %cst_107 = arith.constant 0.00999999977 : f32
    %149 = vector.broadcast %cst_107 : f32 to vector<2x200xf32>
    %150 = arith.mulf %149, %146 : vector<2x200xf32>
    %151 = arith.select %148, %146, %150 : vector<2x200xi1>, vector<2x200xf32>
    %c0_108 = arith.constant 0 : index
    %c0_109 = arith.constant 0 : index
    %152 = vector.load %arg33[%c0_108, %c0_109] : memref<200x256xf32, #tpu.memory_space<vmem>>, vector<200x256xf32>
    %cst_110 = arith.constant dense<0.000000e+00> : vector<2x256xf32>
    %153 = tpu.matmul %151, %152, %cst_110 {dimension_numbers = #tpu.dot_dimension_numbers<[1], [0], [0], [1], [0, 0, 1, 1], [], []>} : vector<2x200xf32>, vector<200x256xf32>, vector<2x256xf32> -> vector<2x256xf32>
    %c0_111 = arith.constant 0 : index
    %c0_112 = arith.constant 0 : index
    %154 = vector.load %arg34[%c0_111, %c0_112] : memref<1x256xf32, #tpu.memory_space<vmem>>, vector<1x256xf32>
    %155 = vector.broadcast %154 : vector<1x256xf32> to vector<2x256xf32>
    %156 = arith.addf %153, %155 : vector<2x256xf32>
    %cst_113 = arith.constant 0.000000e+00 : f32
    %157 = vector.broadcast %cst_113 : f32 to vector<2x256xf32>
    %158 = arith.cmpf oge, %156, %157 : vector<2x256xf32>
    %cst_114 = arith.constant 0.00999999977 : f32
    %159 = vector.broadcast %cst_114 : f32 to vector<2x256xf32>
    %160 = arith.mulf %159, %156 : vector<2x256xf32>
    %161 = arith.select %158, %156, %160 : vector<2x256xi1>, vector<2x256xf32>
    %c0_115 = arith.constant 0 : index
    %c0_116 = arith.constant 0 : index
    %162 = vector.load %arg35[%c0_115, %c0_116] : memref<256x100xf32, #tpu.memory_space<vmem>>, vector<256x100xf32>
    %cst_117 = arith.constant dense<0.000000e+00> : vector<2x100xf32>
    %163 = tpu.matmul %161, %162, %cst_117 {dimension_numbers = #tpu.dot_dimension_numbers<[1], [0], [0], [1], [0, 0, 1, 1], [], []>} : vector<2x256xf32>, vector<256x100xf32>, vector<2x100xf32> -> vector<2x100xf32>
    %c0_118 = arith.constant 0 : index
    %c0_119 = arith.constant 0 : index
    %164 = vector.load %arg36[%c0_118, %c0_119] : memref<1x100xf32, #tpu.memory_space<vmem>>, vector<1x100xf32>
    %165 = vector.broadcast %164 : vector<1x100xf32> to vector<2x100xf32>
    %166 = arith.addf %163, %165 : vector<2x100xf32>
    %cst_120 = arith.constant 0.000000e+00 : f32
    %167 = vector.broadcast %cst_120 : f32 to vector<2x100xf32>
    %168 = arith.cmpf oge, %166, %167 : vector<2x100xf32>
    %cst_121 = arith.constant 0.00999999977 : f32
    %169 = vector.broadcast %cst_121 : f32 to vector<2x100xf32>
    %170 = arith.mulf %169, %166 : vector<2x100xf32>
    %171 = arith.select %168, %166, %170 : vector<2x100xi1>, vector<2x100xf32>
    %c0_122 = arith.constant 0 : index
    %c0_123 = arith.constant 0 : index
    %172 = vector.load %arg37[%c0_122, %c0_123] : memref<100x164xf32, #tpu.memory_space<vmem>>, vector<100x164xf32>
    %cst_124 = arith.constant dense<0.000000e+00> : vector<2x164xf32>
    %173 = tpu.matmul %141, %172, %cst_124 {dimension_numbers = #tpu.dot_dimension_numbers<[1], [0], [0], [1], [0, 0, 1, 1], [], []>} : vector<2x100xf32>, vector<100x164xf32>, vector<2x164xf32> -> vector<2x164xf32>
    %c0_125 = arith.constant 0 : index
    %c0_126 = arith.constant 0 : index
    %174 = vector.load %arg38[%c0_125, %c0_126] : memref<100x164xf32, #tpu.memory_space<vmem>>, vector<100x164xf32>
    %cst_127 = arith.constant dense<0.000000e+00> : vector<2x164xf32>
    %175 = tpu.matmul %171, %174, %cst_127 {dimension_numbers = #tpu.dot_dimension_numbers<[1], [0], [0], [1], [0, 0, 1, 1], [], []>} : vector<2x100xf32>, vector<100x164xf32>, vector<2x164xf32> -> vector<2x164xf32>
    %176 = arith.addf %173, %175 : vector<2x164xf32>
    %c0_128 = arith.constant 0 : index
    %c0_129 = arith.constant 0 : index
    %177 = vector.load %arg39[%c0_128, %c0_129] : memref<100x164xf32, #tpu.memory_space<vmem>>, vector<100x164xf32>
    %cst_130 = arith.constant dense<0.000000e+00> : vector<2x164xf32>
    %178 = tpu.matmul %83, %177, %cst_130 {dimension_numbers = #tpu.dot_dimension_numbers<[1], [0], [0], [1], [0, 0, 1, 1], [], []>} : vector<2x100xf32>, vector<100x164xf32>, vector<2x164xf32> -> vector<2x164xf32>
    %179 = arith.addf %176, %178 : vector<2x164xf32>
    %c0_131 = arith.constant 0 : index
    %c0_132 = arith.constant 0 : index
    %180 = vector.load %arg40[%c0_131, %c0_132] : memref<1x164xf32, #tpu.memory_space<vmem>>, vector<1x164xf32>
    %181 = vector.broadcast %180 : vector<1x164xf32> to vector<2x164xf32>
    %182 = arith.addf %179, %181 : vector<2x164xf32>
    %cst_133 = arith.constant 0.000000e+00 : f32
    %183 = vector.broadcast %cst_133 : f32 to vector<2x164xf32>
    %184 = arith.maximumf %182, %183 : vector<2x164xf32>
    %c0_134 = arith.constant 0 : index
    %c0_135 = arith.constant 0 : index
    %185 = vector.load %arg41[%c0_134, %c0_135] : memref<1x164xf32, #tpu.memory_space<vmem>>, vector<1x164xf32>
    %186 = vector.broadcast %185 : vector<1x164xf32> to vector<2x164xf32>
    %187 = arith.mulf %184, %186 : vector<2x164xf32>
    %cst_136 = arith.constant dense<0.000000e+00> : vector<2xf32>
    %188 = vector.multi_reduction <add>, %187, %cst_136 [1] : vector<2x164xf32> to vector<2xf32>
    %189 = vector.shape_cast %188 : vector<2xf32> to vector<2x1xf32>
    %c0_137 = arith.constant 0 : index
    %c0_138 = arith.constant 0 : index
    %190 = vector.load %arg42[%c0_137, %c0_138] : memref<1x1xf32, #tpu.memory_space<vmem>>, vector<1x1xf32>
    %191 = vector.broadcast %190 : vector<1x1xf32> to vector<2x1xf32>
    %192 = arith.addf %189, %191 : vector<2x1xf32>
    %c0_139 = arith.constant 0 : index
    %c0_140 = arith.constant 0 : index
    %193 = vector.load %arg43[%c0_139, %c0_140] : memref<2x1xf32, #tpu.memory_space<vmem>>, vector<2x1xf32>
    tpu.vector_store %arg43[%c0_139, %c0_140], %192 {strides = array<i32>} : memref<2x1xf32, #tpu.memory_space<vmem>>, vector<2x1xf32>,
    %c0_141 = arith.constant 0 : index
    %c0_142 = arith.constant 0 : index
    %194 = vector.load %arg44[%c0_141, %c0_142] : memref<2x100xf32, #tpu.memory_space<vmem>>, vector<2x100xf32>
    tpu.vector_store %arg44[%c0_141, %c0_142], %141 {strides = array<i32>} : memref<2x100xf32, #tpu.memory_space<vmem>>, vector<2x100xf32>,
    %c0_143 = arith.constant 0 : index
    %c0_144 = arith.constant 0 : index
    %195 = vector.load %arg45[%c0_143, %c0_144] : memref<2x100xf32, #tpu.memory_space<vmem>>, vector<2x100xf32>
    tpu.vector_store %arg45[%c0_143, %c0_144], %171 {strides = array<i32>} : memref<2x100xf32, #tpu.memory_space<vmem>>, vector<2x100xf32>,
    return
  }
}

</mosaic_0001>

<bundles_post_ra>
// kernel: babelnet_forward.1
= control target key start
LH: loop header
LB: loop body
LE: loop exit
PB: predicated region body
PF: predicated region fallthrough
CT: control target
= control target key end

     0   :  { %s6408_s6 = smov 1   ;;  %s6409_s10 = smov 2   ;;  %s7863_s0 = inlined_call_operand.smem [shape: u32[46], index: -1, kind: input, shape index: {}] }
   0x1   :  { %s6467_s5 = sld [smem:[%s7863_s0]]   ;;  %s6410_s14 = smov 3  }
   0x2   :  { %s6472_s9 = sld [smem:[%s7863_s0 + %s6408_s6]]   ;;  %s6411_s18 = smov 4  }
   0x3   :  { %s6477_s13 = sld [smem:[%s7863_s0 + %s6409_s10]]   ;;  %s6412_s22 = smov 5  }
   0x4   :  { %s6482_s17 = sld [smem:[%s7863_s0 + %s6410_s14]]   ;;  %s6413_s26 = smov 6  }
   0x5   :  { %s6487_s21 = sld [smem:[%s7863_s0 + %s6411_s18]]   ;;  %s6414_s30 = smov 7  }
   0x6   :  { %s6492_s25 = sld [smem:[%s7863_s0 + %s6412_s22]]   ;;  %s6415_s4 = smov 8  }
   0x7   :  { %s6497_s29 = sld [smem:[%s7863_s0 + %s6413_s26]]   ;;  %s6416_s10 = smov 9  }
   0x8   :  { %s6502_s3 = sld [smem:[%s7863_s0 + %s6414_s30]]   ;;  %s6417_s15 = smov 10  }
   0x9   :  { %s6507_s8 = sld [smem:[%s7863_s0 + %s6415_s4]]   ;;  %s6418_s20 = smov 11  }
   0xa   :  { %s6512_s14 = sld [smem:[%s7863_s0 + %s6416_s10]]   ;;  %s6419_s26 = smov 12  }
   0xb   :  { %s6517_s19 = sld [smem:[%s7863_s0 + %s6417_s15]]   ;;  %s6420_s1 = smov 13  }
   0xc   :  { %s6522_s24 = sld [smem:[%s7863_s0 + %s6418_s20]]   ;;  %s6421_s7 = smov 14  }
   0xd   :  { %s6527_s30 = sld [smem:[%s7863_s0 + %s6419_s26]]   ;;  %s6422_s15 = smov 15  }
   0xe   :  { %s6532_s6 = sld [smem:[%s7863_s0 + %s6420_s1]]   ;;  %s6423_s22 = smov 16  }
   0xf   :  { %s6537_s12 = sld [smem:[%s7863_s0 + %s6421_s7]]   ;;  %s6424_s28 = smov 17  }
  0x10   :  { %s6542_s20 = sld [smem:[%s7863_s0 + %s6422_s15]]   ;;  %s6425_s7 = smov 18  }
  0x11   :  { %s6547_s27 = sld [smem:[%s7863_s0 + %s6423_s22]]   ;;  %s6426_s15 = smov 19  }
  0x12   :  { %7878 = sst [smem:[#allocation9_spill]] %s6522_s24  ;;  %s6427_s22 = smov 20  }
  0x13   :  { %s6552_s4 = sld [smem:[%s7863_s0 + %s6424_s28]]   ;;  %s6428_s28 = smov 21  }
  0x14   :  { %7879 = sst [smem:[#allocation10_spill]] %s6532_s6  ;;  %s6450_s16 = smov 43  }
  0x15   :  { %s6557_s24 = sld [smem:[%s7863_s0 + %s6425_s7]]   ;;  %s6429_s7 = smov 22  }
  0x16   :  { %7880 = sst [smem:[#allocation11_spill]] %s6542_s20  ;;  %s6451_s23 = smov 44  }
  0x17   :  { %s6562_s20 = sld [smem:[%s7863_s0 + %s6426_s15]]   ;;  %s6430_s15 = smov 23  }
  0x18   :  { %s6567_s6 = sld [smem:[%s7863_s0 + %s6427_s22]]   ;;  %s6431_s22 = smov 24  }
  0x19   :  { %7881 = sst [smem:[#allocation12_spill]] %s6552_s4  ;;  %s6452_s1 = smov 45  }
  0x1a   :  { %s6572_s4 = sld [smem:[%s7863_s0 + %s6428_s28]]   ;;  %s6432_s28 = smov 25  }
  0x1b   :  { %7882 = sst [smem:[#allocation13_spill]] %s6557_s24 }
  0x1c   :  { %s6577_s24 = sld [smem:[%s7863_s0 + %s6429_s7]]   ;;  %s6433_s7 = smov 26  }
  0x1d   :  { %7883 = sst [smem:[#allocation14_spill]] %s6562_s20 }
  0x1e   :  { %7884 = sst [smem:[#allocation15_spill]] %s6567_s6 }
  0x1f   :  { %s6582_s20 = sld [smem:[%s7863_s0 + %s6430_s15]]   ;;  %s6434_s15 = smov 27  }
  0x20   :  { %7885 = sst [smem:[#allocation16_spill]] %s6572_s4 }
  0x21   :  { %s6587_s6 = sld [smem:[%s7863_s0 + %s6431_s22]]   ;;  %s6435_s22 = smov 28  }
  0x22   :  { %7886 = sst [smem:[#allocation17_spill]] %s6577_s24 }
  0x23   :  { %s6592_s4 = sld [smem:[%s7863_s0 + %s6432_s28]]   ;;  %s6436_s28 = smov 29  }
  0x24   :  { %s6597_s24 = sld [smem:[%s7863_s0 + %s6433_s7]]   ;;  %s6437_s7 = smov 30  }
  0x25   :  { %7887 = sst [smem:[#allocation18_spill]] %s6582_s20 }
  0x26   :  { %s6602_s20 = sld [smem:[%s7863_s0 + %s6434_s15]]   ;;  %s6438_s15 = smov 31  }
  0x27   :  { %7888 = sst [smem:[#allocation19_spill]] %s6587_s6 }
  0x28   :  { %s6607_s6 = sld [smem:[%s7863_s0 + %s6435_s22]]   ;;  %s6439_s22 = smov 32  }
  0x29   :  { %7889 = sst [smem:[#allocation20_spill]] %s6592_s4 }
  0x2a   :  { %7890 = sst [smem:[#allocation21_spill]] %s6597_s24 }
  0x2b   :  { %s6612_s4 = sld [smem:[%s7863_s0 + %s6436_s28]]   ;;  %s6440_s28 = smov 33  }
  0x2c   :  { %7891 = sst [smem:[#allocation22_spill]] %s6602_s20 }
  0x2d   :  { %s6617_s24 = sld [smem:[%s7863_s0 + %s6437_s7]]   ;;  %s6441_s7 = smov 34  }
  0x2e   :  { %7892 = sst [smem:[#allocation23_spill]] %s6607_s6 }
  0x2f   :  { %s6622_s20 = sld [smem:[%s7863_s0 + %s6438_s15]]   ;;  %s6442_s15 = smov 35  }
  0x30   :  { %s6627_s6 = sld [smem:[%s7863_s0 + %s6439_s22]]   ;;  %s6443_s22 = smov 36  }
  0x31   :  { %7893 = sst [smem:[#allocation24_spill]] %s6612_s4 }
  0x32   :  { %s6632_s4 = sld [smem:[%s7863_s0 + %s6440_s28]]   ;;  %s6444_s28 = smov 37  }
  0x33   :  { %7894 = sst [smem:[#allocation25_spill]] %s6617_s24 }
  0x34   :  { %s6637_s24 = sld [smem:[%s7863_s0 + %s6441_s7]]   ;;  %s6445_s7 = smov 38  }
  0x35   :  { %7895 = sst [smem:[#allocation26_spill]] %s6622_s20 }
  0x36   :  { %7896 = sst [smem:[#allocation27_spill]] %s6627_s6 }
  0x37   :  { %s6642_s20 = sld [smem:[%s7863_s0 + %s6442_s15]]   ;;  %s6446_s15 = smov 39  }
  0x38   :  { %7897 = sst [smem:[#allocation28_spill]] %s6632_s4 }
  0x39   :  { %s6647_s6 = sld [smem:[%s7863_s0 + %s6443_s22]]   ;;  %s6447_s22 = smov 40  }
  0x3a   :  { %7898 = sst [smem:[#allocation29_spill]] %s6637_s24 }
  0x3b   :  { %s6652_s4 = sld [smem:[%s7863_s0 + %s6444_s28]]   ;;  %s6448_s28 = smov 41  }
  0x3c   :  { %s6657_s24 = sld [smem:[%s7863_s0 + %s6445_s7]]   ;;  %s6449_s7 = smov 42  }
  0x3d   :  { %7899 = sst [smem:[#allocation30_spill]] %s6642_s20 }
  0x3e   :  { %s6662_s20 = sld [smem:[%s7863_s0 + %s6446_s15]]  }
  0x3f   :  { %7900 = sst [smem:[#allocation31_spill]] %s6647_s6 }
  0x40   :  { %s6667_s6 = sld [smem:[%s7863_s0 + %s6447_s22]]  }
  0x41   :  { %7901 = sst [smem:[#allocation32_spill]] %s6652_s4 }
  0x42   :  { %7902 = sst [smem:[#allocation33_spill]] %s6657_s24 }
  0x43   :  { %s6672_s4 = sld [smem:[%s7863_s0 + %s6448_s28]]  }
  0x44   :  { %7903 = sst [smem:[#allocation34_spill]] %s6662_s20 }
  0x45   :  { %s4637_s24 = sld [smem:[%s7863_s0 + %s6449_s7]]  }
  0x46   :  { %7904 = sst [smem:[#allocation35_spill]] %s6667_s6 }
  0x47   :  { %s6680_s20 = sld [smem:[%s7863_s0 + %s6450_s16]]  }
  0x48   :  { %s6685_s6 = sld [smem:[%s7863_s0 + %s6451_s23]]  }
  0x49   :  { %7905 = sst [smem:[#allocation36_spill]] %s6672_s4 }
  0x4a   :  { %s6690_s4 = sld [smem:[%s7863_s0 + %s6452_s1]]  }
  0x4b   :  { %v97_v0 = vstv %s4637_s24 }
  0x4c   :  { %98 = vst [vmem:[#allocation2] sm:$0x1] %v97_v0 }
  0x4d   :  { %99 = vsyncpa [#allocation4], 0  ;;  %v189_v1 = vld [vmem:[%s6487_s21 + $0x8] sm:$0xff]  ;;  %v191_v3 = vld [vmem:[%s6487_s21 + $0x18] sm:$0xff]  ;;  %v6453_v8 = vmov 0.0   ;;  %vm262_vm0 = vcmask 261120  }
  0x4e   :  { %v197_v2 = vld [vmem:[%s6487_s21 + $0x48] sm:$0xff]  ;;  %v199_v5 = vld [vmem:[%s6487_s21 + $0x58] sm:$0xff]  ;;  %v188_v6 = vld [vmem:[%s6487_s21] sm:$0xff]  ;;  %330 = vmatprep.mubr.f32.mxu0 %v6453_v8  ;;  %401 = vmatprep.mubr.f32.mxu1 %v6453_v8 }
  0x4f   :  { %v5440_v4 = vpack.c.bf16 %v197_v2, %v189_v1  ;;  %v196_v7 = vld [vmem:[%s6487_s21 + $0x40] sm:$0xff]  ;;  %v5448_v9 = vpack.c.bf16 %v199_v5, %v191_v3  ;;  %v190_v11 = vld [vmem:[%s6487_s21 + $0x10] sm:$0xff]  ;;  %v205_v13 = vld [vmem:[%s6487_s21 + $0x88] sm:$0xff] }
  0x50   :  { %v5442_v10 = vpack.c.bf16 %v196_v7, %v188_v6  ;;  %v198_v12 = vld [vmem:[%s6487_s21 + $0x50] sm:$0xff]  ;;  %v213_v15 = vld [vmem:[%s6487_s21 + $0xc8] sm:$0xff]  ;;  %v207_v16 = vld [vmem:[%s6487_s21 + $0x98] sm:$0xff] }
  0x51   :  { %5441 = vmatprep.subr.bf16.mxu0 %v5440_v4  ;;  %v5450_v14 = vpack.c.bf16 %v198_v12, %v190_v11  ;;  %v215_v17 = vld [vmem:[%s6487_s21 + $0xd8] sm:$0xff]  ;;  %5449 = vmatprep.subr.bf16.mxu1 %v5448_v9  ;;  %v5444_v18 = vpack.c.bf16 %v213_v15, %v205_v13  ;;  %v204_v20 = vld [vmem:[%s6487_s21 + $0x80] sm:$0xff]  ;;  %v206_v22 = vld [vmem:[%s6487_s21 + $0x90] sm:$0xff] }
  0x52   :  { %5443 = vmatpush1.bf16.msra.mxu0 %v5442_v10  ;;  %v5452_v19 = vpack.c.bf16 %v215_v17, %v207_v16  ;;  %v212_v21 = vld [vmem:[%s6487_s21 + $0xc0] sm:$0xff]  ;;  %v214_v24 = vld [vmem:[%s6487_s21 + $0xd0] sm:$0xff]  ;;  %v195_v25 = vld [vmem:[%s6487_s21 + $0x38] sm:$0xff] }
  0x53   :  { %5451 = vmatpush1.bf16.msra.mxu1 %v5450_v14  ;;  %v5446_v23 = vpack.c.bf16 %v212_v21, %v204_v20  ;;  %5445 = vmatprep.subr.bf16.mxu0 %v5444_v18  ;;  %v5454_v26 = vpack.c.bf16 %v214_v24, %v206_v22  ;;  %v203_v27 = vld [vmem:[%s6487_s21 + $0x78] sm:$0xff]  ;;  %v194_v28 = vld [vmem:[%s6487_s21 + $0x30] sm:$0xff]  ;;  %v6715_v30 = vld [vmem:[%s6467_s5] sm:$0x3] }
  0x54   :  { %5453 = vmatprep.subr.bf16.mxu1 %v5452_v19  ;;  %v202_v29 = vld [vmem:[%s6487_s21 + $0x70] sm:$0xff]  ;;  %v5464_v31 = vpack.c.bf16 %v203_v27, %v195_v25  ;;  %v211_v32 = vld [vmem:[%s6487_s21 + $0xb8] sm:$0xff]  ;;  %v193_v36 = vld [vmem:[%s6487_s21 + $0x28] sm:$0xff] }
  0x55   :  { %v219_v33 = vld [vmem:[%s6487_s21 + $0xf8] sm:$0xff]  ;;  %v210_v34 = vld [vmem:[%s6487_s21 + $0xb0] sm:$0xff]  ;;  %v201_v37 = vld [vmem:[%s6487_s21 + $0x68] sm:$0xff]  ;;  %v5466_v38 = vpack.c.bf16 %v202_v29, %v194_v28 }
  0x56   :  { %5447 = vmatpush1.bf16.msra.mxu0 %v5446_v23  ;;  %v218_v35 = vld [vmem:[%s6487_s21 + $0xf0] sm:$0xff]  ;;  %v5456_v39 = vpack.c.bf16 %v201_v37, %v193_v36  ;;  %v192_v40 = vld [vmem:[%s6487_s21 + $0x20] sm:$0xff]  ;;  %v209_v42 = vld [vmem:[%s6487_s21 + $0xa8] sm:$0xff]  ;;  %v5468_v43 = vpack.c.bf16 %v219_v33, %v211_v32 }
  0x57   :  { %5455 = vmatpush1.bf16.msra.mxu1 %v5454_v26  ;;  %v200_v41 = vld [vmem:[%s6487_s21 + $0x60] sm:$0xff]  ;;  %v217_v45 = vld [vmem:[%s6487_s21 + $0xe8] sm:$0xff]  ;;  %v5470_v52 = vpack.c.bf16 %v218_v35, %v210_v34  ;;  %v592_v56 = vld [vmem:[%s6497_s29 + $0x90] sm:$0xff] }
  0x58   :  { %5465 = vmatprep.subr.bf16.mxu1 %v5464_v31  ;;  %v5458_v44 = vpack.c.bf16 %v200_v41, %v192_v40  ;;  %v208_v46 = vld [vmem:[%s6487_s21 + $0xa0] sm:$0xff]  ;;  %5457 = vmatprep.subr.bf16.mxu0 %v5456_v39  ;;  %v5460_v48 = vpack.c.bf16 %v217_v45, %v209_v42  ;;  %v591_v50 = vld [vmem:[%s6497_s29 + $0x88] sm:$0xff]  ;;  %v593_v57 = vld [vmem:[%s6497_s29 + $0x98] sm:$0xff] }
  0x59   :  { %v216_v47 = vld [vmem:[%s6487_s21 + $0xe0] sm:$0xff]  ;;  %4641 = vmatmul.mubr.msk.f32.vlgmr.msra.gmra.mrb[0].mxu0 %vm262_vm0, %v6715_v30  ;;  %v575_v55 = vld [vmem:[%s6497_s29 + $0x8] sm:$0xff]  ;;  %v576_v63 = vld [vmem:[%s6497_s29 + $0x10] sm:$0xff]  ;;  %v5476_v2 = vpack.c.bf16 %v593_v57, %v592_v56 }
  0x5a   :  { %v590_v49 = vld [vmem:[%s6497_s29 + $0x80] sm:$0xff]  ;;  %4642 = vmatmul.mubr.msk.f32.vlgmr.msra.gmra.mrb[0].mxu1 %vm262_vm0, %v6715_v30  ;;  %5459 = vmatpush1.bf16.msra.mxu0 %v5458_v44  ;;  %v5462_v51 = vpack.c.bf16 %v216_v47, %v208_v46  ;;  %v687_v59 = vld [vmem:[%s6497_s29 + $0x388] sm:$0xff]  ;;  %v577_v0 = vld [vmem:[%s6497_s29 + $0x18] sm:$0xff] }
  0x5b   :  { %5467 = vmatpush1.bf16.msra.mxu1 %v5466_v38  ;;  %543 = vmatprep.mubr.f32.mxu1 %v6453_v8  ;;  %v5472_v53 = vpack.c.bf16 %v591_v50, %v590_v49  ;;  %v574_v54 = vld [vmem:[%s6497_s29] sm:$0xff]  ;;  %v671_v1 = vld [vmem:[%s6497_s29 + $0x308] sm:$0xff]  ;;  %v688_v5 = vld [vmem:[%s6497_s29 + $0x390] sm:$0xff]  ;;  %v5478_v13 = vpack.c.bf16 %v577_v0, %v576_v63 }
  0x5c   :  { %5469 = vmatprep.subr.bf16.mxu1 %v5468_v43  ;;  %5461 = vmatprep.subr.bf16.mxu0 %v5460_v48  ;;  %v686_v58 = vld [vmem:[%s6497_s29 + $0x380] sm:$0xff]  ;;  %v5474_v62 = vpack.c.bf16 %v575_v55, %v574_v54  ;;  %v689_v6 = vld [vmem:[%s6497_s29 + $0x398] sm:$0xff]  ;;  %v595_v7 = vld [vmem:[%s6497_s29 + $0xa8] sm:$0xff] }
  0x5d   :  { %472 = vmatprep.mubr.f32.mxu0 %v6453_v8  ;;  %v5568_v60 = vpack.c.bf16 %v687_v59, %v686_v58  ;;  %v670_v61 = vld [vmem:[%s6497_s29 + $0x300] sm:$0xff]  ;;  %v5572_v9 = vpack.c.bf16 %v689_v6, %v688_v5  ;;  %v672_v10 = vld [vmem:[%s6497_s29 + $0x310] sm:$0xff]  ;;  %v673_v11 = vld [vmem:[%s6497_s29 + $0x318] sm:$0xff] }
  0x5e   :  { %5463 = vmatpush1.bf16.msra.mxu0 %v5462_v51  ;;  %v594_v3 = vld [vmem:[%s6497_s29 + $0xa0] sm:$0xff]  ;;  %v5570_v4 = vpack.c.bf16 %v671_v1, %v670_v61  ;;  %v691_v14 = vld [vmem:[%s6497_s29 + $0x3a8] sm:$0xff]  ;;  %v596_v18 = vld [vmem:[%s6497_s29 + $0xb0] sm:$0xff]  ;;  %v5574_v19 = vpack.c.bf16 %v673_v11, %v672_v10 }
  0x5f   :  { %5471 = vmatpush1.bf16.msra.mxu1 %v5470_v52  ;;  %5473 = vmatprep.subr.bf16.mxu0 %v5472_v53  ;;  %v690_v12 = vld [vmem:[%s6497_s29 + $0x3a0] sm:$0xff]  ;;  %v5480_v15 = vpack.c.bf16 %v595_v7, %v594_v3  ;;  %v579_v17 = vld [vmem:[%s6497_s29 + $0x28] sm:$0xff]  ;;  %v597_v20 = vld [vmem:[%s6497_s29 + $0xb8] sm:$0xff] }
  0x60   :  { %5569 = vmatprep.subr.bf16.mxu1 %v5568_v60  ;;  %v578_v16 = vld [vmem:[%s6497_s29 + $0x20] sm:$0xff]  ;;  %v5576_v21 = vpack.c.bf16 %v691_v14, %v690_v12  ;;  %v675_v23 = vld [vmem:[%s6497_s29 + $0x328] sm:$0xff]  ;;  %v692_v24 = vld [vmem:[%s6497_s29 + $0x3b0] sm:$0xff]  ;;  %v5484_v28 = vpack.c.bf16 %v597_v20, %v596_v18 }
  0x61   :  { %4643 = vmatmul.mubr.msk.f32.vlgmr.msra.gmra.mrb[2].mxu0 %vm262_vm0, %v6715_v30  ;;  %v674_v22 = vld [vmem:[%s6497_s29 + $0x320] sm:$0xff]  ;;  %v693_v25 = vld [vmem:[%s6497_s29 + $0x3b8] sm:$0xff]  ;;  %v5482_v26 = vpack.c.bf16 %v579_v17, %v578_v16  ;;  %v580_v27 = vld [vmem:[%s6497_s29 + $0x30] sm:$0xff] }
  0x62   :  { %4644 = vmatmul.mubr.msk.f32.vlgmr.msra.gmra.mrb[2].mxu1 %vm262_vm0, %v6715_v30  ;;  %5475 = vmatpush3.bf16.msra.mxu0 %v5474_v62  ;;  %v581_v29 = vld [vmem:[%s6497_s29 + $0x38] sm:$0xff]  ;;  %v598_v30 = vld [vmem:[%s6497_s29 + $0xc0] sm:$0xff]  ;;  %v599_v31 = vld [vmem:[%s6497_s29 + $0xc8] sm:$0xff]  ;;  %v5578_v32 = vpack.c.bf16 %v675_v23, %v674_v22  ;;  %v5580_v33 = vpack.c.bf16 %v693_v25, %v692_v24 }
  0x63   :  { %5477 = vmatprep.subr.bf16.mxu0 %v5476_v2  ;;  %5571 = vmatpush3.bf16.msra.mxu1 %v5570_v4  ;;  %v676_v34 = vld [vmem:[%s6497_s29 + $0x330] sm:$0xff]  ;;  %v677_v35 = vld [vmem:[%s6497_s29 + $0x338] sm:$0xff] }
  0x64   :  { %5573 = vmatprep.subr.bf16.mxu1 %v5572_v9 }
  0x66   :  { %5479 = vmatpush3.bf16.msra.mxu0 %v5478_v13 }
  0x67   :  { %5481 = vmatprep.subr.bf16.mxu0 %v5480_v15  ;;  %5575 = vmatpush3.bf16.msra.mxu1 %v5574_v19 }
  0x68   :  { %5577 = vmatprep.subr.bf16.mxu1 %v5576_v21 }
  0x69   :  { %100 = vsyncpa [#allocation6], 0  ;;  %v694_v36 = vld [vmem:[%s6497_s29 + $0x3c0] sm:$0xff]  ;;  %v695_v37 = vld [vmem:[%s6497_s29 + $0x3c8] sm:$0xff]  ;;  %v5486_v38 = vpack.c.bf16 %v581_v29, %v580_v27  ;;  %v5488_v39 = vpack.c.bf16 %v599_v31, %v598_v30  ;;  %v5582_v42 = vpack.c.bf16 %v677_v35, %v676_v34  ;;  %v222_v27 = vlaneseq  ;;  %s7906_s0 = sld [smem:[#allocation13_spill]]  ;;  %s7907_s5 = sld [smem:[#allocation10_spill]] }
  0x6a   :  { %5483 = vmatpush3.bf16.msra.mxu0 %v5482_v26  ;;  %v582_v40 = vld [vmem:[%s6497_s29 + $0x40] sm:$0xff]  ;;  %v583_v41 = vld [vmem:[%s6497_s29 + $0x48] sm:$0xff]  ;;  %v600_v43 = vld [vmem:[%s6497_s29 + $0xd0] sm:$0xff]  ;;  %v5584_v45 = vpack.c.bf16 %v695_v37, %v694_v36  ;;  %vm1035_vm6 = vcmask 195584   ;;  %vm6455_vm10 = vmmov 0   ;;  %vm1588_vm13 = vcmask 1043456  }
  0x6b   :  { %5485 = vmatprep.subr.bf16.mxu0 %v5484_v28  ;;  %5579 = vmatpush3.bf16.msra.mxu1 %v5578_v32  ;;  %v601_v44 = vld [vmem:[%s6497_s29 + $0xd8] sm:$0xff]  ;;  %v5490_v46 = vpack.c.bf16 %v583_v41, %v582_v40  ;;  %v584_v48 = vld [vmem:[%s6497_s29 + $0x50] sm:$0xff]  ;;  %v602_v50 = vld [vmem:[%s6497_s29 + $0xe0] sm:$0xff]  ;;  %v6807_v28 = vshrl.u32 %v222_v27, 7  ;;  %vm1584_vm14 = vcmask 162816   ;;  %s7911_s21 = sld [smem:[#allocation16_spill]] }
  0x6c   :  { %5581 = vmatprep.subr.bf16.mxu1 %v5580_v33  ;;  %v5492_v47 = vpack.c.bf16 %v601_v44, %v600_v43  ;;  %v585_v49 = vld [vmem:[%s6497_s29 + $0x58] sm:$0xff]  ;;  %v603_v51 = vld [vmem:[%s6497_s29 + $0xe8] sm:$0xff]  ;;  %v586_v54 = vld [vmem:[%s6497_s29 + $0x60] sm:$0xff]  ;;  %s7918_s24 = sld [smem:[#allocation21_spill]]  ;;  %s7922_s7 = sld [smem:[#allocation19_spill]] }
  0x6d   :  { %v5494_v52 = vpack.c.bf16 %v585_v49, %v584_v48  ;;  %v5496_v53 = vpack.c.bf16 %v603_v51, %v602_v50  ;;  %v587_v55 = vld [vmem:[%s6497_s29 + $0x68] sm:$0xff]  ;;  %v678_v56 = vld [vmem:[%s6497_s29 + $0x340] sm:$0xff]  ;;  %v604_v60 = vld [vmem:[%s6497_s29 + $0xf0] sm:$0xff]  ;;  %v6810_v29 = vsub.s32 0, %v6807_v28  ;;  %v6813_v30 = vsub.s32 1, %v6807_v28  ;;  %s7923_s10 = sld [smem:[#allocation28_spill]] }
  0x6e   :  { %5487 = vmatpush3.bf16.msra.mxu0 %v5486_v38  ;;  %v5498_v57 = vpack.c.bf16 %v587_v55, %v586_v54  ;;  %v679_v58 = vld [vmem:[%s6497_s29 + $0x348] sm:$0xff]  ;;  %v605_v61 = vld [vmem:[%s6497_s29 + $0xf8] sm:$0xff]  ;;  %v696_v62 = vld [vmem:[%s6497_s29 + $0x3d0] sm:$0xff]  ;;  %v6819_v32 = vsub.s32 3, %v6807_v28  ;;  %s7924_s11 = sld [smem:[#allocation30_spill]]  ;;  %s7925_s16 = sld [smem:[#allocation25_spill]] }
  0x6f   :  { %5489 = vmatprep.subr.bf16.mxu0 %v5488_v39  ;;  %5583 = vmatpush3.bf16.msra.mxu1 %v5582_v42  ;;  %v5586_v59 = vpack.c.bf16 %v679_v58, %v678_v56  ;;  %v5500_v63 = vpack.c.bf16 %v605_v61, %v604_v60  ;;  %v697_v0 = vld [vmem:[%s6497_s29 + $0x3d8] sm:$0xff]  ;;  %v588_v1 = vld [vmem:[%s6497_s29 + $0x70] sm:$0xff]  ;;  %v622_v9 = vld [vmem:[%s6497_s29 + $0x180] sm:$0xff]  ;;  %v248_v42 = vsub.s32 6, %v6807_v28  ;;  %s7926_s15 = sld [smem:[#allocation27_spill]]  ;;  %s7927_s18 = sld [smem:[#allocation33_spill]] }
  0x70   :  { %5585 = vmatprep.subr.bf16.mxu1 %v5584_v45  ;;  %v589_v2 = vld [vmem:[%s6497_s29 + $0x78] sm:$0xff]  ;;  %v5588_v3 = vpack.c.bf16 %v697_v0, %v696_v62  ;;  %v680_v5 = vld [vmem:[%s6497_s29 + $0x350] sm:$0xff]  ;;  %v623_v10 = vld [vmem:[%s6497_s29 + $0x188] sm:$0xff]  ;;  %s7928_s23 = sld [smem:[#allocation29_spill]]  ;;  %s7929_s22 = sld [smem:[#allocation32_spill]] }
  0x71   :  { %v5502_v4 = vpack.c.bf16 %v589_v2, %v588_v1  ;;  %v681_v6 = vld [vmem:[%s6497_s29 + $0x358] sm:$0xff]  ;;  %v698_v11 = vld [vmem:[%s6497_s29 + $0x3e0] sm:$0xff]  ;;  %v5504_v12 = vpack.c.bf16 %v623_v10, %v622_v9  ;;  %v699_v13 = vld [vmem:[%s6497_s29 + $0x3e8] sm:$0xff]  ;;  %s7930_s26 = sld [smem:[#allocation31_spill]]  ;;  %s7931_s1 = sld [smem:[#allocation34_spill]] }
  0x72   :  { %5491 = vmatpush3.bf16.msra.mxu0 %v5490_v46  ;;  %v5590_v7 = vpack.c.bf16 %v681_v6, %v680_v5  ;;  %v5592_v14 = vpack.c.bf16 %v699_v13, %v698_v11  ;;  %v682_v15 = vld [vmem:[%s6497_s29 + $0x360] sm:$0xff]  ;;  %v683_v16 = vld [vmem:[%s6497_s29 + $0x368] sm:$0xff]  ;;  %v700_v18 = vld [vmem:[%s6497_s29 + $0x3f0] sm:$0xff]  ;;  %s7932_s28 = sld [smem:[#allocation35_spill]]  ;;  %s7933_s2 = sld [smem:[#allocation36_spill]] }
  0x73   :  { %5493 = vmatprep.subr.bf16.mxu0 %v5492_v47  ;;  %5587 = vmatpush3.bf16.msra.mxu1 %v5586_v59  ;;  %v5594_v17 = vpack.c.bf16 %v683_v16, %v682_v15  ;;  %v701_v19 = vld [vmem:[%s6497_s29 + $0x3f8] sm:$0xff]  ;;  %v684_v21 = vld [vmem:[%s6497_s29 + $0x370] sm:$0xff]  ;;  %v1001_v25 = vld [vmem:[%s6507_s8 + $0x40] sm:$0xff]  ;;  %v252_v47 = vsub.s32 7, %v6807_v28 }
  0x74   :  { %5589 = vmatprep.subr.bf16.mxu1 %v5588_v3  ;;  %v5596_v20 = vpack.c.bf16 %v701_v19, %v700_v18  ;;  %v685_v22 = vld [vmem:[%s6497_s29 + $0x378] sm:$0xff]  ;;  %v6816_v31 = vld [vmem:[%s6492_s25] sm:$0xff]  ;;  %v607_v44 = vld [vmem:[%s6497_s29 + $0x108] sm:$0xff]  ;;  %s7912_s25 = sld [smem:[#allocation15_spill]] }
  0x75   :  { %v5598_v23 = vpack.c.bf16 %v685_v22, %v684_v21  ;;  %v996_v24 = vld [vmem:[%s6507_s8 + $0x18] sm:$0xff]  ;;  %v225_v33 = vrot.slane %v6816_v31, %v6810_v29  ;;  %v229_v34 = vrot.slane %v6816_v31, %v6813_v30  ;;  %v237_v35 = vrot.slane %v6816_v31, %v6819_v32  ;;  %v606_v43 = vld [vmem:[%s6497_s29 + $0x100] sm:$0xff]  ;;  %v624_v48 = vld [vmem:[%s6497_s29 + $0x190] sm:$0xff] }
  0x76   :  { %5495 = vmatpush3.bf16.msra.mxu0 %v5494_v52  ;;  %v5604_v26 = vpack.c.bf16 %v1001_v25, %v996_v24  ;;  %v625_v49 = vld [vmem:[%s6497_s29 + $0x198] sm:$0xff]  ;;  %v249_v55 = vrot.slane %v6816_v31, %v248_v42  ;;  %v253_v59 = vrot.slane %v6816_v31, %v252_v47  ;;  %v626_v60 = vld [vmem:[%s6497_s29 + $0x1a0] sm:$0xff]  ;;  %v627_v61 = vld [vmem:[%s6497_s29 + $0x1a8] sm:$0xff] }
  0x77   :  { %5497 = vmatprep.subr.bf16.mxu0 %v5496_v53  ;;  %5591 = vmatpush3.bf16.msra.mxu1 %v5590_v7  ;;  %v5506_v53 = vpack.c.bf16 %v607_v44, %v606_v43  ;;  %v5508_v56 = vpack.c.bf16 %v625_v49, %v624_v48  ;;  %v609_v58 = vld [vmem:[%s6497_s29 + $0x118] sm:$0xff]  ;;  %v5512_v5 = vpack.c.bf16 %v627_v61, %v626_v60  ;;  %v610_v6 = vld [vmem:[%s6497_s29 + $0x120] sm:$0xff]  ;;  %v611_v7 = vld [vmem:[%s6497_s29 + $0x128] sm:$0xff] }
  0x78   :  { %5593 = vmatprep.subr.bf16.mxu1 %v5592_v14  ;;  %v995_v9 = vld [vmem:[%s6507_s8 + $0x10] sm:$0xff]  ;;  %v1000_v11 = vld [vmem:[%s6507_s8 + $0x38] sm:$0xff]  ;;  %v5514_v16 = vpack.c.bf16 %v611_v7, %v610_v6  ;;  %v630_v22 = vld [vmem:[%s6497_s29 + $0x1c0] sm:$0xff] }
  0x79   :  { %v629_v13 = vld [vmem:[%s6497_s29 + $0x1b8] sm:$0xff]  ;;  %v612_v19 = vld [vmem:[%s6497_s29 + $0x130] sm:$0xff]  ;;  %v1006_v25 = vld [vmem:[%s6507_s8 + $0x68] sm:$0xff] }
  0x7a   :  { %5499 = vmatpush3.bf16.msra.mxu0 %v5498_v57  ;;  %v608_v57 = vld [vmem:[%s6497_s29 + $0x110] sm:$0xff]  ;;  %v617_v44 = vld [vmem:[%s6497_s29 + $0x158] sm:$0xff]  ;;  %v634_v48 = vld [vmem:[%s6497_s29 + $0x1e0] sm:$0xff] }
  0x7b   :  { %5501 = vmatprep.subr.bf16.mxu0 %v5500_v63  ;;  %5595 = vmatpush3.bf16.msra.mxu1 %v5594_v17  ;;  %v5510_v1 = vpack.c.bf16 %v609_v58, %v608_v57  ;;  %v5606_v17 = vpack.c.bf16 %v1000_v11, %v995_v9  ;;  %v616_v43 = vld [vmem:[%s6497_s29 + $0x150] sm:$0xff]  ;;  %v635_v49 = vld [vmem:[%s6497_s29 + $0x1e8] sm:$0xff]  ;;  %v637_v57 = vld [vmem:[%s6497_s29 + $0x1f8] sm:$0xff] }
  0x7c   :  { %5597 = vmatprep.subr.bf16.mxu1 %v5596_v20  ;;  %v613_v20 = vld [vmem:[%s6497_s29 + $0x138] sm:$0xff]  ;;  %v620_v60 = vld [vmem:[%s6497_s29 + $0x170] sm:$0xff]  ;;  %v638_v6 = vld [vmem:[%s6497_s29 + $0x200] sm:$0xff] }
  0x7d   :  { %v621_v61 = vld [vmem:[%s6497_s29 + $0x178] sm:$0xff]  ;;  %v639_v7 = vld [vmem:[%s6497_s29 + $0x208] sm:$0xff]  ;;  %v656_v11 = vld [vmem:[%s6497_s29 + $0x290] sm:$0xff] }
  0x7e   :  { %5503 = vmatpush3.bf16.msra.mxu0 %v5502_v4 }
  0x7f   :  { %5505 = vmatprep.subr.bf16.mxu0 %v5504_v12  ;;  %5599 = vmatpush3.bf16.msra.mxu1 %v5598_v23  ;;  %v628_v12 = vld [vmem:[%s6497_s29 + $0x1b0] sm:$0xff]  ;;  %v631_v23 = vld [vmem:[%s6497_s29 + $0x1c8] sm:$0xff] }
  0x80   :  { %5605 = vmatprep.subr.bf16.mxu1 %v5604_v26  ;;  %v5516_v18 = vpack.c.bf16 %v629_v13, %v628_v12  ;;  %v5518_v26 = vpack.c.bf16 %v613_v20, %v612_v19  ;;  %v5520_v27 = vpack.c.bf16 %v631_v23, %v630_v22  ;;  %v657_v12 = vld [vmem:[%s6497_s29 + $0x298] sm:$0xff]  ;;  %v640_v13 = vld [vmem:[%s6497_s29 + $0x210] sm:$0xff]  ;;  %v643_v22 = vld [vmem:[%s6497_s29 + $0x228] sm:$0xff] }
  0x81   :  { %v660_v23 = vld [vmem:[%s6497_s29 + $0x2b0] sm:$0xff] }
 0x12c   :  { %v332_v36 = vpop.f32.mrb[0].mxu0 }
 0x12d   :  { %v333_v37 = vadd.f32 %v332_v36, %v225_v33  ;;  %v6827_v38 = vpop.f32.mrb[0].mxu1  ;;  %v334_v39 = vpop.f32.mrb[1].mxu0  ;;  %v614_v33 = vld [vmem:[%s6497_s29 + $0x140] sm:$0xff]  ;;  %v632_v36 = vld [vmem:[%s6497_s29 + $0x1d0] sm:$0xff] }
 0x12e   :  { %v335_v40 = vadd.f32 %v334_v39, %v229_v34  ;;  %v405_v41 = vpop.f32.mrb[1].mxu1  ;;  %v615_v34 = vld [vmem:[%s6497_s29 + $0x148] sm:$0xff]  ;;  %v6867_v39 = vld [vmem:[%s6472_s9] sm:$0x3]  ;;  %s7908_s9 = sld [smem:[#allocation9_spill]] }
 0x12f   :  { %vm550_vm1 = vcmp.ge.f32.partialorder %v333_v37, 0.0  ;;  %v558_v45 = vmul.f32 0.01, %v333_v37  ;;  %v406_v46 = vadd.f32 %v405_v41, %v237_v35  ;;  %v1005_v35 = vld [vmem:[%s6507_s8 + $0x60] sm:$0xff] }
 0x130   :  { %v559_v50 = vmul.f32 0.01, %v335_v40  ;;  %vm551_vm2 = vcmp.ge.f32.partialorder %v335_v40, 0.0 }
 0x131   :  { %v561_v51 = vmul.f32 0.01, %v406_v46  ;;  %v566_v52 = vsel %vm550_vm1, %v333_v37, %v558_v45  ;;  %vm553_vm3 = vcmp.ge.f32.partialorder %v406_v46, 0.0  ;;  %v633_v37 = vld [vmem:[%s6497_s29 + $0x1d8] sm:$0xff]  ;;  %v244_v45 = vsub.s32 5, %v6807_v28 }
 0x132   :  { %v567_v54 = vsel %vm551_vm2, %v335_v40, %v559_v50  ;;  %v5522_v40 = vpack.c.bf16 %v615_v34, %v614_v33  ;;  %v5524_v41 = vpack.c.bf16 %v633_v37, %v632_v36  ;;  %v5526_v50 = vpack.c.bf16 %v617_v44, %v616_v43  ;;  %v645_v33 = vld [vmem:[%s6497_s29 + $0x238] sm:$0xff]  ;;  %v662_v34 = vld [vmem:[%s6497_s29 + $0x2c0] sm:$0xff]  ;;  %v664_v43 = vld [vmem:[%s6497_s29 + $0x2d0] sm:$0xff] }
 0x133   :  { %773 = vmatprep.mubr.f32.mxu0 %v567_v54  ;;  %v569_v62 = vsel %vm553_vm3, %v406_v46, %v561_v51  ;;  %v6873_v46 = vsub.s32 2, %v6807_v28  ;;  %v5528_v51 = vpack.c.bf16 %v635_v49, %v634_v48  ;;  %v245_v54 = vrot.slane %v6816_v31, %v244_v45  ;;  %v665_v44 = vld [vmem:[%s6497_s29 + $0x2d8] sm:$0xff] }
 0x134   :  { %774 = vmatmul.mubr.f32.vlgmr.msra.gmra.mrb[4].mxu0 %v566_v52  ;;  %v6845_v63 = vpop.f32.mrb[2].mxu0  ;;  %v618_v52 = vld [vmem:[%s6497_s29 + $0x160] sm:$0xff]  ;;  %v6915_v49 = vsub.s32 4, %v6807_v28  ;;  %vm1348_vm2 = vcmask 719872   ;;  %vm1919_vm3 = vcmask 326656  }
 0x135   :  { %v545_v0 = vpop.f32.mrb[2].mxu1  ;;  %5507 = vmatpush3.bf16.msra.mxu0 %v5506_v53  ;;  %843 = vmatprep.mubr.f32.mxu0 %v569_v62  ;;  %v6847_v2 = vpop.f32.mrb[3].mxu0  ;;  %v619_v53 = vld [vmem:[%s6497_s29 + $0x168] sm:$0xff] }
 0x136   :  { %v546_v3 = vadd.f32 %v545_v0, %v249_v55  ;;  %v547_v4 = vpop.f32.mrb[3].mxu1  ;;  %5509 = vmatprep.subr.bf16.mxu0 %v5508_v56  ;;  %v233_v55 = vrot.slane %v6816_v31, %v6873_v46  ;;  %v636_v56 = vld [vmem:[%s6497_s29 + $0x1f0] sm:$0xff]  ;;  %v5530_v58 = vpack.c.bf16 %v619_v53, %v618_v52  ;;  %v477_v62 = vadd.f32 %v6847_v2, %v245_v54  ;;  %v649_v52 = vld [vmem:[%s6497_s29 + $0x258] sm:$0xff]  ;;  %v666_v53 = vld [vmem:[%s6497_s29 + $0x2e0] sm:$0xff] }
 0x137   :  { %v548_v10 = vadd.f32 %v547_v4, %v253_v59  ;;  %v5532_v59 = vpack.c.bf16 %v637_v57, %v636_v56  ;;  %v5534_v4 = vpack.c.bf16 %v621_v61, %v620_v60  ;;  %v5540_v2 = vpack.c.bf16 %v657_v12, %v656_v11  ;;  %v667_v54 = vld [vmem:[%s6497_s29 + $0x2e8] sm:$0xff]  ;;  %v668_v60 = vld [vmem:[%s6497_s29 + $0x2f0] sm:$0xff]  ;;  %v669_v61 = vld [vmem:[%s6497_s29 + $0x2f8] sm:$0xff] }
 0x138   :  { %v564_v14 = vmul.f32 0.01, %v546_v3  ;;  %vm556_vm4 = vcmp.ge.f32.partialorder %v546_v3, 0.0  ;;  %v404_v0 = vadd.f32 %v6827_v38, %v233_v55  ;;  %v563_v9 = vmul.f32 0.01, %v477_v62 }
 0x139   :  { %v565_v15 = vmul.f32 0.01, %v548_v10  ;;  %5511 = vmatpush3.bf16.msra.mxu0 %v5510_v1  ;;  %vm557_vm5 = vcmp.ge.f32.partialorder %v548_v10, 0.0  ;;  %v654_v1 = vld [vmem:[%s6497_s29 + $0x280] sm:$0xff]  ;;  %vm555_vm7 = vcmp.ge.f32.partialorder %v477_v62, 0.0  ;;  %v5538_v38 = vpack.c.bf16 %v639_v7, %v638_v6 }
 0x13a   :  { %5513 = vmatprep.subr.bf16.mxu0 %v5512_v5  ;;  %v572_v24 = vsel %vm556_vm4, %v546_v3, %v564_v14  ;;  %v655_v3 = vld [vmem:[%s6497_s29 + $0x288] sm:$0xff]  ;;  %vm552_vm8 = vcmp.ge.f32.partialorder %v404_v0, 0.0  ;;  %v641_v14 = vld [vmem:[%s6497_s29 + $0x218] sm:$0xff]  ;;  %v241_v56 = vrot.slane %v6816_v31, %v6915_v49  ;;  %v5560_v57 = vpack.c.bf16 %v667_v54, %v666_v53  ;;  %v999_v31 = vld [vmem:[%s6507_s8 + $0x30] sm:$0xff] }
 0x13b   :  { %v573_v21 = vsel %vm557_vm5, %v548_v10, %v565_v15  ;;  %v5536_v5 = vpack.c.bf16 %v655_v3, %v654_v1  ;;  %v560_v10 = vmul.f32 0.01, %v404_v0  ;;  %v571_v15 = vsel %vm555_vm7, %v477_v62, %v563_v9  ;;  %v652_v3 = vld [vmem:[%s6497_s29 + $0x270] sm:$0xff]  ;;  %v1323_v53 = vld [vmem:[%s6517_s19 + $0x1c8] sm:$0xff] }
 0x13c   :  { %983 = vmatprep.mubr.f32.mxu1 %v573_v21  ;;  %v5542_v19 = vpack.c.bf16 %v641_v14, %v640_v13  ;;  %v642_v21 = vld [vmem:[%s6497_s29 + $0x220] sm:$0xff]  ;;  %v475_v62 = vadd.f32 %v6845_v63, %v241_v56  ;;  %v5564_v1 = vpack.c.bf16 %v669_v61, %v668_v60  ;;  %v998_v63 = vld [vmem:[%s6507_s8 + $0x28] sm:$0xff]  ;;  %v1003_v14 = vld [vmem:[%s6507_s8 + $0x50] sm:$0xff] }
 0x13d   :  { %5515 = vmatpush3.bf16.msra.mxu0 %v5514_v16  ;;  %984 = vmatmul.mubr.f32.vlgmr.msra.gmra.mrb[4].mxu1 %v572_v24  ;;  %v568_v16 = vsel %vm552_vm8, %v404_v0, %v560_v10  ;;  %v661_v24 = vld [vmem:[%s6497_s29 + $0x2b8] sm:$0xff]  ;;  %v993_v10 = vld [vmem:[%s6507_s8] sm:$0xff]  ;;  %v1002_v13 = vld [vmem:[%s6507_s8 + $0x48] sm:$0xff] }
 0x13e   :  { %5607 = vmatpush1.bf16.msra.mxu1 %v5606_v17  ;;  %5517 = vmatprep.subr.bf16.mxu0 %v5516_v18  ;;  %v658_v17 = vld [vmem:[%s6497_s29 + $0x2a0] sm:$0xff]  ;;  %v659_v18 = vld [vmem:[%s6497_s29 + $0x2a8] sm:$0xff]  ;;  %v562_v6 = vmul.f32 0.01, %v475_v62  ;;  %vm554_vm9 = vcmp.ge.f32.partialorder %v475_v62, 0.0  ;;  %v5602_v12 = vpack.c.bf16 %v998_v63, %v993_v10  ;;  %v1325_v60 = vld [vmem:[%s6517_s19 + $0x1d8] sm:$0xff] }
 0x13f   :  { %1114 = vmatprep.subr.mxu1 %v1006_v25  ;;  %1174 = vmatprep.mubr.f32.mxu1 %v6453_v8  ;;  %v5544_v20 = vpack.c.bf16 %v659_v18, %v658_v17  ;;  %v5546_v25 = vpack.c.bf16 %v643_v22, %v642_v21  ;;  %v1315_v17 = vld [vmem:[%s6517_s19 + $0x188] sm:$0xff]  ;;  %v6454_v18 = vmov 0.0|0.0   ;;  %v1316_v21 = vld [vmem:[%s6517_s19 + $0x190] sm:$0xff]  ;;  %v1317_v22 = vld [vmem:[%s6517_s19 + $0x198] sm:$0xff] }
 0x140   :  { %v570_v11 = vsel %vm554_vm9, %v475_v62, %v562_v6  ;;  %v1306_v56 = vld [vmem:[%s6517_s19 + $0x140] sm:$0xff]  ;;  %v1308_v62 = vld [vmem:[%s6517_s19 + $0x150] sm:$0xff]  ;;  %v1311_v6 = vld [vmem:[%s6517_s19 + $0x168] sm:$0xff] }
 0x141   :  { %5519 = vmatpush3.bf16.msra.mxu0 %v5518_v26  ;;  %v5548_v26 = vpack.c.bf16 %v661_v24, %v660_v23  ;;  %v1007_v23 = vld [vmem:[%s6507_s8 + $0x70] sm:$0xff]  ;;  %v1329_v10 = vld [vmem:[%s6517_s19 + $0x1f8] sm:$0xff] }
 0x142   :  { %1115 = vmatpush1.msra.mxu1 %v1005_v35  ;;  %5521 = vmatprep.subr.bf16.mxu0 %v5520_v27  ;;  %v644_v27 = vld [vmem:[%s6497_s29 + $0x230] sm:$0xff]  ;;  %v663_v35 = vld [vmem:[%s6497_s29 + $0x2c8] sm:$0xff] }
 0x143   :  { %4647 = vmatmul.mubr.msk.f32.vlgmr.msra.gmra.mrb[6].mxu1 %vm1035_vm6, %v6867_v39  ;;  %v5550_v36 = vpack.c.bf16 %v645_v33, %v644_v27  ;;  %v5552_v37 = vpack.c.bf16 %v663_v35, %v662_v34  ;;  %v1300_v27 = vld [vmem:[%s6517_s19 + $0x110] sm:$0xff]  ;;  %v1301_v33 = vld [vmem:[%s6517_s19 + $0x118] sm:$0xff]  ;;  %v1318_v34 = vld [vmem:[%s6517_s19 + $0x1a0] sm:$0xff] }
 0x144   :  { %v1319_v35 = vld [vmem:[%s6517_s19 + $0x1a8] sm:$0xff] }
 0x145   :  { %5523 = vmatpush3.bf16.msra.mxu0 %v5522_v40  ;;  %v646_v40 = vld [vmem:[%s6497_s29 + $0x240] sm:$0xff] }
 0x146   :  { %5525 = vmatprep.subr.bf16.mxu0 %v5524_v41  ;;  %v647_v41 = vld [vmem:[%s6497_s29 + $0x248] sm:$0xff] }
 0x147   :  { %v5554_v48 = vpack.c.bf16 %v647_v41, %v646_v40  ;;  %v1302_v40 = vld [vmem:[%s6517_s19 + $0x120] sm:$0xff]  ;;  %v1303_v41 = vld [vmem:[%s6517_s19 + $0x128] sm:$0xff] }
 0x149   :  { %5527 = vmatpush3.bf16.msra.mxu0 %v5526_v50  ;;  %v5556_v50 = vpack.c.bf16 %v665_v44, %v664_v43  ;;  %v1320_v43 = vld [vmem:[%s6517_s19 + $0x1b0] sm:$0xff]  ;;  %v1321_v44 = vld [vmem:[%s6517_s19 + $0x1b8] sm:$0xff] }
 0x14a   :  { %5529 = vmatprep.subr.bf16.mxu0 %v5528_v51  ;;  %v648_v51 = vld [vmem:[%s6497_s29 + $0x250] sm:$0xff] }
 0x14b   :  { %v5558_v55 = vpack.c.bf16 %v649_v52, %v648_v51  ;;  %v1305_v51 = vld [vmem:[%s6517_s19 + $0x138] sm:$0xff]  ;;  %v1322_v52 = vld [vmem:[%s6517_s19 + $0x1c0] sm:$0xff] }
 0x14d   :  { %5531 = vmatpush3.bf16.msra.mxu0 %v5530_v58  ;;  %v650_v58 = vld [vmem:[%s6497_s29 + $0x260] sm:$0xff] }
 0x14e   :  { %5533 = vmatprep.subr.bf16.mxu0 %v5532_v59  ;;  %v651_v59 = vld [vmem:[%s6497_s29 + $0x268] sm:$0xff] }
 0x14f   :  { %v5562_v0 = vpack.c.bf16 %v651_v59, %v650_v58  ;;  %v1324_v59 = vld [vmem:[%s6517_s19 + $0x1d0] sm:$0xff] }
 0x150   :  { %v5663_v61 = vpack.c.bf16 %v1325_v60, %v1324_v59  ;;  %v1276_v60 = vld [vmem:[%s6517_s19 + $0x50] sm:$0xff] }
 0x151   :  { %5535 = vmatpush3.bf16.msra.mxu0 %v5534_v4  ;;  %v653_v4 = vld [vmem:[%s6497_s29 + $0x278] sm:$0xff]  ;;  %s7913_s29 = sld [smem:[#allocation20_spill]] }
 0x152   :  { %5537 = vmatprep.subr.bf16.mxu0 %v5536_v5  ;;  %v994_v5 = vld [vmem:[%s6507_s8 + $0x8] sm:$0xff]  ;;  %v5566_v7 = vpack.c.bf16 %v653_v4, %v652_v3  ;;  %v1326_v3 = vld [vmem:[%s6517_s19 + $0x1e0] sm:$0xff] }
 0x153   :  { %v5600_v9 = vpack.c.bf16 %v999_v31, %v994_v5  ;;  %v1327_v4 = vld [vmem:[%s6517_s19 + $0x1e8] sm:$0xff]  ;;  %v1310_v31 = vld [vmem:[%s6517_s19 + $0x160] sm:$0xff] }
 0x154   :  { %844 = vmatmul.mubr.f32.vlgmr.msra.gmra.mrb[6].mxu0 %v568_v16  ;;  %v1314_v16 = vld [vmem:[%s6517_s19 + $0x180] sm:$0xff]  ;;  %v5667_v5 = vpack.c.bf16 %v1327_v4, %v1326_v3 }
 0x155   :  { %5539 = vmatpush3.bf16.msra.mxu0 %v5538_v38  ;;  %913 = vmatprep.mubr.f32.mxu0 %v571_v15  ;;  %v1004_v38 = vld [vmem:[%s6507_s8 + $0x58] sm:$0xff]  ;;  %v5643_v24 = vpack.c.bf16 %v1315_v17, %v1314_v16  ;;  %v1283_v16 = vld [vmem:[%s6517_s19 + $0x88] sm:$0xff]  ;;  %v1266_v17 = vld [vmem:[%s6517_s19] sm:$0xff] }
 0x156   :  { %5541 = vmatprep.subr.bf16.mxu0 %v5540_v2  ;;  %v997_v2 = vld [vmem:[%s6507_s8 + $0x20] sm:$0xff]  ;;  %s7915_s8 = sld [smem:[#allocation18_spill]] }
 0x157   :  { %v5609_v15 = vpack.c.bf16 %v1002_v13, %v997_v2  ;;  %v1567_v2 = vld [vmem:[%s6527_s30 + $0x8] sm:$0xff]  ;;  %v1569_v13 = vld [vmem:[%s6527_s30 + $0x18] sm:$0xff]  ;;  %v1278_v4 = vld [vmem:[%s6517_s19 + $0x60] sm:$0xff] }
 0x159   :  { %5543 = vmatpush3.bf16.msra.mxu0 %v5542_v19  ;;  %v1298_v19 = vld [vmem:[%s6517_s19 + $0x100] sm:$0xff] }
 0x15a   :  { %5545 = vmatprep.subr.bf16.mxu0 %v5544_v20  ;;  %v1299_v20 = vld [vmem:[%s6517_s19 + $0x108] sm:$0xff] }
 0x15d   :  { %5547 = vmatpush3.bf16.msra.mxu0 %v5546_v25  ;;  %v5645_v25 = vpack.c.bf16 %v1299_v20, %v1298_v19  ;;  %v1267_v20 = vld [vmem:[%s6517_s19 + $0x8] sm:$0xff] }
 0x15e   :  { %5549 = vmatprep.subr.bf16.mxu0 %v5548_v26  ;;  %v5647_v26 = vpack.c.bf16 %v1317_v22, %v1316_v21  ;;  %v1284_v21 = vld [vmem:[%s6517_s19 + $0x90] sm:$0xff]  ;;  %v1285_v22 = vld [vmem:[%s6517_s19 + $0x98] sm:$0xff] }
 0x161   :  { %5551 = vmatpush3.bf16.msra.mxu0 %v5550_v36  ;;  %v5649_v36 = vpack.c.bf16 %v1301_v33, %v1300_v27  ;;  %v1286_v27 = vld [vmem:[%s6517_s19 + $0xa0] sm:$0xff]  ;;  %v1287_v33 = vld [vmem:[%s6517_s19 + $0xa8] sm:$0xff] }
 0x162   :  { %5553 = vmatprep.subr.bf16.mxu0 %v5552_v37  ;;  %v5651_v37 = vpack.c.bf16 %v1319_v35, %v1318_v34  ;;  %v5619_v35 = vpack.c.bf16 %v1287_v33, %v1286_v27 }
 0x165   :  { %5555 = vmatpush3.bf16.msra.mxu0 %v5554_v48  ;;  %v5653_v48 = vpack.c.bf16 %v1303_v41, %v1302_v40  ;;  %v1288_v40 = vld [vmem:[%s6517_s19 + $0xb0] sm:$0xff]  ;;  %v1289_v41 = vld [vmem:[%s6517_s19 + $0xb8] sm:$0xff] }
 0x166   :  { %5557 = vmatprep.subr.bf16.mxu0 %v5556_v50  ;;  %v5655_v50 = vpack.c.bf16 %v1321_v44, %v1320_v43  ;;  %v5623_v44 = vpack.c.bf16 %v1289_v41, %v1288_v40  ;;  %v1689_v40 = vld [vmem:[%s6537_s12 + $0x88] sm:$0xff]  ;;  %v1672_v41 = vld [vmem:[%s6537_s12] sm:$0xff] }
 0x169   :  { %5559 = vmatpush3.bf16.msra.mxu0 %v5558_v55  ;;  %v5659_v55 = vpack.c.bf16 %v1323_v53, %v1322_v52 }
 0x16a   :  { %5561 = vmatprep.subr.bf16.mxu0 %v5560_v57  ;;  %v1307_v57 = vld [vmem:[%s6517_s19 + $0x148] sm:$0xff] }
 0x16b   :  { %v5661_v58 = vpack.c.bf16 %v1307_v57, %v1306_v56  ;;  %v1292_v57 = vld [vmem:[%s6517_s19 + $0xd0] sm:$0xff] }
 0x16d   :  { %5563 = vmatpush3.bf16.msra.mxu0 %v5562_v0  ;;  %v1309_v0 = vld [vmem:[%s6517_s19 + $0x158] sm:$0xff] }
 0x16e   :  { %5565 = vmatprep.subr.bf16.mxu0 %v5564_v1  ;;  %v5665_v1 = vpack.c.bf16 %v1309_v0, %v1308_v62  ;;  %v1294_v0 = vld [vmem:[%s6517_s19 + $0xe0] sm:$0xff] }
 0x171   :  { %5567 = vmatpush3.bf16.msra.mxu0 %v5566_v7  ;;  %v5669_v7 = vpack.c.bf16 %v1311_v6, %v1310_v31  ;;  %v1296_v6 = vld [vmem:[%s6517_s19 + $0xf0] sm:$0xff] }
 0x172   :  { %5601 = vmatprep.subr.bf16.mxu0 %v5600_v9  ;;  %v1328_v9 = vld [vmem:[%s6517_s19 + $0x1f0] sm:$0xff] }
 0x173   :  { %v5671_v63 = vpack.c.bf16 %v1329_v10, %v1328_v9  ;;  %v1280_v10 = vld [vmem:[%s6517_s19 + $0x70] sm:$0xff] }
 0x174   :  { %914 = vmatmul.mubr.f32.vlgmr.msra.gmra.mrb[8].mxu0 %v570_v11  ;;  %v1312_v11 = vld [vmem:[%s6517_s19 + $0x170] sm:$0xff] }
 0x175   :  { %5603 = vmatpush1.bf16.msra.mxu0 %v5602_v12  ;;  %1103 = vmatprep.mubr.f32.mxu0 %v6453_v8  ;;  %v1313_v12 = vld [vmem:[%s6517_s19 + $0x178] sm:$0xff] }
 0x176   :  { %1043 = vmatprep.subr.mxu0 %v1004_v38  ;;  %v5673_v38 = vpack.c.bf16 %v1313_v12, %v1312_v11 }
 0x179   :  { %1044 = vmatpush1.msra.mxu0 %v1003_v14  ;;  %v5690_v14 = vpack.c.bf16 %v1569_v13, %v1567_v2 }
 0x17a   :  { %4646 = vmatmul.mubr.msk.f32.vlgmr.msra.gmra.mrb[10].mxu0 %vm1035_vm6, %v6867_v39  ;;  %5608 = vmatprep.subr.bf16.mxu0 %v6454_v18 }
 0x17b   :  { %5610 = vmatpush3.bf16.msra.mxu0 %v5609_v15  ;;  %5295 = vmatprep.mubr.msk.f32.mxu0 %vm6455_vm10, %v6453_v8  ;;  %v1282_v15 = vld [vmem:[%s6517_s19 + $0x80] sm:$0xff] }
 0x17c   :  { %5293 = vmatprep.subr.mxu0 %v6453_v8  ;;  %v5611_v19 = vpack.c.bf16 %v1283_v16, %v1282_v15 }
 0x17e   :  { %5612 = vmatprep.subr.bf16.mxu1 %v5611_v19 }
 0x17f   :  { %5294 = vmatpush3.msra.mxu0 %v1007_v23  ;;  %v5613_v23 = vpack.c.bf16 %v1267_v20, %v1266_v17 }
 0x180   :  { %5296 = vmatmul.mubr.msk.f32.vlgmr.msra.gmra.mrb[12].mxu0 %vm1035_vm6, %v6867_v39  ;;  %5644 = vmatprep.subr.bf16.mxu0 %v5643_v24  ;;  %v1304_v39 = vld [vmem:[%s6517_s19 + $0x130] sm:$0xff]  ;;  %v5615_v24 = vpack.c.bf16 %v1285_v22, %v1284_v21 }
 0x181   :  { %5646 = vmatpush3.bf16.msra.mxu0 %v5645_v25  ;;  %v5657_v54 = vpack.c.bf16 %v1305_v51, %v1304_v39  ;;  %v1268_v25 = vld [vmem:[%s6517_s19 + $0x10] sm:$0xff]  ;;  %5614 = vmatpush3.bf16.msra.mxu1 %v5613_v23  ;;  %v1290_v39 = vld [vmem:[%s6517_s19 + $0xc0] sm:$0xff]  ;;  %v1291_v51 = vld [vmem:[%s6517_s19 + $0xc8] sm:$0xff] }
 0x182   :  { %5648 = vmatprep.subr.bf16.mxu0 %v5647_v26  ;;  %v1269_v26 = vld [vmem:[%s6517_s19 + $0x18] sm:$0xff]  ;;  %5616 = vmatprep.subr.bf16.mxu1 %v5615_v24  ;;  %v5627_v53 = vpack.c.bf16 %v1291_v51, %v1290_v39  ;;  %v1566_v24 = vld [vmem:[%s6527_s30] sm:$0xff] }
 0x183   :  { %v5617_v34 = vpack.c.bf16 %v1269_v26, %v1268_v25  ;;  %v1568_v25 = vld [vmem:[%s6527_s30 + $0x10] sm:$0xff]  ;;  %v1565_v51 = vld [vmem:[%s6477_s13] sm:$0x3]  ;;  %s7909_s13 = sld [smem:[#allocation12_spill]] }
 0x184   :  { %v5692_v33 = vpack.c.bf16 %v1568_v25, %v1566_v24 }
 0x185   :  { %5650 = vmatpush3.bf16.msra.mxu0 %v5649_v36  ;;  %v1270_v36 = vld [vmem:[%s6517_s19 + $0x20] sm:$0xff]  ;;  %5618 = vmatpush3.bf16.msra.mxu1 %v5617_v34 }
 0x186   :  { %5652 = vmatprep.subr.bf16.mxu0 %v5651_v37  ;;  %v1271_v37 = vld [vmem:[%s6517_s19 + $0x28] sm:$0xff]  ;;  %5620 = vmatprep.subr.bf16.mxu1 %v5619_v35 }
 0x187   :  { %v5621_v43 = vpack.c.bf16 %v1271_v37, %v1270_v36  ;;  %v1571_v36 = vld [vmem:[%s6527_s30 + $0x28] sm:$0xf]  ;;  %v1688_v37 = vld [vmem:[%s6537_s12 + $0x80] sm:$0xff] }
 0x188   :  { %v5694_v39 = vpack.c.bf16 %v1689_v40, %v1688_v37 }
 0x189   :  { %5654 = vmatpush3.bf16.msra.mxu0 %v5653_v48  ;;  %v1272_v48 = vld [vmem:[%s6517_s19 + $0x30] sm:$0xff]  ;;  %5622 = vmatpush3.bf16.msra.mxu1 %v5621_v43  ;;  %v1673_v43 = vld [vmem:[%s6537_s12 + $0x8] sm:$0xff] }
 0x18a   :  { %5656 = vmatprep.subr.bf16.mxu0 %v5655_v50  ;;  %v1273_v50 = vld [vmem:[%s6517_s19 + $0x38] sm:$0xff]  ;;  %5624 = vmatprep.subr.bf16.mxu1 %v5623_v44  ;;  %v1690_v44 = vld [vmem:[%s6537_s12 + $0x90] sm:$0xff] }
 0x18b   :  { %v5625_v52 = vpack.c.bf16 %v1273_v50, %v1272_v48  ;;  %v1691_v48 = vld [vmem:[%s6537_s12 + $0x98] sm:$0xff]  ;;  %v1570_v50 = vld [vmem:[%s6527_s30 + $0x20] sm:$0xf]  ;;  %s7919_s30 = sld [smem:[#allocation24_spill]] }
 0x18d   :  { %5658 = vmatpush3.bf16.msra.mxu0 %v5657_v54  ;;  %v1274_v54 = vld [vmem:[%s6517_s19 + $0x40] sm:$0xff]  ;;  %5626 = vmatpush3.bf16.msra.mxu1 %v5625_v52  ;;  %v5696_v52 = vpack.c.bf16 %v1673_v43, %v1672_v41 }
 0x18e   :  { %5660 = vmatprep.subr.bf16.mxu0 %v5659_v55  ;;  %v1275_v55 = vld [vmem:[%s6517_s19 + $0x48] sm:$0xff]  ;;  %5628 = vmatprep.subr.bf16.mxu1 %v5627_v53  ;;  %v5698_v53 = vpack.c.bf16 %v1691_v48, %v1690_v44  ;;  %v1332_v48 = vld [vmem:[%s6517_s19 + $0x210] sm:$0xff] }
 0x18f   :  { %v5629_v56 = vpack.c.bf16 %v1275_v55, %v1274_v54  ;;  %v1674_v54 = vld [vmem:[%s6537_s12 + $0x10] sm:$0xff]  ;;  %v1675_v55 = vld [vmem:[%s6537_s12 + $0x18] sm:$0xff] }
 0x191   :  { %5662 = vmatpush3.bf16.msra.mxu0 %v5661_v58  ;;  %5630 = vmatpush3.bf16.msra.mxu1 %v5629_v56  ;;  %v1293_v58 = vld [vmem:[%s6517_s19 + $0xd8] sm:$0xff]  ;;  %v1692_v56 = vld [vmem:[%s6537_s12 + $0xa0] sm:$0xff] }
 0x192   :  { %5664 = vmatprep.subr.bf16.mxu0 %v5663_v61  ;;  %v5631_v59 = vpack.c.bf16 %v1293_v58, %v1292_v57  ;;  %v1277_v61 = vld [vmem:[%s6517_s19 + $0x58] sm:$0xff]  ;;  %v1693_v57 = vld [vmem:[%s6537_s12 + $0xa8] sm:$0xff]  ;;  %v4645_v58 = vld [vmem:[%s6502_s3] ss:$0 sm:$0xff]  ;;  %s7914_s3 = sld [smem:[#allocation11_spill]] }
 0x193   :  { %v5633_v62 = vpack.c.bf16 %v1277_v61, %v1276_v60  ;;  %v5702_v60 = vpack.c.bf16 %v1693_v57, %v1692_v56  ;;  %v1676_v61 = vld [vmem:[%s6537_s12 + $0x20] sm:$0xff]  ;;  %v1337_v56 = vld [vmem:[%s6517_s19 + $0x238] sm:$0xff] }
 0x194   :  { %5632 = vmatprep.subr.bf16.mxu1 %v5631_v59  ;;  %v5700_v59 = vpack.c.bf16 %v1675_v55, %v1674_v54  ;;  %v1336_v55 = vld [vmem:[%s6517_s19 + $0x230] sm:$0xff] }
 0x195   :  { %5666 = vmatpush3.bf16.msra.mxu0 %v5665_v1  ;;  %5634 = vmatpush3.bf16.msra.mxu1 %v5633_v62  ;;  %v1295_v1 = vld [vmem:[%s6517_s19 + $0xe8] sm:$0xff] }
 0x196   :  { %5668 = vmatprep.subr.bf16.mxu0 %v5667_v5  ;;  %v5635_v3 = vpack.c.bf16 %v1295_v1, %v1294_v0  ;;  %v1279_v5 = vld [vmem:[%s6517_s19 + $0x68] sm:$0xff] }
 0x197   :  { %v5637_v31 = vpack.c.bf16 %v1279_v5, %v1278_v4  ;;  %v1677_v62 = vld [vmem:[%s6537_s12 + $0x28] sm:$0xff]  ;;  %v1695_v4 = vld [vmem:[%s6537_s12 + $0xb8] sm:$0xff] }
 0x198   :  { %5636 = vmatprep.subr.bf16.mxu1 %v5635_v3  ;;  %v1694_v3 = vld [vmem:[%s6537_s12 + $0xb0] sm:$0xff] }
 0x199   :  { %5670 = vmatpush3.bf16.msra.mxu0 %v5669_v7  ;;  %5638 = vmatpush3.bf16.msra.mxu1 %v5637_v31  ;;  %v1297_v7 = vld [vmem:[%s6517_s19 + $0xf8] sm:$0xff] }
 0x19a   :  { %5672 = vmatprep.subr.bf16.mxu0 %v5671_v63  ;;  %v5639_v9 = vpack.c.bf16 %v1297_v7, %v1296_v6  ;;  %v1281_v63 = vld [vmem:[%s6517_s19 + $0x78] sm:$0xff]  ;;  %v5704_v6 = vpack.c.bf16 %v1677_v62, %v1676_v61  ;;  %v5706_v7 = vpack.c.bf16 %v1695_v4, %v1694_v3  ;;  %v1799_v3 = vld [vmem:[%s6547_s27 + $0x70] sm:$0xff]  ;;  %v1798_v4 = vld [vmem:[%s6547_s27 + $0x68] sm:$0xff] }
 0x19b   :  { %v5641_v11 = vpack.c.bf16 %v1281_v63, %v1280_v10  ;;  %v1679_v10 = vld [vmem:[%s6537_s12 + $0x38] sm:$0xff] }
 0x19c   :  { %5640 = vmatprep.subr.bf16.mxu1 %v5639_v9  ;;  %v1678_v9 = vld [vmem:[%s6537_s12 + $0x30] sm:$0xff] }
 0x19d   :  { %5674 = vmatpush3.bf16.msra.mxu0 %v5673_v38  ;;  %5642 = vmatpush3.bf16.msra.mxu1 %v5641_v11  ;;  %v1696_v11 = vld [vmem:[%s6537_s12 + $0xc0] sm:$0xff] }
 0x19e   :  { %5691 = vmatprep.subr.bf16.mxu0 %v5690_v14  ;;  %5675 = vmatprep.subr.bf16.mxu1 %v6454_v18  ;;  %v7016_v14 = vld [vmem:[%s6512_s14] sm:$0x1f]  ;;  %s7916_s14 = sld [smem:[#allocation22_spill]] }
 0x19f   :  { %v1021_v17 = vrot.slane %v7016_v14, %v6873_v46  ;;  %v1025_v19 = vrot.slane %v7016_v14, %v6819_v32  ;;  %v1017_v24 = vrot.slane %v7016_v14, %v6813_v30  ;;  %v1029_v57 = vrot.slane %v7016_v14, %v6915_v49 }
 0x207   :  { %v4724_v12 = vpop.f32.mrb[4].mxu0 }
 0x208   :  { %v4725_v38 = vpop.f32.mrb[5].mxu0 }
 0x209   :  { %v4726_v2 = vadd.f32 %v4725_v38, %v4724_v12  ;;  %v1697_v12 = vld [vmem:[%s6537_s12 + $0xc8] sm:$0xff]  ;;  %v5708_v38 = vpack.c.bf16 %v1679_v10, %v1678_v9 }
 0x20b   :  { %v776_v0 = vadd.f32 %v4726_v2, %v4645_v58  ;;  %v5710_v2 = vpack.c.bf16 %v1697_v12, %v1696_v11  ;;  %v5685_v58 = vpack.c.bf16 %v1337_v56, %v1336_v55  ;;  %v1811_v11 = vld [vmem:[%s6547_s27 + $0xd0] sm:$0xff]  ;;  %v1824_v12 = vld [vmem:[%s6547_s27 + $0x138] sm:$0xff] }
 0x20c   :  { %v1702_v55 = vld [vmem:[%s6537_s12 + $0xf0] sm:$0xff]  ;;  %v1703_v56 = vld [vmem:[%s6537_s12 + $0xf8] sm:$0xff] }
 0x210   :  { %v4829_v13 = vpop.f32.mrb[4].mxu1 }
 0x211   :  { %v4830_v15 = vpop.f32.mrb[5].mxu1 }
 0x212   :  { %v7018_v16 = vadd.f32 %v4830_v15, %v4829_v13  ;;  %v1680_v13 = vld [vmem:[%s6537_s12 + $0x40] sm:$0xff]  ;;  %v1681_v15 = vld [vmem:[%s6537_s12 + $0x48] sm:$0xff] }
 0x216   :  { %v1176_v20 = vpop.f32.mrb[6].mxu1 }
 0x217   :  { %v1177_v21 = vadd.f32 %v1176_v20, %v1021_v17  ;;  %v1178_v22 = vpop.f32.mrb[7].mxu1  ;;  %v5712_v17 = vpack.c.bf16 %v1681_v15, %v1680_v13  ;;  %v1788_v13 = vld [vmem:[%s6547_s27 + $0x18] sm:$0xff]  ;;  %v1801_v15 = vld [vmem:[%s6547_s27 + $0x80] sm:$0xff] }
 0x218   :  { %v1179_v23 = vadd.f32 %v1178_v22, %v1025_v19  ;;  %v1013_v22 = vrot.slane %v7016_v14, %v6810_v29  ;;  %v1785_v14 = vld [vmem:[%s6547_s27] sm:$0xff] }
 0x219   :  { %v1258_v26 = vmul.f32 0.01, %v1177_v21  ;;  %vm1253_vm11 = vcmp.ge.f32.partialorder %v1177_v21, 0.0  ;;  %v5728_v10 = vpack.c.bf16 %v1798_v4, %v1785_v14  ;;  %v1839_v14 = vld [vmem:[%s6547_s27 + $0x1b0] sm:$0xff] }
 0x21a   :  { %v1259_v27 = vmul.f32 0.01, %v1179_v23  ;;  %vm1254_vm12 = vcmp.ge.f32.partialorder %v1179_v23, 0.0 }
 0x21b   :  { %v1263_v35 = vsel %vm1253_vm11, %v1177_v21, %v1258_v26 }
 0x21c   :  { %v1264_v34 = vsel %vm1254_vm12, %v1179_v23, %v1259_v27 }
 0x21d   :  { %1486 = vmatprep.mubr.f32.mxu0 %v1264_v34 }
 0x21e   :  { %1487 = vmatmul.mubr.f32.vlgmr.msra.gmra.mrb[14].mxu0 %v1263_v35  ;;  %v1330_v35 = vld [vmem:[%s6517_s19 + $0x200] sm:$0xff] }
 0x21f   :  { %5693 = vmatpush1.bf16.msra.mxu0 %v5692_v33  ;;  %1659 = vmatprep.mubr.f32.mxu0 %v6453_v8 }
 0x220   :  { %4651 = vmatprep.subr.msk.mxu0 %vm1588_vm13, %v1571_v36  ;;  %v1331_v36 = vld [vmem:[%s6517_s19 + $0x208] sm:$0xff] }
 0x221   :  { %v5676_v43 = vpack.c.bf16 %v1331_v36, %v1330_v35  ;;  %v7102_v36 = vld [vmem:[%s6482_s17] sm:$0x3]  ;;  %s7910_s17 = sld [smem:[#allocation14_spill]] }
 0x223   :  { %4652 = vmatpush1.msk.msra.mxu0 %vm1588_vm13, %v1570_v50 }
 0x224   :  { %4653 = vmatmul.mubr.msk.f32.vlgmr.msra.gmra.mrb[16].mxu0 %vm1584_vm14, %v1565_v51  ;;  %5695 = vmatprep.subr.bf16.mxu0 %v5694_v39 }
 0x225   :  { %5697 = vmatpush3.bf16.msra.mxu0 %v5696_v52  ;;  %v1334_v52 = vld [vmem:[%s6517_s19 + $0x220] sm:$0xff] }
 0x226   :  { %5699 = vmatprep.subr.bf16.mxu0 %v5698_v53  ;;  %v1335_v53 = vld [vmem:[%s6517_s19 + $0x228] sm:$0xff] }
 0x227   :  { %v4759_v1 = vpop.f32.mrb[6].mxu0  ;;  %v5682_v54 = vpack.c.bf16 %v1335_v53, %v1334_v52  ;;  %v1840_v53 = vld [vmem:[%s6547_s27 + $0x1b8] sm:$0xff] }
 0x228   :  { %v4760_v5 = vpop.f32.mrb[7].mxu0 }
 0x229   :  { %v4761_v31 = vadd.f32 %v4760_v5, %v4759_v1  ;;  %5701 = vmatpush3.bf16.msra.mxu0 %v5700_v59  ;;  %v1338_v59 = vld [vmem:[%s6517_s19 + $0x240] sm:$0xff]  ;;  %v1786_v1 = vld [vmem:[%s6547_s27 + $0x8] sm:$0xff]  ;;  %v1812_v5 = vld [vmem:[%s6547_s27 + $0xd8] sm:$0xff] }
 0x22a   :  { %5703 = vmatprep.subr.bf16.mxu0 %v5702_v60  ;;  %v1339_v60 = vld [vmem:[%s6517_s19 + $0x248] sm:$0xff] }
 0x22b   :  { %v846_v63 = vadd.f32 %v4761_v31, %v776_v0  ;;  %v5688_v62 = vpack.c.bf16 %v1339_v60, %v1338_v59  ;;  %v1825_v31 = vld [vmem:[%s6547_s27 + $0x140] sm:$0xff]  ;;  %v1686_v59 = vld [vmem:[%s6537_s12 + $0x70] sm:$0xff]  ;;  %v1687_v60 = vld [vmem:[%s6537_s12 + $0x78] sm:$0xff] }
 0x22d   :  { %5705 = vmatpush3.bf16.msra.mxu0 %v5704_v6  ;;  %v1340_v6 = vld [vmem:[%s6517_s19 + $0x250] sm:$0xff] }
 0x22e   :  { %5707 = vmatprep.subr.bf16.mxu0 %v5706_v7  ;;  %v5726_v7 = vpack.c.bf16 %v1799_v3, %v1786_v1  ;;  %v1816_v1 = vld [vmem:[%s6547_s27 + $0xf8] sm:$0xff]  ;;  %v1829_v3 = vld [vmem:[%s6547_s27 + $0x160] sm:$0xff] }
 0x231   :  { %5709 = vmatpush3.bf16.msra.mxu0 %v5708_v38  ;;  %v5732_v38 = vpack.c.bf16 %v1824_v12, %v1811_v11  ;;  %v1842_v12 = vld [vmem:[%s6547_s27 + $0x1c8] sm:$0xff] }
 0x232   :  { %5711 = vmatprep.subr.bf16.mxu0 %v5710_v2  ;;  %v1838_v2 = vld [vmem:[%s6547_s27 + $0x1a8] sm:$0xff] }
 0x235   :  { %5713 = vmatpush3.bf16.msra.mxu0 %v5712_v17  ;;  %v1787_v17 = vld [vmem:[%s6547_s27 + $0x10] sm:$0xff] }
 0x247   :  { %v4794_v19 = vpop.f32.mrb[8].mxu0 }
 0x248   :  { %v4795_v20 = vpop.f32.mrb[9].mxu0 }
 0x249   :  { %v4796_v21 = vadd.f32 %v4795_v20, %v4794_v19  ;;  %v1800_v19 = vld [vmem:[%s6547_s27 + $0x78] sm:$0xff]  ;;  %v1814_v20 = vld [vmem:[%s6547_s27 + $0xe8] sm:$0xff] }
 0x24b   :  { %v916_v23 = vadd.f32 %v4796_v21, %v846_v63  ;;  %v5730_v63 = vpack.c.bf16 %v1825_v31, %v1812_v5  ;;  %v1698_v21 = vld [vmem:[%s6537_s12 + $0xd0] sm:$0xff]  ;;  %v1792_v5 = vld [vmem:[%s6547_s27 + $0x38] sm:$0xff]  ;;  %v1805_v31 = vld [vmem:[%s6547_s27 + $0xa0] sm:$0xff] }
 0x24d   :  { %v7058_v25 = vadd.f32 %v7018_v16, %v916_v23  ;;  %v1105_v26 = vpop.f32.mrb[10].mxu0  ;;  %v1333_v16 = vld [vmem:[%s6517_s19 + $0x218] sm:$0xff]  ;;  %v1827_v23 = vld [vmem:[%s6547_s27 + $0x150] sm:$0xff]  ;;  %s7917_s19 = sld [smem:[#allocation17_spill]] }
 0x24e   :  { %v1106_v27 = vadd.f32 %v1105_v26, %v1013_v22  ;;  %v1107_v33 = vpop.f32.mrb[11].mxu0  ;;  %v5679_v51 = vpack.c.bf16 %v1333_v16, %v1332_v48  ;;  %v1699_v22 = vld [vmem:[%s6537_s12 + $0xd8] sm:$0xff]  ;;  %v1682_v26 = vld [vmem:[%s6537_s12 + $0x50] sm:$0xff]  ;;  %v1701_v48 = vld [vmem:[%s6537_s12 + $0xe8] sm:$0xff] }
 0x24f   :  { %v1108_v34 = vadd.f32 %v1107_v33, %v1017_v24  ;;  %v5714_v24 = vpack.c.bf16 %v1699_v22, %v1698_v21  ;;  %v1837_v33 = vld [vmem:[%s6547_s27 + $0x1a0] sm:$0xff] }
 0x250   :  { %vm1251_vm15 = vcmp.ge.f32.partialorder %v1106_v27, 0.0  ;;  %v1256_v37 = vmul.f32 0.01, %v1106_v27 }
 0x251   :  { %v1257_v40 = vmul.f32 0.01, %v1108_v34  ;;  %vm1252_vm0 = vcmp.ge.f32.partialorder %v1108_v34, 0.0  ;;  %5715 = vmatprep.subr.bf16.mxu0 %v5714_v24  ;;  %v1819_v24 = vld [vmem:[%s6547_s27 + $0x110] sm:$0xff] }
 0x252   :  { %v1261_v41 = vsel %vm1251_vm15, %v1106_v27, %v1256_v37  ;;  %v1683_v27 = vld [vmem:[%s6537_s12 + $0x58] sm:$0xff]  ;;  %v5736_v37 = vpack.c.bf16 %v1800_v19, %v1787_v17  ;;  %v1833_v19 = vld [vmem:[%s6547_s27 + $0x180] sm:$0xff] }
 0x253   :  { %v1262_v44 = vsel %vm1252_vm0, %v1108_v34, %v1257_v40  ;;  %v1247_v50 = vpop.f32.mrb[12].mxu0  ;;  %v5734_v34 = vpack.c.bf16 %v1801_v15, %v1788_v13  ;;  %v5716_v35 = vpack.c.bf16 %v1683_v27, %v1682_v26  ;;  %v1813_v40 = vld [vmem:[%s6547_s27 + $0xe0] sm:$0xff]  ;;  %v1806_v15 = vld [vmem:[%s6547_s27 + $0xa8] sm:$0xff]  ;;  %v1820_v17 = vld [vmem:[%s6547_s27 + $0x118] sm:$0xff] }
 0x254   :  { %1416 = vmatprep.mubr.f32.mxu1 %v1262_v44  ;;  %v5297_v39 = vpop.f32.mrb[13].mxu0  ;;  %v1248_v61 = vadd.f32 %v1247_v50, %v1029_v57  ;;  %v1700_v44 = vld [vmem:[%s6537_s12 + $0xe0] sm:$0xff]  ;;  %v1803_v57 = vld [vmem:[%s6547_s27 + $0x90] sm:$0xff]  ;;  %v1832_v26 = vld [vmem:[%s6547_s27 + $0x178] sm:$0xff] }
 0x255   :  { %1417 = vmatmul.mubr.f32.vlgmr.msra.gmra.mrb[8].mxu1 %v1261_v41  ;;  %v5738_v41 = vpack.c.bf16 %v1827_v23, %v1814_v20  ;;  %5717 = vmatpush3.bf16.msra.mxu0 %v5716_v35  ;;  %v5718_v16 = vpack.c.bf16 %v1701_v48, %v1700_v44  ;;  %v1684_v50 = vld [vmem:[%s6537_s12 + $0x60] sm:$0xff]  ;;  %v1685_v39 = vld [vmem:[%s6537_s12 + $0x68] sm:$0xff]  ;;  %v5762_v23 = vpack.c.bf16 %v1833_v19, %v1820_v17  ;;  %v2501_v19 = vld [vmem:[%s7906_s0 + $0x158] sm:$0xff]  ;;  %s7920_s12 = sld [smem:[#allocation26_spill]] }
 0x256   :  { %5677 = vmatpush3.bf16.msra.mxu1 %v5676_v43  ;;  %5320 = vmatprep.mubr.msk.f32.mxu1 %vm6455_vm10, %v6453_v8  ;;  %v1260_v0 = vmul.f32 0.01, %v1248_v61  ;;  %vm1255_vm1 = vcmp.ge.f32.partialorder %v1248_v61, 0.0  ;;  %v1826_v43 = vld [vmem:[%s6547_s27 + $0x148] sm:$0xff]  ;;  %v1793_v13 = vld [vmem:[%s6547_s27 + $0x40] sm:$0xff]  ;;  %v5764_v27 = vpack.c.bf16 %v1832_v26, %v1819_v24 }
 0x257   :  { %5678 = vmatprep.subr.bf16.mxu1 %v6454_v18  ;;  %v5740_v52 = vpack.c.bf16 %v1826_v43, %v1813_v40  ;;  %5719 = vmatprep.subr.bf16.mxu0 %v5718_v16  ;;  %v1841_v20 = vld [vmem:[%s6547_s27 + $0x1c0] sm:$0xff]  ;;  %v5760_v22 = vpack.c.bf16 %v1806_v15, %v1793_v13  ;;  %v1836_v43 = vld [vmem:[%s6547_s27 + $0x198] sm:$0xff]  ;;  %v2500_v15 = vld [vmem:[%s7906_s0 + $0x150] sm:$0xff] }
 0x258   :  { %v1265_v9 = vsel %vm1255_vm1, %v1248_v61, %v1260_v0  ;;  %v1789_v61 = vld [vmem:[%s6547_s27 + $0x20] sm:$0xff]  ;;  %v5724_v0 = vpack.c.bf16 %v1687_v60, %v1686_v59  ;;  %v2517_v13 = vld [vmem:[%s7906_s0 + $0x1d8] sm:$0xff]  ;;  %v2503_v26 = vld [vmem:[%s7906_s0 + $0x168] sm:$0xff]  ;;  %vm2665_vm1 = vcmask 523264  }
 0x259   :  { %v1797_v35 = vld [vmem:[%s6547_s27 + $0x60] sm:$0xff] }
 0x25a   :  { %5680 = vmatpush3.bf16.msra.mxu1 %v5679_v51  ;;  %v5720_v51 = vpack.c.bf16 %v1685_v39, %v1684_v50  ;;  %v1849_v48 = vld [vmem:[%s6547_s27 + $0x200] sm:$0xff]  ;;  %v2507_v50 = vld [vmem:[%s7906_s0 + $0x188] sm:$0xff] }
 0x25b   :  { %5681 = vmatprep.subr.bf16.mxu1 %v6454_v18  ;;  %v2506_v16 = vld [vmem:[%s7906_s0 + $0x180] sm:$0xff] }
 0x25c   :  { %5721 = vmatpush3.bf16.msra.mxu0 %v5720_v51  ;;  %v2490_v39 = vld [vmem:[%s7906_s0 + $0x100] sm:$0xff]  ;;  %v5812_v51 = vpack.c.bf16 %v2507_v50, %v2506_v16 }
 0x25d   :  { %v2510_v60 = vld [vmem:[%s7906_s0 + $0x1a0] sm:$0xff] }
 0x25e   :  { %5683 = vmatpush3.bf16.msra.mxu1 %v5682_v54  ;;  %v1790_v54 = vld [vmem:[%s6547_s27 + $0x28] sm:$0xff]  ;;  %v1572_v16 = vld [vmem:[%s7907_s5] sm:$0x3] }
 0x25f   :  { %5684 = vmatprep.subr.bf16.mxu1 %v6454_v18  ;;  %v5742_v4 = vpack.c.bf16 %v1803_v57, %v1790_v54  ;;  %v2508_v54 = vld [vmem:[%s7906_s0 + $0x190] sm:$0xff] }
 0x262   :  { %5686 = vmatpush3.bf16.msra.mxu1 %v5685_v58  ;;  %v5722_v58 = vpack.c.bf16 %v1703_v56, %v1702_v55  ;;  %v2509_v55 = vld [vmem:[%s7906_s0 + $0x198] sm:$0xff]  ;;  %v2492_v56 = vld [vmem:[%s7906_s0 + $0x110] sm:$0xff] }
 0x263   :  { %5687 = vmatprep.subr.bf16.mxu1 %v6454_v18  ;;  %v5816_v57 = vpack.c.bf16 %v2509_v55, %v2508_v54 }
 0x264   :  { %5723 = vmatprep.subr.bf16.mxu0 %v5722_v58  ;;  %v2493_v58 = vld [vmem:[%s7906_s0 + $0x118] sm:$0xff] }
 0x265   :  { %5725 = vmatpush3.bf16.msra.mxu0 %v5724_v0  ;;  %v5818_v59 = vpack.c.bf16 %v2493_v58, %v2492_v56  ;;  %v1791_v58 = vld [vmem:[%s6547_s27 + $0x30] sm:$0xff] }
 0x266   :  { %5689 = vmatpush3.bf16.msra.mxu1 %v5688_v62  ;;  %v1802_v62 = vld [vmem:[%s6547_s27 + $0x88] sm:$0xff] }
 0x267   :  { %5318 = vmatprep.subr.mxu1 %v6453_v8 }
 0x26a   :  { %5319 = vmatpush3.msra.mxu1 %v1340_v6  ;;  %v5744_v6 = vpack.c.bf16 %v1802_v62, %v1789_v61  ;;  %v2511_v61 = vld [vmem:[%s7906_s0 + $0x1a8] sm:$0xff]  ;;  %v2494_v62 = vld [vmem:[%s7906_s0 + $0x120] sm:$0xff] }
 0x26b   :  { %5321 = vmatmul.mubr.msk.f32.vlgmr.msra.gmra.mrb[10].mxu1 %vm1348_vm2, %v1265_v9  ;;  %5727 = vmatprep.subr.bf16.mxu1 %v5726_v7  ;;  %v5750_v7 = vpack.c.bf16 %v1805_v31, %v1792_v5  ;;  %v5746_v9 = vpack.c.bf16 %v1829_v3, %v1816_v1  ;;  %v5820_v0 = vpack.c.bf16 %v2511_v61, %v2510_v60  ;;  %v2495_v1 = vld [vmem:[%s7906_s0 + $0x128] sm:$0xff]  ;;  %v2496_v5 = vld [vmem:[%s7906_s0 + $0x130] sm:$0xff] }
 0x26c   :  { %5729 = vmatpush1.bf16.msra.mxu1 %v5728_v10  ;;  %1987 = vmatprep.mubr.f32.mxu1 %v6453_v8  ;;  %v1815_v10 = vld [vmem:[%s6547_s27 + $0xf0] sm:$0xff]  ;;  %v5822_v3 = vpack.c.bf16 %v2495_v1, %v2494_v62  ;;  %v1818_v61 = vld [vmem:[%s6547_s27 + $0x108] sm:$0xff] }
 0x26d   :  { %5731 = vmatprep.subr.bf16.mxu1 %v5730_v63  ;;  %v1828_v63 = vld [vmem:[%s6547_s27 + $0x158] sm:$0xff]  ;;  %5751 = vmatprep.subr.bf16.mxu0 %v5750_v7  ;;  %v1831_v62 = vld [vmem:[%s6547_s27 + $0x170] sm:$0xff] }
 0x26e   :  { %v5748_v11 = vpack.c.bf16 %v1828_v63, %v1815_v10  ;;  %v2515_v10 = vld [vmem:[%s7906_s0 + $0x1c8] sm:$0xff]  ;;  %v2498_v63 = vld [vmem:[%s7906_s0 + $0x140] sm:$0xff] }
 0x270   :  { %5733 = vmatpush1.bf16.msra.mxu1 %v5732_v38  ;;  %v1794_v38 = vld [vmem:[%s6547_s27 + $0x48] sm:$0xff] }
 0x271   :  { %1931 = vmatprep.subr.mxu1 %v1838_v2  ;;  %v1807_v2 = vld [vmem:[%s6547_s27 + $0xb0] sm:$0xff] }
 0x272   :  { %v5758_v21 = vpack.c.bf16 %v1807_v2, %v1794_v38  ;;  %v2516_v2 = vld [vmem:[%s7906_s0 + $0x1d0] sm:$0xff] }
 0x273   :  { %v5832_v17 = vpack.c.bf16 %v2517_v13, %v2516_v2  ;;  %v1843_v2 = vld [vmem:[%s6547_s27 + $0x1d0] sm:$0xff] }
 0x274   :  { %1932 = vmatpush1.msra.mxu1 %v1837_v33  ;;  %v1846_v33 = vld [vmem:[%s6547_s27 + $0x1e8] sm:$0xff] }
 0x275   :  { %4655 = vmatmul.mubr.msk.f32.vlgmr.msra.gmra.mrb[12].mxu1 %vm1919_vm3, %v7102_v36  ;;  %5735 = vmatprep.subr.bf16.mxu1 %v5734_v34  ;;  %v1845_v34 = vld [vmem:[%s6547_s27 + $0x1e0] sm:$0xff] }
 0x276   :  { %5737 = vmatpush1.bf16.msra.mxu1 %v5736_v37  ;;  %2058 = vmatprep.mubr.f32.mxu1 %v6453_v8  ;;  %v1810_v37 = vld [vmem:[%s6547_s27 + $0xc8] sm:$0xff] }
 0x277   :  { %5739 = vmatprep.subr.bf16.mxu1 %v5738_v41  ;;  %v5775_v40 = vpack.c.bf16 %v1810_v37, %v1797_v35  ;;  %v1823_v41 = vld [vmem:[%s6547_s27 + $0x130] sm:$0xff] }
 0x278   :  { %v5778_v44 = vpack.c.bf16 %v1836_v43, %v1823_v41  ;;  %v2504_v35 = vld [vmem:[%s7906_s0 + $0x170] sm:$0xff]  ;;  %v2570_v43 = vld [vmem:[%s7906_s0 + $0x380] sm:$0xff] }
 0x27a   :  { %5741 = vmatpush1.bf16.msra.mxu1 %v5740_v52  ;;  %v2491_v52 = vld [vmem:[%s7906_s0 + $0x108] sm:$0xff] }
 0x27b   :  { %2002 = vmatprep.subr.mxu1 %v1840_v53  ;;  %v5814_v53 = vpack.c.bf16 %v2491_v52, %v2490_v39  ;;  %v1577_v52 = vrot.slane %v1572_v16, %v6810_v29 }
 0x27e   :  { %2003 = vmatpush1.msra.mxu1 %v1839_v14  ;;  %v2512_v14 = vld [vmem:[%s7906_s0 + $0x1b0] sm:$0xff] }
 0x27f   :  { %5743 = vmatprep.subr.bf16.mxu1 %v5742_v4  ;;  %4656 = vmatmul.mubr.msk.f32.vlgmr.msra.gmra.mrb[14].mxu1 %vm1919_vm3, %v7102_v36  ;;  %v2513_v4 = vld [vmem:[%s7906_s0 + $0x1b8] sm:$0xff] }
 0x280   :  { %5745 = vmatpush1.bf16.msra.mxu1 %v5744_v6  ;;  %2129 = vmatprep.mubr.f32.mxu1 %v6453_v8  ;;  %v5824_v31 = vpack.c.bf16 %v2513_v4, %v2512_v14  ;;  %v2497_v6 = vld [vmem:[%s7906_s0 + $0x138] sm:$0xff]  ;;  %v5754_v14 = vpack.c.bf16 %v1831_v62, %v1818_v61  ;;  %v1817_v4 = vld [vmem:[%s6547_s27 + $0x100] sm:$0xff] }
 0x281   :  { %5747 = vmatprep.subr.bf16.mxu1 %v5746_v9  ;;  %v5826_v7 = vpack.c.bf16 %v2497_v6, %v2496_v5  ;;  %v2514_v9 = vld [vmem:[%s7906_s0 + $0x1c0] sm:$0xff]  ;;  %v1830_v5 = vld [vmem:[%s6547_s27 + $0x168] sm:$0xff] }
 0x282   :  { %v5756_v6 = vpack.c.bf16 %v1830_v5, %v1817_v4 }
 0x284   :  { %5749 = vmatpush1.bf16.msra.mxu1 %v5748_v11  ;;  %v5828_v11 = vpack.c.bf16 %v2515_v10, %v2514_v9  ;;  %v1796_v9 = vld [vmem:[%s6547_s27 + $0x58] sm:$0xff]  ;;  %v1809_v10 = vld [vmem:[%s6547_s27 + $0xc0] sm:$0xff] }
 0x285   :  { %2073 = vmatprep.subr.mxu1 %v1842_v12  ;;  %v2499_v12 = vld [vmem:[%s7906_s0 + $0x148] sm:$0xff]  ;;  %v5766_v13 = vpack.c.bf16 %v1809_v10, %v1796_v9 }
 0x286   :  { %v5830_v38 = vpack.c.bf16 %v2499_v12, %v2498_v63  ;;  %v1795_v63 = vld [vmem:[%s6547_s27 + $0x50] sm:$0xff]  ;;  %v1822_v12 = vld [vmem:[%s6547_s27 + $0x128] sm:$0xff] }
 0x287   :  { %v2487_v9 = vld [vmem:[%s7906_s0 + $0xe8] sm:$0xff] }
 0x288   :  { %2074 = vmatpush1.msra.mxu1 %v1841_v20  ;;  %v5834_v20 = vpack.c.bf16 %v2501_v19, %v2500_v15  ;;  %v1821_v19 = vld [vmem:[%s6547_s27 + $0x120] sm:$0xff] }
 0x289   :  { %4657 = vmatmul.mubr.msk.f32.vlgmr.msra.gmra.mrb[16].mxu1 %vm1919_vm3, %v7102_v36  ;;  %5759 = vmatprep.subr.bf16.mxu1 %v5758_v21  ;;  %v2518_v21 = vld [vmem:[%s7906_s0 + $0x1e0] sm:$0xff] }
 0x28a   :  { %5761 = vmatpush1.bf16.msra.mxu1 %v5760_v22  ;;  %2271 = vmatprep.mubr.f32.mxu1 %v6453_v8  ;;  %v2519_v22 = vld [vmem:[%s7906_s0 + $0x1e8] sm:$0xff] }
 0x28b   :  { %5763 = vmatprep.subr.bf16.mxu1 %v5762_v23  ;;  %v2502_v23 = vld [vmem:[%s7906_s0 + $0x160] sm:$0xff]  ;;  %v5836_v24 = vpack.c.bf16 %v2519_v22, %v2518_v21  ;;  %v1848_v22 = vld [vmem:[%s6547_s27 + $0x1f8] sm:$0xff] }
 0x28e   :  { %5765 = vmatpush1.bf16.msra.mxu1 %v5764_v27  ;;  %v5838_v27 = vpack.c.bf16 %v2503_v26, %v2502_v23  ;;  %v2474_v23 = vld [vmem:[%s7906_s0 + $0x80] sm:$0xff] }
 0x28f   :  { %2215 = vmatprep.subr.mxu1 %v1846_v33  ;;  %v2520_v33 = vld [vmem:[%s7906_s0 + $0x1f0] sm:$0xff]  ;;  %v2458_v26 = vld [vmem:[%s7906_s0] sm:$0xff] }
 0x292   :  { %2216 = vmatpush1.msra.mxu1 %v1845_v34  ;;  %v2521_v34 = vld [vmem:[%s7906_s0 + $0x1f8] sm:$0xff] }
 0x293   :  { %4659 = vmatmul.mubr.msk.f32.vlgmr.msra.gmra.mrb[18].mxu1 %vm1919_vm3, %v7102_v36  ;;  %5774 = vmatprep.subr.bf16.mxu1 %v6454_v18  ;;  %v5840_v37 = vpack.c.bf16 %v2521_v34, %v2520_v33  ;;  %v2476_v33 = vld [vmem:[%s7906_s0 + $0x90] sm:$0xff]  ;;  %v2477_v34 = vld [vmem:[%s7906_s0 + $0x98] sm:$0xff] }
 0x294   :  { %5776 = vmatpush3.bf16.msra.mxu1 %v5775_v40  ;;  %5333 = vmatprep.mubr.msk.f32.mxu1 %vm6455_vm10, %v6453_v8  ;;  %v2505_v40 = vld [vmem:[%s7906_s0 + $0x178] sm:$0xff] }
 0x295   :  { %5777 = vmatprep.subr.bf16.mxu1 %v6454_v18  ;;  %v5842_v41 = vpack.c.bf16 %v2505_v40, %v2504_v35  ;;  %v1847_v35 = vld [vmem:[%s6547_s27 + $0x1f0] sm:$0xff] }
 0x298   :  { %5779 = vmatpush3.bf16.msra.mxu1 %v5778_v44  ;;  %v2571_v44 = vld [vmem:[%s7906_s0 + $0x388] sm:$0xff] }
 0x299   :  { %5331 = vmatprep.subr.mxu1 %v6453_v8  ;;  %v5876_v50 = vpack.c.bf16 %v2571_v44, %v2570_v43  ;;  %v2460_v43 = vld [vmem:[%s7906_s0 + $0x10] sm:$0xff]  ;;  %v2461_v44 = vld [vmem:[%s7906_s0 + $0x18] sm:$0xff] }
 0x29c   :  { %5332 = vmatpush3.msra.mxu1 %v1849_v48 }
 0x29d   :  { %5334 = vmatmul.mubr.msk.f32.vlgmr.msra.gmra.mrb[20].mxu1 %vm1919_vm3, %v7102_v36  ;;  %5813 = vmatprep.subr.bf16.mxu1 %v5812_v51 }
 0x29e   :  { %5815 = vmatpush3.bf16.msra.mxu1 %v5814_v53  ;;  %v1581_v53 = vrot.slane %v1572_v16, %v6813_v30  ;;  %v2479_v16 = vld [vmem:[%s7906_s0 + $0xa8] sm:$0xff] }
 0x29f   :  { %5817 = vmatprep.subr.bf16.mxu1 %v5816_v57 }
 0x2a2   :  { %5819 = vmatpush3.bf16.msra.mxu1 %v5818_v59  ;;  %v1804_v59 = vld [vmem:[%s6547_s27 + $0x98] sm:$0xff] }
 0x2a3   :  { %5821 = vmatprep.subr.bf16.mxu1 %v5820_v0  ;;  %v5752_v1 = vpack.c.bf16 %v1804_v59, %v1791_v58  ;;  %v2465_v58 = vld [vmem:[%s7906_s0 + $0x38] sm:$0xff]  ;;  %v2482_v59 = vld [vmem:[%s7906_s0 + $0xc0] sm:$0xff] }
 0x2a6   :  { %5823 = vmatpush3.bf16.msra.mxu1 %v5822_v3 }
 0x2a7   :  { %5825 = vmatprep.subr.bf16.mxu1 %v5824_v31 }
 0x2aa   :  { %5827 = vmatpush3.bf16.msra.mxu1 %v5826_v7  ;;  %v1844_v7 = vld [vmem:[%s6547_s27 + $0x1d8] sm:$0xff] }
 0x2ab   :  { %5829 = vmatprep.subr.bf16.mxu1 %v5828_v11  ;;  %v1808_v11 = vld [vmem:[%s6547_s27 + $0xb8] sm:$0xff] }
 0x2ac   :  { %v5768_v15 = vpack.c.bf16 %v1808_v11, %v1795_v63  ;;  %v2470_v11 = vld [vmem:[%s7906_s0 + $0x60] sm:$0xff] }
 0x2ae   :  { %5831 = vmatpush3.bf16.msra.mxu1 %v5830_v38  ;;  %v1835_v38 = vld [vmem:[%s6547_s27 + $0x190] sm:$0xff] }
 0x2af   :  { %5833 = vmatprep.subr.bf16.mxu1 %v5832_v17  ;;  %v5770_v17 = vpack.c.bf16 %v1835_v38, %v1822_v12  ;;  %v2471_v12 = vld [vmem:[%s7906_s0 + $0x68] sm:$0xff]  ;;  %v2488_v38 = vld [vmem:[%s7906_s0 + $0xf0] sm:$0xff] }
 0x2b2   :  { %5835 = vmatpush3.bf16.msra.mxu1 %v5834_v20  ;;  %v1834_v20 = vld [vmem:[%s6547_s27 + $0x188] sm:$0xff]  ;;  %s7921_s27 = sld [smem:[#allocation23_spill]] }
 0x2b3   :  { %5837 = vmatprep.subr.bf16.mxu1 %v5836_v24  ;;  %v5772_v21 = vpack.c.bf16 %v1834_v20, %v1821_v19  ;;  %v2475_v24 = vld [vmem:[%s7906_s0 + $0x88] sm:$0xff] }
 0x2b6   :  { %5839 = vmatpush3.bf16.msra.mxu1 %v5838_v27  ;;  %v2459_v27 = vld [vmem:[%s7906_s0 + $0x8] sm:$0xff] }
 0x2b7   :  { %5841 = vmatprep.subr.bf16.mxu1 %v5840_v37  ;;  %v5780_v37 = vpack.c.bf16 %v2475_v24, %v2474_v23  ;;  %v5782_v40 = vpack.c.bf16 %v2459_v27, %v2458_v26  ;;  %v2538_v24 = vld [vmem:[%s7906_s0 + $0x280] sm:$0xff]  ;;  %v2539_v26 = vld [vmem:[%s7906_s0 + $0x288] sm:$0xff] }
 0x2ba   :  { %5843 = vmatpush3.bf16.msra.mxu1 %v5842_v41  ;;  %v5784_v41 = vpack.c.bf16 %v2477_v34, %v2476_v33  ;;  %v5844_v34 = vpack.c.bf16 %v2539_v26, %v2538_v24  ;;  %v2546_v24 = vld [vmem:[%s7906_s0 + $0x2c0] sm:$0xff]  ;;  %v2547_v26 = vld [vmem:[%s7906_s0 + $0x2c8] sm:$0xff] }
 0x2bb   :  { %5877 = vmatprep.subr.bf16.mxu1 %v5876_v50  ;;  %v5786_v50 = vpack.c.bf16 %v2461_v44, %v2460_v43  ;;  %v7263_v43 = vld [vmem:[%s7909_s13] sm:$0xff] }
 0x2bc   :  { %v1857_v44 = vrot.slane %v7263_v43, %v6810_v29 }
 0x2f1   :  { %v4903_v48 = vpop.f32.mrb[14].mxu0 }
 0x2f2   :  { %v4904_v39 = vpop.f32.mrb[15].mxu0 }
 0x2f3   :  { %v7196_v51 = vadd.f32 %v4904_v39, %v4903_v48  ;;  %v2478_v48 = vld [vmem:[%s7906_s0 + $0xa0] sm:$0xff] }
 0x2f4   :  { %v5788_v39 = vpack.c.bf16 %v2479_v16, %v2478_v48  ;;  %v1861_v48 = vrot.slane %v7263_v43, %v6813_v30 }
 0x2f7   :  { %v1661_v54 = vpop.f32.mrb[16].mxu0 }
 0x2f8   :  { %v1662_v55 = vadd.f32 %v1661_v54, %v1577_v52  ;;  %v1663_v56 = vpop.f32.mrb[17].mxu0  ;;  %v2462_v52 = vld [vmem:[%s7906_s0 + $0x20] sm:$0xff]  ;;  %v2480_v54 = vld [vmem:[%s7906_s0 + $0xb0] sm:$0xff] }
 0x2f9   :  { %v1664_v57 = vadd.f32 %v1663_v56, %v1581_v53  ;;  %v2463_v53 = vld [vmem:[%s7906_s0 + $0x28] sm:$0xff] }
 0x2fa   :  { %v1668_v60 = vmul.f32 0.01, %v1662_v55  ;;  %vm1666_vm4 = vcmp.ge.f32.partialorder %v1662_v55, 0.0  ;;  %v5790_v56 = vpack.c.bf16 %v2463_v53, %v2462_v52  ;;  %v2522_v52 = vld [vmem:[%s7906_s0 + $0x200] sm:$0xff]  ;;  %v2523_v53 = vld [vmem:[%s7906_s0 + $0x208] sm:$0xff] }
 0x2fb   :  { %v1669_v0 = vmul.f32 0.01, %v1664_v57  ;;  %vm1667_vm5 = vcmp.ge.f32.partialorder %v1664_v57, 0.0 }
 0x2fc   :  { %v1670_v31 = vsel %vm1666_vm4, %v1662_v55, %v1668_v60  ;;  %v2481_v55 = vld [vmem:[%s7906_s0 + $0xb8] sm:$0xff]  ;;  %v2483_v60 = vld [vmem:[%s7906_s0 + $0xc8] sm:$0xff] }
 0x2fd   :  { %v1671_v3 = vsel %vm1667_vm5, %v1664_v57, %v1669_v0  ;;  %v5792_v57 = vpack.c.bf16 %v2481_v55, %v2480_v54  ;;  %v5796_v62 = vpack.c.bf16 %v2483_v60, %v2482_v59  ;;  %v2466_v0 = vld [vmem:[%s7906_s0 + $0x40] sm:$0xff]  ;;  %v2540_v55 = vld [vmem:[%s7906_s0 + $0x290] sm:$0xff] }
 0x2fe   :  { %1775 = vmatprep.mubr.f32.mxu0 %v1671_v3  ;;  %v2484_v3 = vld [vmem:[%s7906_s0 + $0xd0] sm:$0xff] }
 0x2ff   :  { %1776 = vmatmul.mubr.f32.vlgmr.msra.gmra.mrb[18].mxu0 %v1670_v31  ;;  %v2468_v31 = vld [vmem:[%s7906_s0 + $0x50] sm:$0xff] }
 0x300   :  { %5753 = vmatpush1.bf16.msra.mxu0 %v5752_v1  ;;  %2200 = vmatprep.mubr.f32.mxu0 %v6453_v8  ;;  %v2467_v1 = vld [vmem:[%s7906_s0 + $0x48] sm:$0xff] }
 0x301   :  { %5755 = vmatprep.subr.bf16.mxu0 %v5754_v14  ;;  %v2485_v14 = vld [vmem:[%s7906_s0 + $0xd8] sm:$0xff]  ;;  %v5798_v4 = vpack.c.bf16 %v2467_v1, %v2466_v0  ;;  %v2542_v0 = vld [vmem:[%s7906_s0 + $0x2a0] sm:$0xff]  ;;  %v2543_v1 = vld [vmem:[%s7906_s0 + $0x2a8] sm:$0xff] }
 0x302   :  { %v5800_v5 = vpack.c.bf16 %v2485_v14, %v2484_v3  ;;  %v1865_v3 = vrot.slane %v7263_v43, %v6873_v46  ;;  %v1869_v14 = vrot.slane %v7263_v43, %v6819_v32 }
 0x304   :  { %5757 = vmatpush1.bf16.msra.mxu0 %v5756_v6  ;;  %v2469_v6 = vld [vmem:[%s7906_s0 + $0x58] sm:$0xff] }
 0x305   :  { %2144 = vmatprep.subr.mxu0 %v1844_v7  ;;  %v2486_v7 = vld [vmem:[%s7906_s0 + $0xe0] sm:$0xff]  ;;  %v5802_v10 = vpack.c.bf16 %v2469_v6, %v2468_v31  ;;  %v2527_v6 = vld [vmem:[%s7906_s0 + $0x228] sm:$0xff] }
 0x306   :  { %v5804_v63 = vpack.c.bf16 %v2487_v9, %v2486_v7  ;;  %v2526_v31 = vld [vmem:[%s7906_s0 + $0x220] sm:$0xff]  ;;  %v2544_v9 = vld [vmem:[%s7906_s0 + $0x2b0] sm:$0xff] }
 0x308   :  { %2145 = vmatpush1.msra.mxu0 %v1843_v2  ;;  %v2489_v2 = vld [vmem:[%s7906_s0 + $0xf8] sm:$0xff] }
 0x309   :  { %4658 = vmatmul.mubr.msk.f32.vlgmr.msra.gmra.mrb[20].mxu0 %vm1919_vm3, %v7102_v36  ;;  %5767 = vmatprep.subr.bf16.mxu0 %v5766_v13  ;;  %v5808_v20 = vpack.c.bf16 %v2489_v2, %v2488_v38  ;;  %v2554_v38 = vld [vmem:[%s7906_s0 + $0x300] sm:$0xff]  ;;  %v2555_v2 = vld [vmem:[%s7906_s0 + $0x308] sm:$0xff] }
 0x30a   :  { %5769 = vmatpush1.bf16.msra.mxu0 %v5768_v15  ;;  %2342 = vmatprep.mubr.f32.mxu0 %v6453_v8  ;;  %v5806_v15 = vpack.c.bf16 %v2471_v12, %v2470_v11 }
 0x30b   :  { %5771 = vmatprep.subr.bf16.mxu0 %v5770_v17  ;;  %v4649_v17 = vld [vmem:[%s7908_s9] ss:$0 sm:$0xff]  ;;  %s6458_s9 = smov [#allocation5]  }
 0x30e   :  { %5773 = vmatpush1.bf16.msra.mxu0 %v5772_v21  ;;  %v2472_v21 = vld [vmem:[%s7906_s0 + $0x70] sm:$0xff] }
 0x30f   :  { %2286 = vmatprep.subr.mxu0 %v1848_v22  ;;  %v2473_v22 = vld [vmem:[%s7906_s0 + $0x78] sm:$0xff] }
 0x310   :  { %v5810_v33 = vpack.c.bf16 %v2473_v22, %v2472_v21  ;;  %v2528_v21 = vld [vmem:[%s7906_s0 + $0x230] sm:$0xff]  ;;  %v2529_v22 = vld [vmem:[%s7906_s0 + $0x238] sm:$0xff] }
 0x312   :  { %2287 = vmatpush1.msra.mxu0 %v1847_v35 }
 0x313   :  { %4660 = vmatmul.mubr.msk.f32.vlgmr.msra.gmra.mrb[22].mxu0 %vm1919_vm3, %v7102_v36  ;;  %5781 = vmatprep.subr.bf16.mxu0 %v5780_v37  ;;  %v2464_v36 = vld [vmem:[%s7906_s0 + $0x30] sm:$0xff] }
 0x314   :  { %5783 = vmatpush3.bf16.msra.mxu0 %v5782_v40  ;;  %v5794_v61 = vpack.c.bf16 %v2465_v58, %v2464_v36  ;;  %v5846_v58 = vpack.c.bf16 %v2523_v53, %v2522_v52  ;;  %v1877_v52 = vrot.slane %v7263_v43, %v244_v45  ;;  %v2548_v53 = vld [vmem:[%s7906_s0 + $0x2d0] sm:$0xff]  ;;  %v2577_v45 = vld [vmem:[%s7906_s0 + $0x3b8] sm:$0xff] }
 0x315   :  { %5785 = vmatprep.subr.bf16.mxu0 %v5784_v41 }
 0x318   :  { %5787 = vmatpush3.bf16.msra.mxu0 %v5786_v50 }
 0x319   :  { %5789 = vmatprep.subr.bf16.mxu0 %v5788_v39 }
 0x31c   :  { %5791 = vmatpush3.bf16.msra.mxu0 %v5790_v56  ;;  %v2541_v56 = vld [vmem:[%s7906_s0 + $0x298] sm:$0xff] }
 0x31d   :  { %5793 = vmatprep.subr.bf16.mxu0 %v5792_v57  ;;  %v5848_v60 = vpack.c.bf16 %v2541_v56, %v2540_v55 }
 0x320   :  { %5795 = vmatpush3.bf16.msra.mxu0 %v5794_v61  ;;  %v2524_v61 = vld [vmem:[%s7906_s0 + $0x210] sm:$0xff] }
 0x321   :  { %5797 = vmatprep.subr.bf16.mxu0 %v5796_v62  ;;  %v2525_v62 = vld [vmem:[%s7906_s0 + $0x218] sm:$0xff] }
 0x324   :  { %5799 = vmatpush3.bf16.msra.mxu0 %v5798_v4  ;;  %v5850_v4 = vpack.c.bf16 %v2525_v62, %v2524_v61  ;;  %v2576_v61 = vld [vmem:[%s7906_s0 + $0x3b0] sm:$0xff] }
 0x325   :  { %5801 = vmatprep.subr.bf16.mxu0 %v5800_v5  ;;  %v5852_v5 = vpack.c.bf16 %v2543_v1, %v2542_v0  ;;  %v2532_v0 = vld [vmem:[%s7906_s0 + $0x250] sm:$0xff]  ;;  %v2533_v1 = vld [vmem:[%s7906_s0 + $0x258] sm:$0xff] }
 0x328   :  { %v4868_v13 = vpop.f32.mrb[8].mxu1  ;;  %5803 = vmatpush3.bf16.msra.mxu0 %v5802_v10  ;;  %v2545_v10 = vld [vmem:[%s7906_s0 + $0x2b8] sm:$0xff] }
 0x329   :  { %v4869_v19 = vpop.f32.mrb[9].mxu1  ;;  %5805 = vmatprep.subr.bf16.mxu0 %v5804_v63 }
 0x32a   :  { %v4870_v23 = vadd.f32 %v4869_v19, %v4868_v13  ;;  %v5854_v13 = vpack.c.bf16 %v2527_v6, %v2526_v31  ;;  %v2573_v19 = vld [vmem:[%s7906_s0 + $0x398] sm:$0xff]  ;;  %v5888_v6 = vpack.c.bf16 %v2577_v45, %v2576_v61  ;;  %v2587_v61 = vld [vmem:[%s7906_s0 + $0x408] sm:$0xff] }
 0x32c   :  { %v1419_v27 = vadd.f32 %v4870_v23, %v4649_v17  ;;  %5807 = vmatpush3.bf16.msra.mxu0 %v5806_v15  ;;  %v2572_v17 = vld [vmem:[%s7906_s0 + $0x390] sm:$0xff] }
 0x32d   :  { %5809 = vmatprep.subr.bf16.mxu0 %v5808_v20  ;;  %v5856_v20 = vpack.c.bf16 %v2545_v10, %v2544_v9  ;;  %v2561_v9 = vld [vmem:[%s7906_s0 + $0x338] sm:$0xff]  ;;  %v5866_v10 = vpack.c.bf16 %v2533_v1, %v2532_v0 }
 0x32e   :  { %v1489_v35 = vadd.f32 %v7196_v51, %v1419_v27  ;;  %v2605_v0 = vld [vmem:[%s7906_s0 + $0x498] sm:$0xff] }
 0x330   :  { %5811 = vmatpush3.bf16.msra.mxu0 %v5810_v33  ;;  %v5878_v33 = vpack.c.bf16 %v2555_v2, %v2554_v38  ;;  %v7319_v38 = vld [vmem:[%s7909_s13 + $0x8] sm:$0x1f]  ;;  %s4582_s13 = sshll.u32 %s6458_s9, 4  ;;  %s4583_s13 = int_to_ptr.vmem [resolvable:$true] %s4582_s13 }
 0x331   :  { %5845 = vmatprep.subr.bf16.mxu0 %v5844_v34 }
 0x33e   :  { %v1558_v37 = vpop.f32.mrb[10].mxu1 }
 0x33f   :  { %v7260_v40 = vadd.f32 %v1558_v37, %v1489_v35  ;;  %v5322_v41 = vpop.f32.mrb[11].mxu1  ;;  %v5880_v35 = vpack.c.bf16 %v2573_v19, %v2572_v17  ;;  %v2556_v37 = vld [vmem:[%s7906_s0 + $0x310] sm:$0xff] }
 0x340   :  { %v2557_v41 = vld [vmem:[%s7906_s0 + $0x318] sm:$0xff]  ;;  %v2552_v19 = vld [vmem:[%s7906_s0 + $0x2f0] sm:$0xff] }
 0x341   :  { %v5882_v55 = vpack.c.bf16 %v2557_v41, %v2556_v37  ;;  %v2536_v41 = vld [vmem:[%s7906_s0 + $0x270] sm:$0xff] }
 0x348   :  { %v1989_v16 = vpop.f32.mrb[12].mxu1 }
 0x349   :  { %v1990_v50 = vadd.f32 %v1989_v16, %v1857_v44  ;;  %v1991_v51 = vpop.f32.mrb[13].mxu1  ;;  %v5858_v44 = vpack.c.bf16 %v2529_v22, %v2528_v21  ;;  %v2575_v16 = vld [vmem:[%s7906_s0 + $0x3a8] sm:$0xff] }
 0x34a   :  { %v1992_v39 = vadd.f32 %v1991_v51, %v1861_v48  ;;  %v2574_v48 = vld [vmem:[%s7906_s0 + $0x3a0] sm:$0xff] }
 0x34b   :  { %vm2419_vm6 = vcmp.ge.f32.partialorder %v1990_v50, 0.0  ;;  %v2432_v54 = vmul.f32 0.01, %v1990_v50  ;;  %v2530_v51 = vld [vmem:[%s7906_s0 + $0x240] sm:$0xff] }
 0x34c   :  { %v2433_v57 = vmul.f32 0.01, %v1992_v39  ;;  %vm2420_vm7 = vcmp.ge.f32.partialorder %v1992_v39, 0.0 }
 0x34d   :  { %v2445_v36 = vsel %vm2419_vm6, %v1990_v50, %v2432_v54  ;;  %v5860_v50 = vpack.c.bf16 %v2547_v26, %v2546_v24  ;;  %v2549_v54 = vld [vmem:[%s7906_s0 + $0x2d8] sm:$0xff]  ;;  %v2563_v24 = vld [vmem:[%s7906_s0 + $0x348] sm:$0xff]  ;;  %v1893_v26 = vrot.slane %v7319_v38, %v6813_v30  ;;  %vm1562_vm6 = vcmp.ge.f32.partialorder %v7260_v40, 0.0 }
 0x34e   :  { %v2446_v59 = vsel %vm2420_vm7, %v1992_v39, %v2433_v57  ;;  %v2531_v39 = vld [vmem:[%s7906_s0 + $0x248] sm:$0xff]  ;;  %v5884_v57 = vpack.c.bf16 %v2575_v16, %v2574_v48  ;;  %v5864_v62 = vpack.c.bf16 %v2549_v54, %v2548_v53  ;;  %v2602_v16 = vld [vmem:[%s7906_s0 + $0x480] sm:$0xff]  ;;  %v2564_v53 = vld [vmem:[%s7906_s0 + $0x350] sm:$0xff] }
 0x34f   :  { %2733 = vmatprep.mubr.f32.mxu0 %v2446_v59  ;;  %v5862_v59 = vpack.c.bf16 %v2531_v39, %v2530_v51  ;;  %v2565_v54 = vld [vmem:[%s7906_s0 + $0x358] sm:$0xff] }
 0x350   :  { %2734 = vmatmul.mubr.f32.vlgmr.msra.gmra.mrb[24].mxu0 %v2445_v36  ;;  %v2558_v36 = vld [vmem:[%s7906_s0 + $0x320] sm:$0xff]  ;;  %v5898_v1 = vpack.c.bf16 %v2565_v54, %v2564_v53  ;;  %v2595_v54 = vld [vmem:[%s7906_s0 + $0x448] sm:$0xff] }
 0x351   :  { %5847 = vmatpush3.bf16.msra.mxu0 %v5846_v58  ;;  %v2559_v58 = vld [vmem:[%s7906_s0 + $0x328] sm:$0xff]  ;;  %v2594_v53 = vld [vmem:[%s7906_s0 + $0x440] sm:$0xff] }
 0x352   :  { %5849 = vmatprep.subr.bf16.mxu0 %v5848_v60  ;;  %v2060_v7 = vpop.f32.mrb[14].mxu1 }
 0x353   :  { %v2061_v63 = vadd.f32 %v2060_v7, %v1865_v3  ;;  %v2062_v11 = vpop.f32.mrb[15].mxu1  ;;  %v2560_v7 = vld [vmem:[%s7906_s0 + $0x330] sm:$0xff] }
 0x354   :  { %v2063_v12 = vadd.f32 %v2062_v11, %v1869_v14  ;;  %v2550_v14 = vld [vmem:[%s7906_s0 + $0x2e0] sm:$0xff]  ;;  %v5890_v21 = vpack.c.bf16 %v2561_v9, %v2560_v7  ;;  %v2585_v7 = vld [vmem:[%s7906_s0 + $0x3f8] sm:$0xff] }
 0x355   :  { %5851 = vmatpush3.bf16.msra.mxu0 %v5850_v4  ;;  %vm2421_vm8 = vcmp.ge.f32.partialorder %v2061_v63, 0.0  ;;  %v2434_v15 = vmul.f32 0.01, %v2061_v63  ;;  %v2551_v4 = vld [vmem:[%s7906_s0 + $0x2e8] sm:$0xff]  ;;  %v2578_v11 = vld [vmem:[%s7906_s0 + $0x3c0] sm:$0xff] }
 0x356   :  { %5853 = vmatprep.subr.bf16.mxu0 %v5852_v5  ;;  %v2435_v23 = vmul.f32 0.01, %v2063_v12  ;;  %vm2422_vm9 = vcmp.ge.f32.partialorder %v2063_v12, 0.0  ;;  %v5886_v5 = vpack.c.bf16 %v2559_v58, %v2558_v36  ;;  %v5868_v2 = vpack.c.bf16 %v2551_v4, %v2550_v14  ;;  %v2582_v36 = vld [vmem:[%s7906_s0 + $0x3e0] sm:$0xff]  ;;  %v2583_v58 = vld [vmem:[%s7906_s0 + $0x3e8] sm:$0xff] }
 0x357   :  { %v2447_v27 = vsel %vm2421_vm8, %v2061_v63, %v2434_v15  ;;  %v1873_v63 = vrot.slane %v7263_v43, %v6915_v49  ;;  %v2535_v15 = vld [vmem:[%s7906_s0 + $0x268] sm:$0xff]  ;;  %v2566_v14 = vld [vmem:[%s7906_s0 + $0x360] sm:$0xff]  ;;  %vm3192_vm8 = vcmask 818176  }
 0x358   :  { %v2448_v34 = vsel %vm2422_vm9, %v2063_v12, %v2435_v23  ;;  %v2579_v12 = vld [vmem:[%s7906_s0 + $0x3c8] sm:$0xff]  ;;  %v2562_v23 = vld [vmem:[%s7906_s0 + $0x340] sm:$0xff] }
 0x359   :  { %5855 = vmatpush3.bf16.msra.mxu0 %v5854_v13  ;;  %2803 = vmatprep.mubr.f32.mxu1 %v2448_v34  ;;  %v2534_v13 = vld [vmem:[%s7906_s0 + $0x260] sm:$0xff]  ;;  %v5892_v22 = vpack.c.bf16 %v2579_v12, %v2578_v11  ;;  %v2580_v34 = vld [vmem:[%s7906_s0 + $0x3d0] sm:$0xff]  ;;  %v5894_v51 = vpack.c.bf16 %v2563_v24, %v2562_v23  ;;  %v2567_v4 = vld [vmem:[%s7906_s0 + $0x368] sm:$0xff] }
 0x35a   :  { %5857 = vmatprep.subr.bf16.mxu0 %v5856_v20  ;;  %2804 = vmatmul.mubr.f32.vlgmr.msra.gmra.mrb[22].mxu1 %v2447_v27  ;;  %v2553_v20 = vld [vmem:[%s7906_s0 + $0x2f8] sm:$0xff]  ;;  %v2606_v12 = vld [vmem:[%s7906_s0 + $0x4a0] sm:$0xff] }
 0x35b   :  { %5879 = vmatpush3.bf16.msra.mxu1 %v5878_v33  ;;  %v5870_v33 = vpack.c.bf16 %v2535_v15, %v2534_v13  ;;  %v5872_v37 = vpack.c.bf16 %v2553_v20, %v2552_v19  ;;  %v5902_v13 = vpack.c.bf16 %v2567_v4, %v2566_v14  ;;  %v2569_v19 = vld [vmem:[%s7906_s0 + $0x378] sm:$0xff]  ;;  %v2590_v24 = vld [vmem:[%s7906_s0 + $0x420] sm:$0xff]  ;;  %v2599_v4 = vld [vmem:[%s7906_s0 + $0x468] sm:$0xff] }
 0x35c   :  { %v2131_v56 = vpop.f32.mrb[16].mxu1  ;;  %5881 = vmatprep.subr.bf16.mxu1 %v5880_v35  ;;  %v2581_v35 = vld [vmem:[%s7906_s0 + $0x3d8] sm:$0xff]  ;;  %v2598_v14 = vld [vmem:[%s7906_s0 + $0x460] sm:$0xff] }
 0x35d   :  { %5859 = vmatpush3.bf16.msra.mxu0 %v5858_v44  ;;  %v2133_v60 = vpop.f32.mrb[17].mxu1  ;;  %v2132_v27 = vadd.f32 %v2131_v56, %v1873_v63  ;;  %v2537_v44 = vld [vmem:[%s7906_s0 + $0x278] sm:$0xff] }
 0x35e   :  { %5861 = vmatprep.subr.bf16.mxu0 %v5860_v50  ;;  %v2134_v3 = vadd.f32 %v2133_v60, %v1877_v52  ;;  %v2603_v50 = vld [vmem:[%s7906_s0 + $0x488] sm:$0xff]  ;;  %v5896_v52 = vpack.c.bf16 %v2581_v35, %v2580_v34  ;;  %v2586_v60 = vld [vmem:[%s7906_s0 + $0x400] sm:$0xff]  ;;  %v2589_v63 = vld [vmem:[%s7906_s0 + $0x418] sm:$0xff] }
 0x35f   :  { %5883 = vmatpush3.bf16.msra.mxu1 %v5882_v55  ;;  %v2436_v56 = vmul.f32 0.01, %v2132_v27  ;;  %vm2423_vm12 = vcmp.ge.f32.partialorder %v2132_v27, 0.0 }
 0x360   :  { %v2437_v31 = vmul.f32 0.01, %v2134_v3  ;;  %vm2424_vm11 = vcmp.ge.f32.partialorder %v2134_v3, 0.0  ;;  %5885 = vmatprep.subr.bf16.mxu1 %v5884_v57  ;;  %v5874_v57 = vpack.c.bf16 %v2537_v44, %v2536_v41  ;;  %v2592_v44 = vld [vmem:[%s7906_s0 + $0x430] sm:$0xff] }
 0x361   :  { %5863 = vmatpush3.bf16.msra.mxu0 %v5862_v59  ;;  %v5908_v59 = vpack.c.bf16 %v2603_v50, %v2602_v16  ;;  %v2593_v16 = vld [vmem:[%s7906_s0 + $0x438] sm:$0xff]  ;;  %v2610_v50 = vld [vmem:[%s7906_s0 + $0x4c0] sm:$0xff] }
 0x362   :  { %5865 = vmatprep.subr.bf16.mxu0 %v5864_v62  ;;  %v2450_v17 = vsel %vm2424_vm11, %v2134_v3, %v2437_v31  ;;  %v2604_v62 = vld [vmem:[%s7906_s0 + $0x490] sm:$0xff]  ;;  %v5900_v3 = vpack.c.bf16 %v2583_v58, %v2582_v36  ;;  %v5910_v31 = vpack.c.bf16 %v2587_v61, %v2586_v60  ;;  %v2614_v60 = vld [vmem:[%s7906_s0 + $0x4e0] sm:$0xff]  ;;  %v2615_v61 = vld [vmem:[%s7906_s0 + $0x4e8] sm:$0xff]  ;;  %vm3490_vm11 = vcmask 687104  }
 0x363   :  { %2873 = vmatprep.mubr.f32.mxu0 %v2450_v17  ;;  %5887 = vmatpush3.bf16.msra.mxu1 %v5886_v5  ;;  %v2449_v5 = vsel %vm2423_vm12, %v2132_v27, %v2436_v56  ;;  %v5912_v9 = vpack.c.bf16 %v2605_v0, %v2604_v62  ;;  %v2568_v17 = vld [vmem:[%s7906_s0 + $0x370] sm:$0xff]  ;;  %v2613_v56 = vld [vmem:[%s7906_s0 + $0x4d8] sm:$0xff]  ;;  %vm3379_vm12 = vcmask 1042432  }
 0x364   :  { %5889 = vmatprep.subr.bf16.mxu1 %v5888_v6  ;;  %v2584_v6 = vld [vmem:[%s7906_s0 + $0x3f0] sm:$0xff]  ;;  %v5906_v34 = vpack.c.bf16 %v2569_v19, %v2568_v17  ;;  %v2653_v19 = vld [vmem:[%s7906_s0 + $0x618] sm:$0xff] }
 0x365   :  { %5867 = vmatpush3.bf16.msra.mxu0 %v5866_v10  ;;  %v2588_v10 = vld [vmem:[%s7906_s0 + $0x410] sm:$0xff]  ;;  %v5904_v15 = vpack.c.bf16 %v2585_v7, %v2584_v6  ;;  %v5934_v7 = vpack.c.bf16 %v2599_v4, %v2598_v14  ;;  %v2622_v14 = vld [vmem:[%s7906_s0 + $0x520] sm:$0xff]  ;;  %v2623_v4 = vld [vmem:[%s7906_s0 + $0x528] sm:$0xff] }
 0x366   :  { %5869 = vmatprep.subr.bf16.mxu0 %v5868_v2  ;;  %v7333_v48 = vpop.f32.mrb[18].mxu1  ;;  %v2607_v2 = vld [vmem:[%s7906_s0 + $0x4a8] sm:$0xff]  ;;  %v5914_v20 = vpack.c.bf16 %v2589_v63, %v2588_v10  ;;  %v2608_v27 = vld [vmem:[%s7906_s0 + $0x4b0] sm:$0xff]  ;;  %v2601_v63 = vld [vmem:[%s7906_s0 + $0x478] sm:$0xff] }
 0x367   :  { %5891 = vmatpush3.bf16.msra.mxu1 %v5890_v21  ;;  %v2275_v39 = vpop.f32.mrb[19].mxu1  ;;  %v2634_v21 = vld [vmem:[%s7906_s0 + $0x580] sm:$0xff]  ;;  %v5916_v23 = vpack.c.bf16 %v2607_v2, %v2606_v12  ;;  %v2596_v58 = vld [vmem:[%s7906_s0 + $0x450] sm:$0xff] }
 0x368   :  { %5893 = vmatprep.subr.bf16.mxu1 %v5892_v22  ;;  %v2276_v55 = vadd.f32 %v2275_v39, %v1893_v26  ;;  %v2635_v22 = vld [vmem:[%s7906_s0 + $0x588] sm:$0xff]  ;;  %v5922_v39 = vpack.c.bf16 %v2593_v16, %v2592_v44  ;;  %v2600_v10 = vld [vmem:[%s7906_s0 + $0x470] sm:$0xff]  ;;  %v2650_v2 = vld [vmem:[%s7906_s0 + $0x600] sm:$0xff]  ;;  %v1881_v16 = vrot.slane %v7263_v43, %v248_v42 }
 0x369   :  { %5871 = vmatpush3.bf16.msra.mxu0 %v5870_v33  ;;  %v2591_v26 = vld [vmem:[%s7906_s0 + $0x428] sm:$0xff]  ;;  %v2609_v33 = vld [vmem:[%s7906_s0 + $0x4b8] sm:$0xff]  ;;  %v5940_v35 = vpack.c.bf16 %v2635_v22, %v2634_v21  ;;  %v5938_v12 = vpack.c.bf16 %v2601_v63, %v2600_v10  ;;  %v1905_v21 = vrot.slane %v7319_v38, %v6915_v49  ;;  %v2654_v22 = vld [vmem:[%s7906_s0 + $0x620] sm:$0xff]  ;;  %v5950_v10 = vpack.c.bf16 %v2623_v4, %v2622_v14 }
 0x36a   :  { %5873 = vmatprep.subr.bf16.mxu0 %v5872_v37  ;;  %v2441_v45 = vmul.f32 0.01, %v2276_v55  ;;  %vm2428_vm14 = vcmp.ge.f32.partialorder %v2276_v55, 0.0  ;;  %v5918_v37 = vpack.c.bf16 %v2591_v26, %v2590_v24  ;;  %v5920_v41 = vpack.c.bf16 %v2609_v33, %v2608_v27  ;;  %v2656_v27 = vld [vmem:[%s7906_s0 + $0x630] sm:$0xff]  ;;  %v2657_v33 = vld [vmem:[%s7906_s0 + $0x638] sm:$0xff] }
 0x36b   :  { %5895 = vmatpush3.bf16.msra.mxu1 %v5894_v51  ;;  %v2611_v51 = vld [vmem:[%s7906_s0 + $0x4c8] sm:$0xff]  ;;  %v2625_v63 = vld [vmem:[%s7906_s0 + $0x538] sm:$0xff]  ;;  %v3168_v4 = vld [vmem:[%s7912_s25 + $0x10] sm:$0xff] }
 0x36c   :  { %5897 = vmatprep.subr.bf16.mxu1 %v5896_v52  ;;  %v2454_v11 = vsel %vm2428_vm14, %v2276_v55, %v2441_v45  ;;  %v5924_v52 = vpack.c.bf16 %v2611_v51, %v2610_v50  ;;  %v2612_v55 = vld [vmem:[%s7906_s0 + $0x4d0] sm:$0xff]  ;;  %v1885_v50 = vrot.slane %v7263_v43, %v252_v47  ;;  %vm6456_vm14 = vmmov 1  }
 0x36d   :  { %5875 = vmatpush3.bf16.msra.mxu0 %v5874_v57  ;;  %v5926_v57 = vpack.c.bf16 %v2595_v54, %v2594_v53  ;;  %v5928_v36 = vpack.c.bf16 %v2613_v56, %v2612_v55  ;;  %v2618_v54 = vld [vmem:[%s7906_s0 + $0x500] sm:$0xff]  ;;  %v2619_v55 = vld [vmem:[%s7906_s0 + $0x508] sm:$0xff]  ;;  %v2620_v43 = vld [vmem:[%s7906_s0 + $0x510] sm:$0xff] }
 0x36e   :  { %5909 = vmatprep.subr.bf16.mxu0 %v5908_v59  ;;  %v2597_v59 = vld [vmem:[%s7906_s0 + $0x458] sm:$0xff]  ;;  %v5942_v42 = vpack.c.bf16 %v2619_v55, %v2618_v54 }
 0x36f   :  { %5899 = vmatpush3.bf16.msra.mxu1 %v5898_v1  ;;  %v5930_v0 = vpack.c.bf16 %v2597_v59, %v2596_v58  ;;  %v1889_v1 = vrot.slane %v7319_v38, %v6810_v29  ;;  %v2621_v59 = vld [vmem:[%s7906_s0 + $0x518] sm:$0xff] }
 0x370   :  { %2874 = vmatmul.mubr.f32.vlgmr.msra.gmra.mrb[26].mxu0 %v2449_v5  ;;  %5901 = vmatprep.subr.bf16.mxu1 %v5900_v3  ;;  %v2415_v45 = vpop.f32.mrb[20].mxu1  ;;  %v5932_v3 = vpack.c.bf16 %v2615_v61, %v2614_v60  ;;  %v2616_v5 = vld [vmem:[%s7906_s0 + $0x4f0] sm:$0xff]  ;;  %v2638_v61 = vld [vmem:[%s7906_s0 + $0x5a0] sm:$0xff] }
 0x371   :  { %5911 = vmatpush3.bf16.msra.mxu0 %v5910_v31  ;;  %3013 = vmatprep.mubr.f32.mxu0 %v2454_v11  ;;  %v5335_v62 = vpop.f32.mrb[21].mxu1  ;;  %v2617_v31 = vld [vmem:[%s7906_s0 + $0x4f8] sm:$0xff]  ;;  %v2274_v6 = vadd.f32 %v7333_v48, %v1889_v1  ;;  %v2652_v48 = vld [vmem:[%s7906_s0 + $0x610] sm:$0xff]  ;;  %v2416_v26 = vadd.f32 %v2415_v45, %v1905_v21  ;;  %v2639_v45 = vld [vmem:[%s7906_s0 + $0x5a8] sm:$0xff]  ;;  %v5946_v1 = vpack.c.bf16 %v2621_v59, %v2620_v43 }
 0x372   :  { %5913 = vmatprep.subr.bf16.mxu0 %v5912_v9  ;;  %v5936_v9 = vpack.c.bf16 %v2617_v31, %v2616_v5  ;;  %v1897_v62 = vrot.slane %v7319_v38, %v6873_v46  ;;  %v2640_v31 = vld [vmem:[%s7906_s0 + $0x5b0] sm:$0xff]  ;;  %v2645_v21 = vld [vmem:[%s7906_s0 + $0x5d8] sm:$0xff] }
 0x373   :  { %5903 = vmatpush3.bf16.msra.mxu1 %v5902_v13  ;;  %v2440_v11 = vmul.f32 0.01, %v2274_v6  ;;  %vm2427_vm15 = vcmp.ge.f32.partialorder %v2274_v6, 0.0  ;;  %v2651_v13 = vld [vmem:[%s7906_s0 + $0x608] sm:$0xff]  ;;  %vm2431_vm0 = vcmp.ge.f32.partialorder %v2416_v26, 0.0 }
 0x374   :  { %5905 = vmatprep.subr.bf16.mxu1 %v5904_v15  ;;  %v5973_v17 = vpack.c.bf16 %v2651_v13, %v2650_v2  ;;  %v2643_v2 = vld [vmem:[%s7906_s0 + $0x5c8] sm:$0xff] }
 0x375   :  { %5915 = vmatpush3.bf16.msra.mxu0 %v5914_v20  ;;  %v2453_v15 = vsel %vm2427_vm15, %v2274_v6, %v2440_v11  ;;  %v5976_v20 = vpack.c.bf16 %v2653_v19, %v2652_v48  ;;  %v2641_v6 = vld [vmem:[%s7906_s0 + $0x5b8] sm:$0xff]  ;;  %v2626_v48 = vld [vmem:[%s7906_s0 + $0x540] sm:$0xff]  ;;  %v2627_v19 = vld [vmem:[%s7906_s0 + $0x548] sm:$0xff] }
 0x376   :  { %5917 = vmatprep.subr.bf16.mxu0 %v5916_v23  ;;  %v2655_v23 = vld [vmem:[%s7906_s0 + $0x628] sm:$0xff]  ;;  %vm6037_vm15 = vmpackc.low %vm3379_vm12, %vm6456_vm14 }
 0x377   :  { %5907 = vmatpush3.bf16.msra.mxu1 %v5906_v34  ;;  %v5979_v24 = vpack.c.bf16 %v2655_v23, %v2654_v22  ;;  %v2444_v34 = vmul.f32 0.01, %v2416_v26  ;;  %v5958_v22 = vpack.c.bf16 %v2627_v19, %v2626_v48  ;;  %v3187_v48 = vld [vmem:[%s7911_s21 + $0x40] sm:$0xff]  ;;  %v3188_v19 = vld [vmem:[%s7911_s21 + $0x48] sm:$0xff] }
 0x378   :  { %5941 = vmatprep.subr.bf16.mxu1 %v5940_v35  ;;  %v5982_v35 = vpack.c.bf16 %v2657_v33, %v2656_v27  ;;  %v2646_v27 = vld [vmem:[%s7906_s0 + $0x5e0] sm:$0xff]  ;;  %v2647_v33 = vld [vmem:[%s7906_s0 + $0x5e8] sm:$0xff] }
 0x379   :  { %5919 = vmatpush3.bf16.msra.mxu0 %v5918_v37  ;;  %v2457_v49 = vsel %vm2431_vm0, %v2416_v26, %v2444_v34  ;;  %v2629_v26 = vld [vmem:[%s7906_s0 + $0x558] sm:$0xff] }
 0x37a   :  { %5921 = vmatprep.subr.bf16.mxu0 %v5920_v41 }
 0x37d   :  { %5923 = vmatpush3.bf16.msra.mxu0 %v5922_v39 }
 0x37e   :  { %5925 = vmatprep.subr.bf16.mxu0 %v5924_v52 }
 0x381   :  { %5927 = vmatpush3.bf16.msra.mxu0 %v5926_v57  ;;  %v2636_v57 = vld [vmem:[%s7906_s0 + $0x590] sm:$0xff] }
 0x382   :  { %5929 = vmatprep.subr.bf16.mxu0 %v5928_v36  ;;  %v2637_v36 = vld [vmem:[%s7906_s0 + $0x598] sm:$0xff] }
 0x383   :  { %v5944_v47 = vpack.c.bf16 %v2637_v36, %v2636_v57 }
 0x385   :  { %5931 = vmatpush3.bf16.msra.mxu0 %v5930_v0  ;;  %v1901_v0 = vrot.slane %v7319_v38, %v6819_v32  ;;  %v5952_v32 = vpack.c.bf16 %v2641_v6, %v2640_v31  ;;  %v2624_v38 = vld [vmem:[%s7906_s0 + $0x530] sm:$0xff]  ;;  %v3169_v31 = vld [vmem:[%s7912_s25 + $0x18] sm:$0xff]  ;;  %v3183_v6 = vld [vmem:[%s7911_s21 + $0x20] sm:$0xff] }
 0x386   :  { %5933 = vmatprep.subr.bf16.mxu0 %v5932_v3  ;;  %v5948_v3 = vpack.c.bf16 %v2639_v45, %v2638_v61  ;;  %v3180_v61 = vld [vmem:[%s7911_s21 + $0x8] sm:$0xff]  ;;  %v3181_v45 = vld [vmem:[%s7911_s21 + $0x10] sm:$0xff] }
 0x389   :  { %5935 = vmatpush3.bf16.msra.mxu0 %v5934_v7 }
 0x38a   :  { %5937 = vmatprep.subr.bf16.mxu0 %v5936_v9 }
 0x38d   :  { %5939 = vmatpush3.bf16.msra.mxu0 %v5938_v12  ;;  %v2642_v12 = vld [vmem:[%s7906_s0 + $0x5c0] sm:$0xff] }
 0x38e   :  { %5972 = vmatprep.subr.bf16.mxu0 %v6454_v18 }
 0x390   :  { %3014 = vmatmul.mubr.f32.vlgmr.msra.gmra.mrb[28].mxu0 %v2453_v15  ;;  %v5954_v15 = vpack.c.bf16 %v2625_v63, %v2624_v38 }
 0x391   :  { %5974 = vmatpush3.bf16.msra.mxu0 %v5973_v17  ;;  %5352 = vmatprep.mubr.msk.f32.mxu0 %vm6455_vm10, %v6453_v8  ;;  %v5956_v17 = vpack.c.bf16 %v2643_v2, %v2642_v12  ;;  %v3185_v12 = vld [vmem:[%s7911_s21 + $0x30] sm:$0xff]  ;;  %v3186_v2 = vld [vmem:[%s7911_s21 + $0x38] sm:$0xff] }
 0x392   :  { %5975 = vmatprep.subr.bf16.mxu0 %v6454_v18 }
 0x395   :  { %5977 = vmatpush3.bf16.msra.mxu0 %v5976_v20  ;;  %v2644_v20 = vld [vmem:[%s7906_s0 + $0x5d0] sm:$0xff] }
 0x396   :  { %5978 = vmatprep.subr.bf16.mxu0 %v6454_v18  ;;  %v5960_v23 = vpack.c.bf16 %v2645_v21, %v2644_v20  ;;  %v5997_v20 = vpack.c.bf16 %v3188_v19, %v3187_v48  ;;  %v3172_v21 = vld [vmem:[%s7912_s25 + $0x30] sm:$0xff] }
 0x399   :  { %5980 = vmatpush3.bf16.msra.mxu0 %v5979_v24  ;;  %v2628_v24 = vld [vmem:[%s7906_s0 + $0x550] sm:$0xff] }
 0x39a   :  { %5981 = vmatprep.subr.bf16.mxu0 %v6454_v18  ;;  %v5962_v34 = vpack.c.bf16 %v2629_v26, %v2628_v24  ;;  %v3189_v24 = vld [vmem:[%s7911_s21 + $0x50] sm:$0xff]  ;;  %v3190_v26 = vld [vmem:[%s7911_s21 + $0x58] sm:$0xff] }
 0x39d   :  { %5983 = vmatpush3.bf16.msra.mxu0 %v5982_v35  ;;  %v5964_v35 = vpack.c.bf16 %v2647_v33, %v2646_v27  ;;  %v6000_v27 = vpack.c.bf16 %v3190_v26, %v3189_v24  ;;  %v3174_v33 = vld [vmem:[%s7912_s25 + $0x40] sm:$0xff] }
 0x39e   :  { %6002 = vmatprep.subr.bf16.mxu0 %v6454_v18 }
 0x3a0   :  { %5353 = vmatmul.mubr.msk.f32.vlgmr.msra.gmra.mrb[30].mxu0 %vm2665_vm1, %v2457_v49  ;;  %v2630_v49 = vld [vmem:[%s7906_s0 + $0x560] sm:$0xff]  ;;  %vm3375_vm1 = vcmask 744448  }
 0x3a1   :  { %5410 = vmatprep.mubr.msk.f32.mxu0 %vm6455_vm10, %v6453_v8 }
 0x3d2   :  { %v4950_v37 = vpop.f32.mrb[18].mxu0 }
 0x3d3   :  { %v4951_v41 = vpop.f32.mrb[19].mxu0 }
 0x3d4   :  { %v7402_v44 = vadd.f32 %v4951_v41, %v4950_v37  ;;  %v2631_v37 = vld [vmem:[%s7906_s0 + $0x568] sm:$0xff]  ;;  %v2648_v41 = vld [vmem:[%s7906_s0 + $0x5f0] sm:$0xff] }
 0x3dc   :  { %v2202_v51 = vpop.f32.mrb[20].mxu0 }
 0x3dd   :  { %v2203_v39 = vadd.f32 %v2202_v51, %v1881_v16  ;;  %v2204_v52 = vpop.f32.mrb[21].mxu0  ;;  %v2649_v16 = vld [vmem:[%s7906_s0 + $0x5f8] sm:$0xff] }
 0x3de   :  { %v2205_v53 = vadd.f32 %v2204_v52, %v1885_v50  ;;  %v5966_v50 = vpack.c.bf16 %v2631_v37, %v2630_v49  ;;  %v5968_v51 = vpack.c.bf16 %v2649_v16, %v2648_v41  ;;  %v2633_v52 = vld [vmem:[%s7906_s0 + $0x578] sm:$0xff]  ;;  %v3176_v49 = vld [vmem:[%s7912_s25 + $0x50] sm:$0xff]  ;;  %v3191_v41 = vld [vmem:[%s7911_s21 + $0x60] sm:$0xf] }
 0x3df   :  { %v2438_v56 = vmul.f32 0.01, %v2203_v39  ;;  %vm2425_vm2 = vcmp.ge.f32.partialorder %v2203_v39, 0.0  ;;  %v3177_v37 = vld [vmem:[%s7912_s25 + $0x58] sm:$0xff] }
 0x3e0   :  { %v2439_v58 = vmul.f32 0.01, %v2205_v53  ;;  %vm2426_vm3 = vcmp.ge.f32.partialorder %v2205_v53, 0.0  ;;  %v6018_v16 = vpack.c.bf16 %v3177_v37, %v3176_v49  ;;  %v3471_v49 = vld [vmem:[%s7913_s29 + $0x78] sm:$0xff] }
 0x3e1   :  { %v2451_v60 = vsel %vm2425_vm2, %v2203_v39, %v2438_v56  ;;  %v2632_v39 = vld [vmem:[%s7906_s0 + $0x570] sm:$0xff]  ;;  %s6457_s0 = smov [#allocation3]  }
 0x3e2   :  { %v2452_v28 = vsel %vm2426_vm3, %v2205_v53, %v2439_v58  ;;  %v5970_v53 = vpack.c.bf16 %v2633_v52, %v2632_v39  ;;  %v4662_v58 = vld [vmem:[%s7910_s17] ss:$0 sm:$0xff]  ;;  %v3457_v39 = vld [vmem:[%s7913_s29 + $0x8] sm:$0xff]  ;;  %v3459_v52 = vld [vmem:[%s7913_s29 + $0x18] sm:$0xff]  ;;  %vm3639_vm3 = vcmask 588800   ;;  %s4572_s5 = sshll.u32 %s6457_s0, 4  ;;  %s4573_s5 = int_to_ptr.vmem [resolvable:$true] %s4572_s5 }
 0x3e3   :  { %2943 = vmatprep.mubr.f32.mxu1 %v2452_v28  ;;  %s6360_s17 = scalar_lea.vmem %s4573_s5, 32  ;;  %p6365_p1 = scmp.lt.s32.totalorder %s4573_s5, %s4573_s5 }
 0x3e4   :  { %2944 = vmatmul.mubr.f32.vlgmr.msra.gmra.mrb[24].mxu1 %v2451_v60  ;;  %v3179_v60 = vld [vmem:[%s7911_s21] sm:$0xff]  ;;  %p6361_p0 = scmp.ne.s32.totalorder %s4573_s5, %s6360_s17  ;;  %p6366_p2 = scmp.lt.s32.totalorder %s6360_s17, %s6360_s17 }
 0x3e5   :  { %5943 = vmatpush3.bf16.msra.mxu1 %v5942_v42 }
 0x3e6   :  { %5945 = vmatprep.subr.bf16.mxu1 %v5944_v47  ;;  %v2344_v5 = vpop.f32.mrb[22].mxu0  ;;  %p6367_p3 = por %p6366_p2, %p6365_p1 }
 0x3e7   :  { %v2345_v7 = vadd.f32 %v2344_v5, %v1897_v62  ;;  %v2346_v9 = vpop.f32.mrb[23].mxu0  ;;  %v5985_v62 = vpack.c.bf16 %v3180_v61, %v3179_v60 }
 0x3e8   :  { %v2347_v46 = vadd.f32 %v2346_v9, %v1901_v0  ;;  %v3182_v0 = vld [vmem:[%s7911_s21 + $0x18] sm:$0xff]  ;;  %v6006_v9 = vpack.c.bf16 %v3169_v31, %v3168_v4  ;;  %p6368_p4 = pnand %p6367_p3, %p6361_p0 }
 0x3e9   :  { %5947 = vmatpush3.bf16.msra.mxu1 %v5946_v1  ;;  %v2442_v54 = vmul.f32 0.01, %v2345_v7  ;;  %vm2429_vm5 = vcmp.ge.f32.partialorder %v2345_v7, 0.0  ;;  %v3166_v1 = vld [vmem:[%s7912_s25] sm:$0xff]  ;;  %v5988_v5 = vpack.c.bf16 %v3182_v0, %v3181_v45 }
 0x3ea   :  { %5949 = vmatprep.subr.bf16.mxu1 %v5948_v3  ;;  %v2443_v11 = vmul.f32 0.01, %v2347_v46  ;;  %vm2430_vm4 = vcmp.ge.f32.partialorder %v2347_v46, 0.0  ;;  %v3167_v3 = vld [vmem:[%s7912_s25 + $0x8] sm:$0xff]  ;;  %v3356_v0 = vld [vmem:[%s7915_s8] sm:$0xff] }
 0x3eb   :  { %v2455_v55 = vsel %vm2429_vm5, %v2345_v7, %v2442_v54  ;;  %v6003_v14 = vpack.c.bf16 %v3167_v3, %v3166_v1  ;;  %v3184_v7 = vld [vmem:[%s7911_s21 + $0x28] sm:$0xff]  ;;  %v3178_v54 = vld [vmem:[%s7912_s25 + $0x60] sm:$0xf]  ;;  %v1563_v3 = vmul.f32 0.01, %v7260_v40 }
 0x3ec   :  { %v2456_v13 = vsel %vm2430_vm4, %v2347_v46, %v2443_v11  ;;  %v3170_v46 = vld [vmem:[%s7912_s25 + $0x20] sm:$0xff]  ;;  %v5991_v63 = vpack.c.bf16 %v3184_v7, %v3183_v6  ;;  %v3357_v1 = vld [vmem:[%s7915_s8 + $0x8] sm:$0xff]  ;;  %v3358_v6 = vld [vmem:[%s7915_s8 + $0x10] sm:$0xff] }
 0x3ed   :  { %5951 = vmatpush3.bf16.msra.mxu1 %v5950_v10  ;;  %3083 = vmatprep.mubr.f32.mxu1 %v2456_v13  ;;  %v3171_v10 = vld [vmem:[%s7912_s25 + $0x28] sm:$0xff]  ;;  %v6021_v31 = vpack.c.bf16 %v3357_v1, %v3356_v0  ;;  %v1564_v7 = vsel %vm1562_vm6, %v7260_v40, %v1563_v3  ;;  %v3580_v1 = vld [vmem:[%s7916_s14 + $0x18] sm:$0xff] }
 0x3ee   :  { %5953 = vmatprep.subr.bf16.mxu1 %v5952_v32  ;;  %6004 = vmatpush3.bf16.msra.mxu0 %v6003_v14  ;;  %v6009_v13 = vpack.c.bf16 %v3171_v10, %v3170_v46  ;;  %v3456_v10 = vld [vmem:[%s7913_s29] sm:$0xff]  ;;  %v3578_v0 = vld [vmem:[%s7916_s14 + $0x8] sm:$0xff] }
 0x3ef   :  { %6005 = vmatprep.subr.bf16.mxu0 %v6454_v18  ;;  %v6059_v3 = vpack.c.bf16 %v3580_v1, %v3578_v0  ;;  %v3605_v1 = vld [vmem:[%s7916_s14 + $0xe0] sm:$0xff] }
 0x3f1   :  { %5955 = vmatpush3.bf16.msra.mxu1 %v5954_v15 }
 0x3f2   :  { %5957 = vmatprep.subr.bf16.mxu1 %v5956_v17  ;;  %6007 = vmatpush3.bf16.msra.mxu0 %v6006_v9  ;;  %v5994_v17 = vpack.c.bf16 %v3186_v2, %v3185_v12 }
 0x3f3   :  { %6008 = vmatprep.subr.bf16.mxu0 %v6454_v18 }
 0x3f5   :  { %5959 = vmatpush3.bf16.msra.mxu1 %v5958_v22  ;;  %v3173_v22 = vld [vmem:[%s7912_s25 + $0x38] sm:$0xff] }
 0x3f6   :  { %5961 = vmatprep.subr.bf16.mxu1 %v5960_v23  ;;  %6010 = vmatpush3.bf16.msra.mxu0 %v6009_v13  ;;  %v6012_v23 = vpack.c.bf16 %v3173_v22, %v3172_v21  ;;  %v3360_v13 = vld [vmem:[%s7915_s8 + $0x20] sm:$0xff]  ;;  %v3462_v21 = vld [vmem:[%s7913_s29 + $0x30] sm:$0xff]  ;;  %v3465_v22 = vld [vmem:[%s7913_s29 + $0x48] sm:$0xff] }
 0x3f7   :  { %6011 = vmatprep.subr.bf16.mxu0 %v6454_v18 }
 0x3f9   :  { %5963 = vmatpush3.bf16.msra.mxu1 %v5962_v34  ;;  %v3175_v34 = vld [vmem:[%s7912_s25 + $0x48] sm:$0xff] }
 0x3fa   :  { %5965 = vmatprep.subr.bf16.mxu1 %v5964_v35  ;;  %6013 = vmatpush3.bf16.msra.mxu0 %v6012_v23  ;;  %v6015_v35 = vpack.c.bf16 %v3175_v34, %v3174_v33  ;;  %v3467_v23 = vld [vmem:[%s7913_s29 + $0x58] sm:$0xff]  ;;  %v3464_v33 = vld [vmem:[%s7913_s29 + $0x40] sm:$0xff]  ;;  %v3466_v34 = vld [vmem:[%s7913_s29 + $0x50] sm:$0xff] }
 0x3fb   :  { %6014 = vmatprep.subr.bf16.mxu0 %v6454_v18  ;;  %v6049_v37 = vpack.c.bf16 %v3466_v34, %v3464_v33  ;;  %v3594_v33 = vld [vmem:[%s7916_s14 + $0x88] sm:$0xff]  ;;  %v3596_v34 = vld [vmem:[%s7916_s14 + $0x98] sm:$0xff] }
 0x3fd   :  { %5967 = vmatpush3.bf16.msra.mxu1 %v5966_v50 }
 0x3fe   :  { %5969 = vmatprep.subr.bf16.mxu1 %v5968_v51  ;;  %6016 = vmatpush3.bf16.msra.mxu0 %v6015_v35  ;;  %v3469_v35 = vld [vmem:[%s7913_s29 + $0x68] sm:$0xff] }
 0x3ff   :  { %6017 = vmatprep.subr.bf16.mxu0 %v6454_v18 }
 0x401   :  { %5971 = vmatpush3.bf16.msra.mxu1 %v5970_v53 }
 0x402   :  { %5984 = vmatprep.subr.bf16.mxu1 %v6454_v18  ;;  %6019 = vmatpush3.bf16.msra.mxu0 %v6018_v16  ;;  %v3468_v16 = vld [vmem:[%s7913_s29 + $0x60] sm:$0xff] }
 0x403   :  { %5408 = vmatprep.subr.mxu0 %v6453_v8 }
 0x404   :  { %3084 = vmatmul.mubr.f32.vlgmr.msra.gmra.mrb[26].mxu1 %v2455_v55  ;;  %v6039_v55 = vpack.c.bf16 %v3459_v52, %v3457_v39  ;;  %v3475_v39 = vld [vmem:[%s7913_s29 + $0x98] sm:$0xff] }
 0x405   :  { %5381 = vmatprep.mubr.msk.f32.mxu1 %vm6455_vm10, %v6453_v8  ;;  %5986 = vmatpush3.bf16.msra.mxu1 %v5985_v62 }
 0x406   :  { %5987 = vmatprep.subr.bf16.mxu1 %v6454_v18  ;;  %5409 = vmatpush3.msk.msra.mxu0 %vm1588_vm13, %v3178_v54  ;;  %v3472_v54 = vld [vmem:[%s7913_s29 + $0x80] sm:$0xff] }
 0x407   :  { %6040 = vmatprep.subr.bf16.mxu0 %v6039_v55  ;;  %v3474_v55 = vld [vmem:[%s7913_s29 + $0x90] sm:$0xff] }
 0x409   :  { %5989 = vmatpush3.bf16.msra.mxu1 %v5988_v5 }
 0x40a   :  { %5990 = vmatprep.subr.bf16.mxu1 %v6454_v18 }
 0x40d   :  { %5992 = vmatpush3.bf16.msra.mxu1 %v5991_v63  ;;  %v3461_v63 = vld [vmem:[%s7913_s29 + $0x28] sm:$0xff] }
 0x40e   :  { %5993 = vmatprep.subr.bf16.mxu1 %v6454_v18 }
 0x411   :  { %5995 = vmatpush3.bf16.msra.mxu1 %v5994_v17 }
 0x412   :  { %5996 = vmatprep.subr.bf16.mxu1 %v6454_v18 }
 0x415   :  { %5998 = vmatpush3.bf16.msra.mxu1 %v5997_v20  ;;  %v3460_v20 = vld [vmem:[%s7913_s29 + $0x20] sm:$0xff] }
 0x416   :  { %5999 = vmatprep.subr.bf16.mxu1 %v6454_v18  ;;  %v6045_v26 = vpack.c.bf16 %v3462_v21, %v3460_v20  ;;  %v3587_v20 = vld [vmem:[%s7916_s14 + $0x50] sm:$0xff]  ;;  %v3590_v21 = vld [vmem:[%s7916_s14 + $0x68] sm:$0xff] }
 0x419   :  { %6001 = vmatpush3.bf16.msra.mxu1 %v6000_v27  ;;  %v6047_v27 = vpack.c.bf16 %v3467_v23, %v3465_v22  ;;  %v3592_v22 = vld [vmem:[%s7916_s14 + $0x78] sm:$0xff] }
 0x41a   :  { %5379 = vmatprep.subr.mxu1 %v6453_v8 }
 0x41d   :  { %5380 = vmatpush3.msk.msra.mxu1 %vm1588_vm13, %v3191_v41  ;;  %v6051_v41 = vpack.c.bf16 %v3471_v49, %v3469_v35  ;;  %v7569_v49 = vld [vmem:[%s7918_s24] sm:$0x3] }
 0x41e   :  { %6020 = vmatprep.subr.bf16.mxu1 %v6454_v18 }
 0x423   :  { %v4991_v56 = vpop.f32.mrb[24].mxu0 }
 0x424   :  { %v4992_v57 = vpop.f32.mrb[25].mxu0 }
 0x425   :  { %v4993_v36 = vadd.f32 %v4992_v57, %v4991_v56 }
 0x427   :  { %v2736_v42 = vadd.f32 %v4993_v36, %v4662_v58 }
 0x42d   :  { %v5026_v28 = vpop.f32.mrb[22].mxu1 }
 0x42e   :  { %v5027_v47 = vpop.f32.mrb[23].mxu1 }
 0x42f   :  { %v5028_v43 = vadd.f32 %v5027_v47, %v5026_v28 }
 0x431   :  { %v2806_v59 = vadd.f32 %v5028_v43, %v2736_v42  ;;  %v4654_v43 = vld [vmem:[%s7914_s3] ss:$0 sm:$0xff] }
 0x432   :  { %v1778_v45 = vadd.f32 %v7402_v44, %v4654_v43  ;;  %v3359_v44 = vld [vmem:[%s7915_s8 + $0x18] sm:$0xff] }
 0x433   :  { %v6024_v12 = vpack.c.bf16 %v3359_v44, %v3358_v6  ;;  %v3577_v44 = vld [vmem:[%s7916_s14] sm:$0xff] }
 0x434   :  { %v1782_v4 = vmul.f32 0.01, %v1778_v45  ;;  %vm1781_vm9 = vcmp.ge.f32.partialorder %v1778_v45, 0.0 }
 0x443   :  { %v5061_v32 = vpop.f32.mrb[26].mxu0 }
 0x444   :  { %v5062_v38 = vpop.f32.mrb[27].mxu0 }
 0x445   :  { %v5063_v11 = vadd.f32 %v5062_v38, %v5061_v32  ;;  %v3458_v32 = vld [vmem:[%s7913_s29 + $0x10] sm:$0xff]  ;;  %v1783_v38 = vsel %vm1781_vm9, %v1778_v45, %v1782_v4 }
 0x446   :  { %v6041_v17 = vpack.c.bf16 %v3458_v32, %v3456_v10  ;;  %v3366_v45 = vld [vmem:[%s7915_s8 + $0x50] sm:$0xff]  ;;  %v3582_v10 = vld [vmem:[%s7916_s14 + $0x28] sm:$0xff]  ;;  %v3584_v32 = vld [vmem:[%s7916_s14 + $0x38] sm:$0xff] }
 0x447   :  { %v2876_v15 = vadd.f32 %v5063_v11, %v2806_v59  ;;  %v3463_v11 = vld [vmem:[%s7913_s29 + $0x38] sm:$0xff] }
 0x448   :  { %v6043_v19 = vpack.c.bf16 %v3463_v11, %v3461_v63  ;;  %v6063_v11 = vpack.c.bf16 %v3584_v32, %v3582_v10  ;;  %v3613_v32 = vld [vmem:[%s7916_s14 + $0x120] sm:$0xff] }
 0x463   :  { %v5131_v50 = vpop.f32.mrb[28].mxu0 }
 0x464   :  { %v5132_v51 = vpop.f32.mrb[29].mxu0 }
 0x465   :  { %v5133_v53 = vadd.f32 %v5132_v51, %v5131_v50  ;;  %v3470_v50 = vld [vmem:[%s7913_s29 + $0x70] sm:$0xff]  ;;  %v3473_v51 = vld [vmem:[%s7913_s29 + $0x88] sm:$0xff] }
 0x466   :  { %v6053_v52 = vpack.c.bf16 %v3470_v50, %v3468_v16  ;;  %v3595_v16 = vld [vmem:[%s7916_s14 + $0x90] sm:$0xff]  ;;  %v3598_v50 = vld [vmem:[%s7916_s14 + $0xa8] sm:$0xff] }
 0x473   :  { %v3155_v56 = vpop.f32.mrb[30].mxu0 }
 0x474   :  { %v5354_v57 = vpop.f32.mrb[31].mxu0 }
 0x475   :  { %v3477_v57 = vld [vmem:[%s7913_s29 + $0xa8] sm:$0xf] }
 0x4b7   :  { %v5096_v36 = vpop.f32.mrb[24].mxu1 }
 0x4b8   :  { %v5097_v58 = vpop.f32.mrb[25].mxu1 }
 0x4b9   :  { %v5098_v42 = vadd.f32 %v5097_v58, %v5096_v36  ;;  %v990_v36 = vmul.f32 0.01, %v7058_v25  ;;  %v3476_v58 = vld [vmem:[%s7913_s29 + $0xa0] sm:$0xf] }
 0x4bb   :  { %v2946_v28 = vadd.f32 %v5098_v42, %v2876_v15  ;;  %v3361_v15 = vld [vmem:[%s7915_s8 + $0x28] sm:$0xff] }
 0x4bc   :  { %v6027_v24 = vpack.c.bf16 %v3361_v15, %v3360_v13  ;;  %v3586_v13 = vld [vmem:[%s7916_s14 + $0x48] sm:$0xff]  ;;  %v3588_v15 = vld [vmem:[%s7916_s14 + $0x58] sm:$0xff] }
 0x4bd   :  { %v3016_v47 = vadd.f32 %v5133_v53, %v2946_v28  ;;  %v6055_v53 = vpack.c.bf16 %v3475_v39, %v3473_v51  ;;  %v3362_v28 = vld [vmem:[%s7915_s8 + $0x30] sm:$0xff]  ;;  %v3600_v51 = vld [vmem:[%s7916_s14 + $0xb8] sm:$0xff]  ;;  %v3487_v39 = vrot.slane %v7569_v49, %v6813_v30 }
 0x4d7   :  { %v5166_v59 = vpop.f32.mrb[26].mxu1 }
 0x4d8   :  { %v5167_v60 = vpop.f32.mrb[27].mxu1 }
 0x4d9   :  { %v5168_v61 = vadd.f32 %v5167_v60, %v5166_v59  ;;  %v3364_v59 = vld [vmem:[%s7915_s8 + $0x40] sm:$0xff]  ;;  %v3365_v60 = vld [vmem:[%s7915_s8 + $0x48] sm:$0xff] }
 0x4db   :  { %v3086_v62 = vadd.f32 %v5168_v61, %v3016_v47  ;;  %v3363_v47 = vld [vmem:[%s7915_s8 + $0x38] sm:$0xff]  ;;  %v6033_v61 = vpack.c.bf16 %v3365_v60, %v3364_v59  ;;  %v3601_v59 = vld [vmem:[%s7916_s14 + $0xc0] sm:$0xff]  ;;  %v3603_v60 = vld [vmem:[%s7916_s14 + $0xd0] sm:$0xff] }
 0x4dc   :  { %v6030_v43 = vpack.c.bf16 %v3363_v47, %v3362_v28 }
 0x4dd   :  { %v3156_v14 = vadd.f32 %v3155_v56, %v3086_v62  ;;  %v6057_v56 = vpack.c.bf16 %v3474_v55, %v3472_v54  ;;  %v3367_v62 = vld [vmem:[%s7915_s8 + $0x58] sm:$0x7]  ;;  %v6079_v54 = vpack.c.bf16 %v3600_v51, %v3598_v50  ;;  %v3597_v55 = vld [vmem:[%s7916_s14 + $0xa0] sm:$0xff]  ;;  %v3738_v50 = vld [vmem:[%s7919_s30 + $0x90] sm:$0xff] }
 0x4de   :  { %v3739_v51 = vld [vmem:[%s7919_s30 + $0x98] sm:$0xff] }
 0x4df   :  { %vm3159_vm7 = vcmp.ge.f32.partialorder %v3156_v14, 0.0  ;;  %v3160_v5 = vmul.f32 0.01, %v3156_v14 }
 0x4e1   :  { %v7500_v9 = vsel %vm3159_vm7, %v3156_v14, %v3160_v5  ;;  %v4668_v5 = vld [vmem:[%s7917_s19] ss:$0 sm:$0xff]  ;;  %vm3860_vm7 = vcmask 1041408  }
 0x4e2   :  { %v3162_v46 = vadd.f32 %v7500_v9, %v1564_v7  ;;  %5382 = vmatmul.mubr.msk.f32.vlgmr.msra.gmra.mrb[28].mxu1 %vm3192_vm8, %v7500_v9  ;;  %v3164_v2 = vadd.f32 %v7500_v9, %v1783_v38  ;;  %v3579_v7 = vld [vmem:[%s7916_s14 + $0x10] sm:$0xff]  ;;  %vm6148_vm9 = vmpackc.low %vm3860_vm7, %vm6456_vm14  ;;  %vm4561_vm14 = vcmask 812032  }
 0x4e3   :  { %6022 = vmatpush3.bf16.msra.mxu1 %v6021_v31  ;;  %5437 = vmatprep.mubr.msk.f32.mxu1 %vm6455_vm10, %v6453_v8  ;;  %vm989_vm10 = vcmp.ge.f32.partialorder %v7058_v25, 0.0  ;;  %v6061_v63 = vpack.c.bf16 %v3579_v7, %v3577_v44  ;;  %v3614_v44 = vld [vmem:[%s7916_s14 + $0x128] sm:$0xff]  ;;  %v3616_v7 = vld [vmem:[%s7916_s14 + $0x138] sm:$0xff] }
 0x4e4   :  { %v3163_v40 = vmul.f32 0.25, %v3162_v46  ;;  %6023 = vmatprep.subr.bf16.mxu1 %v6454_v18  ;;  %v991_v42 = vsel %vm989_vm10, %v7058_v25, %v990_v36  ;;  %v6036_v25 = vpack.c.bf16 %v3367_v62, %v3366_v45  ;;  %v3602_v36 = vld [vmem:[%s7916_s14 + $0xc8] sm:$0xff]  ;;  %v3608_v45 = vld [vmem:[%s7916_s14 + $0xf8] sm:$0xff]  ;;  %v6095_v10 = vpack.c.bf16 %v3616_v7, %v3614_v44  ;;  %v3748_v44 = vld [vmem:[%s7919_s30 + $0xe0] sm:$0xff] }
 0x4e5   :  { %v3749_v7 = vld [vmem:[%s7919_s30 + $0xe8] sm:$0xff] }
 0x4e6   :  { %v3165_v48 = vmul.f32 %v3164_v2, %v3163_v40  ;;  %v3583_v40 = vld [vmem:[%s7916_s14 + $0x30] sm:$0xff] }
 0x4e7   :  { %6025 = vmatpush3.bf16.msra.mxu1 %v6024_v12  ;;  %v3581_v12 = vld [vmem:[%s7916_s14 + $0x20] sm:$0xff] }
 0x4e8   :  { %5411 = vmatmul.mubr.msk.f32.vlgmr.msra.gmra.mrb[32].mxu0 %vm3192_vm8, %v3165_v48  ;;  %6026 = vmatprep.subr.bf16.mxu1 %v6454_v18  ;;  %v6067_v48 = vpack.c.bf16 %v3588_v15, %v3586_v13  ;;  %v3619_v13 = vld [vmem:[%s7916_s14 + $0x150] sm:$0xff]  ;;  %v3622_v15 = vld [vmem:[%s7916_s14 + $0x168] sm:$0xff] }
 0x4e9   :  { %6042 = vmatpush1.bf16.msra.mxu0 %v6041_v17  ;;  %3564 = vmatprep.mubr.f32.mxu0 %v6453_v8  ;;  %v6065_v17 = vpack.c.bf16 %v3583_v40, %v3581_v12 }
 0x4ea   :  { %6044 = vmatprep.subr.bf16.mxu0 %v6043_v19  ;;  %v3585_v19 = vld [vmem:[%s7916_s14 + $0x40] sm:$0xff] }
 0x4eb   :  { %6028 = vmatpush3.bf16.msra.mxu1 %v6027_v24  ;;  %v6069_v23 = vpack.c.bf16 %v3587_v20, %v3585_v19  ;;  %v6071_v24 = vpack.c.bf16 %v3592_v22, %v3590_v21  ;;  %v3621_v21 = vld [vmem:[%s7916_s14 + $0x160] sm:$0xff]  ;;  %v3623_v22 = vld [vmem:[%s7916_s14 + $0x170] sm:$0xff] }
 0x4ec   :  { %6029 = vmatprep.subr.bf16.mxu1 %v6454_v18 }
 0x4ed   :  { %6046 = vmatpush1.bf16.msra.mxu0 %v6045_v26  ;;  %v3589_v26 = vld [vmem:[%s7916_s14 + $0x60] sm:$0xff] }
 0x4ee   :  { %6048 = vmatprep.subr.bf16.mxu0 %v6047_v27  ;;  %v3591_v27 = vld [vmem:[%s7916_s14 + $0x70] sm:$0xff] }
 0x4ef   :  { %6031 = vmatpush3.bf16.msra.mxu1 %v6030_v43  ;;  %v6073_v35 = vpack.c.bf16 %v3591_v27, %v3589_v26  ;;  %v3626_v26 = vld [vmem:[%s7916_s14 + $0x188] sm:$0xff] }
 0x4f0   :  { %6032 = vmatprep.subr.bf16.mxu1 %v6454_v18 }
 0x4f1   :  { %6050 = vmatpush1.bf16.msra.mxu0 %v6049_v37  ;;  %v6075_v37 = vpack.c.bf16 %v3596_v34, %v3594_v33  ;;  %v3625_v33 = vld [vmem:[%s7916_s14 + $0x180] sm:$0xff] }
 0x4f2   :  { %6052 = vmatprep.subr.bf16.mxu0 %v6051_v41  ;;  %v3593_v41 = vld [vmem:[%s7916_s14 + $0x80] sm:$0xff] }
 0x4f3   :  { %6034 = vmatpush3.bf16.msra.mxu1 %v6033_v61  ;;  %v3606_v61 = vld [vmem:[%s7916_s14 + $0xe8] sm:$0xff] }
 0x4f4   :  { %6035 = vmatprep.subr.bf16.mxu1 %v6454_v18  ;;  %v6087_v0 = vpack.c.bf16 %v3608_v45, %v3606_v61  ;;  %v3727_v61 = vld [vmem:[%s7919_s30 + $0x38] sm:$0xff]  ;;  %v3744_v45 = vld [vmem:[%s7919_s30 + $0xc0] sm:$0xff] }
 0x4f5   :  { %6054 = vmatpush1.bf16.msra.mxu0 %v6053_v52  ;;  %v6077_v52 = vpack.c.bf16 %v3595_v16, %v3593_v41  ;;  %v3721_v16 = vld [vmem:[%s7919_s30 + $0x8] sm:$0xff] }
 0x4f6   :  { %6056 = vmatprep.subr.bf16.mxu0 %v6055_v53 }
 0x4f7   :  { %6038 = vmatpush3.bf16.msk.msra.mxu1 %vm6037_vm15, %v6036_v25  ;;  %v6085_v25 = vpack.c.bf16 %v3603_v60, %v3601_v59  ;;  %v3726_v60 = vld [vmem:[%s7919_s30 + $0x30] sm:$0xff] }
 0x4f8   :  { %6060 = vmatprep.subr.bf16.mxu1 %v6059_v3  ;;  %v3607_v3 = vld [vmem:[%s7916_s14 + $0xf0] sm:$0xff] }
 0x4f9   :  { %6058 = vmatpush1.bf16.msra.mxu0 %v6057_v56  ;;  %v3599_v56 = vld [vmem:[%s7916_s14 + $0xb0] sm:$0xff] }
 0x4fa   :  { %4672 = vmatprep.subr.msk.mxu0 %vm1588_vm13, %v3477_v57  ;;  %v6081_v28 = vpack.c.bf16 %v3599_v56, %v3597_v55  ;;  %v3740_v55 = vld [vmem:[%s7919_s30 + $0xa0] sm:$0xff]  ;;  %v3741_v56 = vld [vmem:[%s7919_s30 + $0xa8] sm:$0xff] }
 0x4fd   :  { %4673 = vmatpush1.msk.msra.mxu0 %vm1588_vm13, %v3476_v58  ;;  %v3604_v58 = vld [vmem:[%s7916_s14 + $0xd8] sm:$0xff] }
 0x4fe   :  { %4674 = vmatmul.mubr.msk.f32.vlgmr.msra.gmra.mrb[34].mxu0 %vm3490_vm11, %v991_v42  ;;  %v6083_v43 = vpack.c.bf16 %v3604_v58, %v3602_v36  ;;  %v6115_v36 = vpack.c.bf16 %v3741_v56, %v3740_v55  ;;  %v3724_v58 = vld [vmem:[%s7919_s30 + $0x20] sm:$0xff]  ;;  %v3841_v56 = vld [vmem:[%s7920_s12 + $0x48] sm:$0xff]  ;;  %vm3856_vm11 = vcmask 343040  }
 0x5b5   :  { %v3265_v14 = vpop.f32.mrb[28].mxu1 }
 0x5b6   :  { %v5383_v4 = vpop.f32.mrb[29].mxu1 }
 0x5b7   :  { %v3612_v4 = vld [vmem:[%s7916_s14 + $0x118] sm:$0xff] }
 0x5bb   :  { %v3341_v18 = vpop.f32.mrb[32].mxu0 }
 0x5bc   :  { %v3342_v31 = vadd.f32 %v3341_v18, %v3265_v14  ;;  %v5412_v6 = vpop.f32.mrb[33].mxu0  ;;  %v3610_v14 = vld [vmem:[%s7916_s14 + $0x108] sm:$0xff]  ;;  %v6089_v18 = vpack.c.bf16 %v3607_v3, %v3605_v1  ;;  %v3728_v1 = vld [vmem:[%s7919_s30 + $0x40] sm:$0xff] }
 0x5bd   :  { %v3611_v6 = vld [vmem:[%s7916_s14 + $0x110] sm:$0xff]  ;;  %v3729_v3 = vld [vmem:[%s7919_s30 + $0x48] sm:$0xff] }
 0x5be   :  { %v3352_v46 = vadd.f32 %v4668_v5, %v3342_v31  ;;  %v6091_v5 = vpack.c.bf16 %v3612_v4, %v3610_v14  ;;  %v3609_v31 = vld [vmem:[%s7916_s14 + $0x100] sm:$0xff]  ;;  %v3746_v14 = vld [vmem:[%s7919_s30 + $0xd0] sm:$0xff]  ;;  %v3747_v4 = vld [vmem:[%s7919_s30 + $0xd8] sm:$0xff] }
 0x5c0   :  { %vm3353_vm0 = vcmp.ge.f32.partialorder %v3352_v46, 0.0  ;;  %v3354_v38 = vmul.f32 0.01, %v3352_v46 }
 0x5c2   :  { %v3355_v2 = vsel %vm3353_vm0, %v3352_v46, %v3354_v38  ;;  %v6093_v46 = vpack.c.bf16 %v3611_v6, %v3609_v31  ;;  %v3615_v38 = vld [vmem:[%s7916_s14 + $0x130] sm:$0xff]  ;;  %v3731_v6 = vld [vmem:[%s7919_s30 + $0x58] sm:$0xff] }
 0x5c3   :  { %5438 = vmatmul.mubr.msk.f32.vlgmr.msra.gmra.mrb[30].mxu1 %vm3375_vm1, %v3355_v2  ;;  %v6097_v12 = vpack.c.bf16 %v3615_v38, %v3613_v32  ;;  %v3617_v2 = vld [vmem:[%s7916_s14 + $0x140] sm:$0xff]  ;;  %v3730_v31 = vld [vmem:[%s7919_s30 + $0x50] sm:$0xff]  ;;  %v3733_v38 = vld [vmem:[%s7919_s30 + $0x68] sm:$0xff] }
 0x5c4   :  { %6062 = vmatpush1.bf16.msra.mxu1 %v6061_v63  ;;  %v3618_v63 = vld [vmem:[%s7916_s14 + $0x148] sm:$0xff]  ;;  %v6101_v19 = vpack.c.bf16 %v3619_v13, %v3617_v2  ;;  %v3732_v32 = vld [vmem:[%s7919_s30 + $0x60] sm:$0xff]  ;;  %v3734_v2 = vld [vmem:[%s7919_s30 + $0x70] sm:$0xff] }
 0x5c5   :  { %6064 = vmatprep.subr.bf16.mxu1 %v6063_v11  ;;  %v3620_v11 = vld [vmem:[%s7916_s14 + $0x158] sm:$0xff] }
 0x5c6   :  { %v6099_v40 = vpack.c.bf16 %v3620_v11, %v3618_v63  ;;  %v6133_v63 = vpack.c.bf16 %v3733_v38, %v3732_v32  ;;  %v3750_v11 = vld [vmem:[%s7919_s30 + $0xf0] sm:$0xff]  ;;  %v3735_v13 = vld [vmem:[%s7919_s30 + $0x78] sm:$0xff]  ;;  %v3957_v38 = vld [vmem:[%s7923_s10 + $0x68] sm:$0xff] }
 0x5c7   :  { %v3954_v32 = vld [vmem:[%s7923_s10 + $0x50] sm:$0xff] }
 0x5c8   :  { %6066 = vmatpush1.bf16.msra.mxu1 %v6065_v17  ;;  %v3624_v17 = vld [vmem:[%s7916_s14 + $0x178] sm:$0xff] }
 0x5c9   :  { %6068 = vmatprep.subr.bf16.mxu1 %v6067_v48  ;;  %v3483_v48 = vrot.slane %v7569_v49, %v6810_v29  ;;  %v6103_v20 = vpack.c.bf16 %v3624_v17, %v3622_v15  ;;  %v3737_v49 = vld [vmem:[%s7919_s30 + $0x88] sm:$0xff]  ;;  %v6137_v15 = vpack.c.bf16 %v3735_v13, %v3734_v2  ;;  %v3958_v2 = vld [vmem:[%s7923_s10 + $0x70] sm:$0xff] }
 0x5ca   :  { %v3833_v17 = vld [vmem:[%s7920_s12 + $0x8] sm:$0xff] }
 0x5cb   :  { %v3961_v13 = vld [vmem:[%s7923_s10 + $0x88] sm:$0xff] }
 0x5cc   :  { %6070 = vmatpush1.bf16.msra.mxu1 %v6069_v23 }
 0x5cd   :  { %6072 = vmatprep.subr.bf16.mxu1 %v6071_v24  ;;  %v6105_v24 = vpack.c.bf16 %v3623_v22, %v3621_v21  ;;  %v3627_v22 = vld [vmem:[%s7921_s27] sm:$0x3] }
 0x5d0   :  { %6074 = vmatpush1.bf16.msra.mxu1 %v6073_v35  ;;  %v3736_v35 = vld [vmem:[%s7919_s30 + $0x80] sm:$0xff] }
 0x5d1   :  { %v3566_v53 = vpop.f32.mrb[34].mxu0  ;;  %6076 = vmatprep.subr.bf16.mxu1 %v6075_v37  ;;  %v3720_v37 = vld [vmem:[%s7919_s30] sm:$0xff]  ;;  %v6107_v41 = vpack.c.bf16 %v3737_v49, %v3736_v35  ;;  %v3834_v49 = vld [vmem:[%s7920_s12 + $0x10] sm:$0xff] }
 0x5d2   :  { %v3568_v57 = vpop.f32.mrb[35].mxu0  ;;  %v3567_v23 = vadd.f32 %v3566_v53, %v3483_v48  ;;  %v3722_v53 = vld [vmem:[%s7919_s30 + $0x10] sm:$0xff]  ;;  %v3835_v48 = vld [vmem:[%s7920_s12 + $0x18] sm:$0xff]  ;;  %v3832_v35 = vld [vmem:[%s7920_s12] sm:$0xff] }
 0x5d3   :  { %v3569_v42 = vadd.f32 %v3568_v57, %v3487_v39  ;;  %v6109_v39 = vpack.c.bf16 %v3721_v16, %v3720_v37  ;;  %6108 = vmatprep.subr.bf16.mxu0 %v6107_v41  ;;  %v3837_v41 = vld [vmem:[%s7920_s12 + $0x28] sm:$0xff]  ;;  %v3839_v16 = vld [vmem:[%s7920_s12 + $0x38] sm:$0xff] }
 0x5d4   :  { %6078 = vmatpush1.bf16.msra.mxu1 %v6077_v52  ;;  %v3573_v27 = vmul.f32 0.01, %v3567_v23  ;;  %vm3571_vm4 = vcmp.ge.f32.partialorder %v3567_v23, 0.0  ;;  %v6111_v52 = vpack.c.bf16 %v3739_v51, %v3738_v50  ;;  %v6141_v51 = vpack.c.bf16 %v3834_v49, %v3832_v35 }
 0x5d5   :  { %vm3572_vm2 = vcmp.ge.f32.partialorder %v3569_v42, 0.0  ;;  %v3574_v47 = vmul.f32 0.01, %v3569_v42  ;;  %6080 = vmatprep.subr.bf16.mxu1 %v6079_v54  ;;  %v3723_v54 = vld [vmem:[%s7919_s30 + $0x18] sm:$0xff]  ;;  %6110 = vmatpush3.bf16.msra.mxu0 %v6109_v39 }
 0x5d6   :  { %v3575_v34 = vsel %vm3571_vm4, %v3567_v23, %v3573_v27  ;;  %v6113_v57 = vpack.c.bf16 %v3723_v54, %v3722_v53  ;;  %6112 = vmatprep.subr.bf16.mxu0 %v6111_v52  ;;  %v3632_v23 = vrot.slane %v3627_v22, %v6810_v29  ;;  %v6143_v52 = vpack.c.bf16 %v3839_v16, %v3837_v41  ;;  %v3836_v53 = vld [vmem:[%s7920_s12 + $0x20] sm:$0xff]  ;;  %v3838_v54 = vld [vmem:[%s7920_s12 + $0x30] sm:$0xff]  ;;  %v3973_v16 = vld [vmem:[%s7923_s10 + $0xe8] sm:$0xff] }
 0x5d7   :  { %v3576_v62 = vsel %vm3572_vm2, %v3569_v42, %v3574_v47  ;;  %v3725_v42 = vld [vmem:[%s7919_s30 + $0x28] sm:$0xff]  ;;  %v3743_v47 = vld [vmem:[%s7919_s30 + $0xb8] sm:$0xff]  ;;  %v3970_v41 = vld [vmem:[%s7923_s10 + $0xd0] sm:$0xff] }
 0x5d8   :  { %6082 = vmatpush1.bf16.msra.mxu1 %v6081_v28  ;;  %4675 = vmatprep.mubr.msk.f32.mxu1 %vm3639_vm3, %v3576_v62  ;;  %v3742_v28 = vld [vmem:[%s7919_s30 + $0xb0] sm:$0xff]  ;;  %v3745_v62 = vld [vmem:[%s7919_s30 + $0xc8] sm:$0xff] }
 0x5d9   :  { %6084 = vmatprep.subr.bf16.mxu1 %v6083_v43  ;;  %6114 = vmatpush3.bf16.msra.mxu0 %v6113_v57  ;;  %v6117_v43 = vpack.c.bf16 %v3725_v42, %v3724_v58  ;;  %v6119_v59 = vpack.c.bf16 %v3743_v47, %v3742_v28  ;;  %v3843_v57 = vld [vmem:[%s7920_s12 + $0x58] sm:$0x3]  ;;  %v6145_v58 = vpack.c.bf16 %v3838_v54, %v3836_v53  ;;  %v3840_v28 = vld [vmem:[%s7920_s12 + $0x40] sm:$0xff]  ;;  %v3842_v47 = vld [vmem:[%s7920_s12 + $0x50] sm:$0x3] }
 0x5da   :  { %6116 = vmatprep.subr.bf16.mxu0 %v6115_v36  ;;  %v4669_v36 = vld [vmem:[%s7922_s7] ss:$0 sm:$0xff]  ;;  %v6147_v42 = vpack.c.bf16 %v3843_v57, %v3841_v56  ;;  %v3974_v53 = vld [vmem:[%s7923_s10 + $0xf0] sm:$0xff]  ;;  %v3979_v56 = vld [vmem:[%s7923_s10 + $0x118] sm:$0xff] }
 0x5dc   :  { %6086 = vmatpush1.bf16.msra.mxu1 %v6085_v25  ;;  %v6121_v25 = vpack.c.bf16 %v3727_v61, %v3726_v60  ;;  %v3947_v60 = vld [vmem:[%s7923_s10 + $0x18] sm:$0xff]  ;;  %v6150_v61 = vpack.c.bf16 %v3842_v47, %v3840_v28  ;;  %v3981_v28 = vld [vmem:[%s7923_s10 + $0x128] sm:$0xff] }
 0x5dd   :  { %6088 = vmatprep.subr.bf16.mxu1 %v6087_v0  ;;  %6118 = vmatpush3.bf16.msra.mxu0 %v6117_v43  ;;  %v6123_v0 = vpack.c.bf16 %v3745_v62, %v3744_v45  ;;  %v3944_v62 = vld [vmem:[%s7923_s10] sm:$0xff]  ;;  %v3983_v47 = vld [vmem:[%s7923_s10 + $0x138] sm:$0xff] }
 0x5de   :  { %6120 = vmatprep.subr.bf16.mxu0 %v6119_v59  ;;  %v3945_v59 = vld [vmem:[%s7923_s10 + $0x8] sm:$0xff] }
 0x5df   :  { %v6153_v45 = vpack.c.bf16 %v3947_v60, %v3945_v59  ;;  %v3980_v59 = vld [vmem:[%s7923_s10 + $0x120] sm:$0xff]  ;;  %v3982_v60 = vld [vmem:[%s7923_s10 + $0x130] sm:$0xff] }
 0x5e0   :  { %6090 = vmatpush1.bf16.msra.mxu1 %v6089_v18  ;;  %v6125_v18 = vpack.c.bf16 %v3729_v3, %v3728_v1  ;;  %v3949_v1 = vld [vmem:[%s7923_s10 + $0x28] sm:$0xff]  ;;  %v3951_v3 = vld [vmem:[%s7923_s10 + $0x38] sm:$0xff] }
 0x5e1   :  { %6092 = vmatprep.subr.bf16.mxu1 %v6091_v5  ;;  %6122 = vmatpush3.bf16.msra.mxu0 %v6121_v25  ;;  %v6127_v5 = vpack.c.bf16 %v3747_v4, %v3746_v14  ;;  %v3946_v25 = vld [vmem:[%s7923_s10 + $0x10] sm:$0xff]  ;;  %v6157_v4 = vpack.c.bf16 %v3951_v3, %v3949_v1 }
 0x5e2   :  { %6124 = vmatprep.subr.bf16.mxu0 %v6123_v0  ;;  %v6155_v14 = vpack.c.bf16 %v3946_v25, %v3944_v62  ;;  %v3987_v62 = vld [vmem:[%s7923_s10 + $0x158] sm:$0xff]  ;;  %v3984_v25 = vld [vmem:[%s7923_s10 + $0x140] sm:$0xff]  ;;  %v3986_v1 = vld [vmem:[%s7923_s10 + $0x150] sm:$0xff] }
 0x5e3   :  { %v6195_v3 = vpack.c.bf16 %v3986_v1, %v3984_v25 }
 0x5e4   :  { %6094 = vmatpush1.bf16.msra.mxu1 %v6093_v46  ;;  %v6129_v46 = vpack.c.bf16 %v3731_v6, %v3730_v31  ;;  %v3953_v6 = vld [vmem:[%s7923_s10 + $0x48] sm:$0xff] }
 0x5e5   :  { %6096 = vmatprep.subr.bf16.mxu1 %v6095_v10  ;;  %6126 = vmatpush3.bf16.msra.mxu0 %v6125_v18  ;;  %v6131_v10 = vpack.c.bf16 %v3749_v7, %v3748_v44  ;;  %v3948_v18 = vld [vmem:[%s7923_s10 + $0x20] sm:$0xff]  ;;  %v3955_v44 = vld [vmem:[%s7923_s10 + $0x58] sm:$0xff] }
 0x5e6   :  { %6128 = vmatprep.subr.bf16.mxu0 %v6127_v5  ;;  %v3950_v5 = vld [vmem:[%s7923_s10 + $0x30] sm:$0xff] }
 0x5e7   :  { %v6159_v7 = vpack.c.bf16 %v3950_v5, %v3948_v18  ;;  %v3988_v5 = vld [vmem:[%s7923_s10 + $0x160] sm:$0xff] }
 0x5e8   :  { %6098 = vmatpush1.bf16.msra.mxu1 %v6097_v12  ;;  %v3751_v12 = vld [vmem:[%s7919_s30 + $0xf8] sm:$0xff] }
 0x5e9   :  { %6100 = vmatprep.subr.bf16.mxu1 %v6099_v40  ;;  %6130 = vmatpush3.bf16.msra.mxu0 %v6129_v46  ;;  %v6135_v40 = vpack.c.bf16 %v3751_v12, %v3750_v11  ;;  %v6161_v46 = vpack.c.bf16 %v3955_v44, %v3953_v6  ;;  %v3993_v44 = vld [vmem:[%s7923_s10 + $0x188] sm:$0xff] }
 0x5ea   :  { %6132 = vmatprep.subr.bf16.mxu0 %v6131_v10  ;;  %v3952_v10 = vld [vmem:[%s7923_s10 + $0x40] sm:$0xff] }
 0x5eb   :  { %v6163_v11 = vpack.c.bf16 %v3954_v32, %v3952_v10  ;;  %v4103_v10 = vld [vmem:[%s7924_s11 + $0x88] sm:$0xff]  ;;  %v4086_v32 = vld [vmem:[%s7924_s11] sm:$0xff] }
 0x5ec   :  { %6102 = vmatpush1.bf16.msra.mxu1 %v6101_v19  ;;  %v6139_v19 = vpack.c.bf16 %v3835_v48, %v3833_v17 }
 0x5ed   :  { %6104 = vmatprep.subr.bf16.mxu1 %v6103_v20  ;;  %6134 = vmatpush3.bf16.msra.mxu0 %v6133_v63  ;;  %v3959_v63 = vld [vmem:[%s7923_s10 + $0x78] sm:$0xff] }
 0x5ee   :  { %6136 = vmatprep.subr.bf16.mxu0 %v6135_v40  ;;  %v6165_v12 = vpack.c.bf16 %v3959_v63, %v3957_v38  ;;  %v3956_v40 = vld [vmem:[%s7923_s10 + $0x60] sm:$0xff]  ;;  %v4087_v63 = vld [vmem:[%s7924_s11 + $0x8] sm:$0xff] }
 0x5ef   :  { %v6167_v17 = vpack.c.bf16 %v3958_v2, %v3956_v40  ;;  %v6203_v40 = vpack.c.bf16 %v4087_v63, %v4086_v32  ;;  %v4101_v63 = vld [vmem:[%s7924_s11 + $0x78] sm:$0xff] }
 0x5f0   :  { %6106 = vmatpush1.bf16.msra.mxu1 %v6105_v24  ;;  %v3636_v24 = vrot.slane %v3627_v22, %v6813_v30  ;;  %v3967_v22 = vld [vmem:[%s7923_s10 + $0xb8] sm:$0xff] }
 0x5f1   :  { %3691 = vmatprep.subr.mxu1 %v3626_v26  ;;  %6138 = vmatpush3.bf16.msra.mxu0 %v6137_v15  ;;  %v3963_v15 = vld [vmem:[%s7923_s10 + $0x98] sm:$0xff] }
 0x5f2   :  { %6140 = vmatprep.subr.bf16.mxu0 %v6139_v19  ;;  %v6169_v48 = vpack.c.bf16 %v3963_v15, %v3961_v13  ;;  %v3960_v19 = vld [vmem:[%s7923_s10 + $0x80] sm:$0xff]  ;;  %v4088_v13 = vld [vmem:[%s7924_s11 + $0x10] sm:$0xff]  ;;  %v4089_v15 = vld [vmem:[%s7924_s11 + $0x18] sm:$0xff] }
 0x5f4   :  { %3692 = vmatpush1.msra.mxu1 %v3625_v33 }
 0x5f5   :  { %3708 = vmatmul.mubr.f32.vlgmr.msra.gmra.mrb[32].mxu1 %v3575_v34 }
 0x696   :  { %v3449_v20 = vpop.f32.mrb[30].mxu1 }
 0x697   :  { %v5439_v21 = vpop.f32.mrb[31].mxu1  ;;  %v3450_v43 = vadd.f32 %v4669_v36, %v3449_v20  ;;  %v3962_v20 = vld [vmem:[%s7923_s10 + $0x90] sm:$0xff]  ;;  %v3976_v36 = vld [vmem:[%s7923_s10 + $0x100] sm:$0xff] }
 0x698   :  { %v3965_v21 = vld [vmem:[%s7923_s10 + $0xa8] sm:$0xff] }
 0x699   :  { %v3454_v0 = vmul.f32 0.01, %v3450_v43  ;;  %vm3453_vm10 = vcmp.ge.f32.partialorder %v3450_v43, 0.0 }
 0x69b   :  { %v3455_v31 = vsel %vm3453_vm10, %v3450_v43, %v3454_v0  ;;  %v6189_v43 = vpack.c.bf16 %v3983_v47, %v3981_v28 }
 0x6c8   :  { %v3709_v26 = vpop.f32.mrb[32].mxu1 }
 0x6c9   :  { %v3710_v27 = vadd.f32 %v3709_v26, %v3632_v23  ;;  %v3711_v33 = vpop.f32.mrb[33].mxu1  ;;  %v6171_v23 = vpack.c.bf16 %v3962_v20, %v3960_v19  ;;  %v3964_v26 = vld [vmem:[%s7923_s10 + $0xa0] sm:$0xff]  ;;  %v6207_v19 = vpack.c.bf16 %v4089_v15, %v4088_v13 }
 0x6ca   :  { %v3712_v34 = vadd.f32 %v3711_v33, %v3636_v24  ;;  %v6173_v24 = vpack.c.bf16 %v3967_v22, %v3965_v21  ;;  %v3969_v33 = vld [vmem:[%s7923_s10 + $0xc8] sm:$0xff]  ;;  %v4090_v21 = vld [vmem:[%s7924_s11 + $0x20] sm:$0xff] }
 0x6cb   :  { %v3716_v37 = vmul.f32 0.01, %v3710_v27  ;;  %vm3714_vm5 = vcmp.ge.f32.partialorder %v3710_v27, 0.0  ;;  %v4091_v22 = vld [vmem:[%s7924_s11 + $0x28] sm:$0xff]  ;;  %v3994_v13 = vld [vmem:[%s7928_s23] sm:$0x3] }
 0x6cc   :  { %v3717_v50 = vmul.f32 0.01, %v3712_v34  ;;  %vm3715_vm6 = vcmp.ge.f32.partialorder %v3712_v34, 0.0  ;;  %v3999_v15 = vrot.slane %v3994_v13, %v6810_v29 }
 0x6cd   :  { %v3718_v55 = vsel %vm3714_vm5, %v3710_v27, %v3716_v37  ;;  %v3966_v27 = vld [vmem:[%s7923_s10 + $0xb0] sm:$0xff]  ;;  %v3968_v37 = vld [vmem:[%s7923_s10 + $0xc0] sm:$0xff] }
 0x6ce   :  { %v3719_v39 = vsel %vm3715_vm6, %v3712_v34, %v3717_v50  ;;  %v3971_v34 = vld [vmem:[%s7923_s10 + $0xd8] sm:$0xff]  ;;  %v6175_v35 = vpack.c.bf16 %v3966_v27, %v3964_v26  ;;  %v6211_v26 = vpack.c.bf16 %v4091_v22, %v4090_v21  ;;  %v4224_v22 = vld [vmem:[%s7927_s18] sm:$0xff] }
 0x6cf   :  { %3823 = vmatprep.mubr.f32.mxu0 %v3719_v39  ;;  %v6177_v49 = vpack.c.bf16 %v3971_v34, %v3969_v33  ;;  %v3975_v50 = vld [vmem:[%s7923_s10 + $0xf8] sm:$0xff]  ;;  %v4092_v33 = vld [vmem:[%s7924_s11 + $0x30] sm:$0xff] }
 0x6d0   :  { %3824 = vmatmul.mubr.f32.vlgmr.msra.gmra.mrb[36].mxu0 %v3718_v55  ;;  %v6181_v39 = vpack.c.bf16 %v3975_v50, %v3973_v16  ;;  %v3977_v55 = vld [vmem:[%s7923_s10 + $0x108] sm:$0xff]  ;;  %v4093_v34 = vld [vmem:[%s7924_s11 + $0x38] sm:$0xff]  ;;  %v4094_v16 = vld [vmem:[%s7924_s11 + $0x40] sm:$0xff] }
 0x6d1   :  { %6142 = vmatpush1.bf16.msra.mxu0 %v6141_v51  ;;  %3931 = vmatprep.mubr.f32.mxu0 %v6453_v8  ;;  %v6179_v51 = vpack.c.bf16 %v3970_v41, %v3968_v37  ;;  %v6185_v57 = vpack.c.bf16 %v3979_v56, %v3977_v55  ;;  %v6215_v37 = vpack.c.bf16 %v4093_v34, %v4092_v33  ;;  %v4095_v50 = vld [vmem:[%s7924_s11 + $0x48] sm:$0xff]  ;;  %v4097_v55 = vld [vmem:[%s7924_s11 + $0x58] sm:$0xff] }
 0x6d2   :  { %6144 = vmatprep.subr.bf16.mxu0 %v6143_v52  ;;  %v3972_v52 = vld [vmem:[%s7923_s10 + $0xe0] sm:$0xff] }
 0x6d3   :  { %v6183_v54 = vpack.c.bf16 %v3974_v53, %v3972_v52  ;;  %v6219_v52 = vpack.c.bf16 %v4095_v50, %v4094_v16  ;;  %v4233_v50 = vld [vmem:[%s7927_s18 + $0x48] sm:$0xff] }
 0x6d5   :  { %6146 = vmatpush1.bf16.msra.mxu0 %v6145_v58  ;;  %v3978_v58 = vld [vmem:[%s7923_s10 + $0x110] sm:$0xff] }
 0x6d6   :  { %6149 = vmatprep.subr.msk.bf16.mxu0 %vm6148_vm9, %v6147_v42  ;;  %v6187_v42 = vpack.c.bf16 %v3978_v58, %v3976_v36  ;;  %v4676_v36 = vld [vmem:[%s7925_s16] ss:$0 sm:$0xff] }
 0x6d9   :  { %6152 = vmatpush1.bf16.msk.msra.mxu0 %vm6148_vm9, %v6150_v61  ;;  %v6191_v61 = vpack.c.bf16 %v3982_v60, %v3980_v59 }
 0x6da   :  { %6154 = vmatprep.subr.bf16.mxu0 %v6153_v45  ;;  %v3985_v45 = vld [vmem:[%s7923_s10 + $0x148] sm:$0xff] }
 0x6db   :  { %v6193_v0 = vpack.c.bf16 %v3987_v62, %v3985_v45 }
 0x6dc   :  { %4679 = vmatmul.mubr.msk.f32.vlgmr.msra.gmra.mrb[38].mxu0 %vm3856_vm11, %v3455_v31  ;;  %v3990_v31 = vld [vmem:[%s7923_s10 + $0x170] sm:$0xff] }
 0x6dd   :  { %6156 = vmatpush1.bf16.msra.mxu0 %v6155_v14  ;;  %v3989_v14 = vld [vmem:[%s7923_s10 + $0x168] sm:$0xff]  ;;  %v6199_v6 = vpack.c.bf16 %v3990_v31, %v3988_v5 }
 0x6de   :  { %6158 = vmatprep.subr.bf16.mxu0 %v6157_v4  ;;  %v3991_v4 = vld [vmem:[%s7923_s10 + $0x178] sm:$0xff]  ;;  %v4115_v5 = vld [vmem:[%s7924_s11 + $0xe8] sm:$0xff] }
 0x6df   :  { %v6197_v18 = vpack.c.bf16 %v3991_v4, %v3989_v14 }
 0x6e1   :  { %6160 = vmatpush1.bf16.msra.mxu0 %v6159_v7  ;;  %v3992_v7 = vld [vmem:[%s7923_s10 + $0x180] sm:$0xff] }
 0x6e2   :  { %6162 = vmatprep.subr.bf16.mxu0 %v6161_v46  ;;  %v4102_v46 = vld [vmem:[%s7924_s11 + $0x80] sm:$0xff] }
 0x6e3   :  { %v6201_v38 = vpack.c.bf16 %v4103_v10, %v4102_v46  ;;  %v4116_v46 = vld [vmem:[%s7924_s11 + $0xf0] sm:$0xff]  ;;  %v4117_v10 = vld [vmem:[%s7924_s11 + $0xf8] sm:$0xff] }
 0x6e4   :  { %v6229_v32 = vpack.c.bf16 %v4117_v10, %v4116_v46  ;;  %v4681_v46 = vld [vmem:[%s7930_s26] ss:$0 sm:$0xff] }
 0x6e5   :  { %6164 = vmatpush1.bf16.msra.mxu0 %v6163_v11  ;;  %v4104_v11 = vld [vmem:[%s7924_s11 + $0x90] sm:$0xff]  ;;  %6202 = vmatprep.subr.bf16.mxu1 %v6201_v38 }
 0x6e6   :  { %6166 = vmatprep.subr.bf16.mxu0 %v6165_v12  ;;  %v4105_v12 = vld [vmem:[%s7924_s11 + $0x98] sm:$0xff]  ;;  %6204 = vmatpush3.bf16.msra.mxu1 %v6203_v40  ;;  %v4100_v38 = vld [vmem:[%s7924_s11 + $0x70] sm:$0xff] }
 0x6e7   :  { %v6205_v2 = vpack.c.bf16 %v4105_v12, %v4104_v11  ;;  %v6231_v11 = vpack.c.bf16 %v4101_v63, %v4100_v38  ;;  %v4225_v12 = vld [vmem:[%s7927_s18 + $0x8] sm:$0xff]  ;;  %v4227_v40 = vld [vmem:[%s7927_s18 + $0x18] sm:$0xff]  ;;  %v4198_v38 = vld [vmem:[%s7929_s22] sm:$0xff] }
 0x6e8   :  { %v4200_v63 = vld [vmem:[%s7929_s22 + $0x10] sm:$0xff] }
 0x6e9   :  { %6168 = vmatpush1.bf16.msra.mxu0 %v6167_v17  ;;  %v4106_v17 = vld [vmem:[%s7924_s11 + $0xa0] sm:$0xff]  ;;  %6206 = vmatprep.subr.bf16.mxu1 %v6205_v2  ;;  %v6233_v2 = vpack.c.bf16 %v4227_v40, %v4225_v12  ;;  %v4203_v12 = vld [vmem:[%s7929_s22 + $0x28] sm:$0xff]  ;;  %v4205_v40 = vld [vmem:[%s7929_s22 + $0x38] sm:$0xff] }
 0x6ea   :  { %6170 = vmatprep.subr.bf16.mxu0 %v6169_v48  ;;  %v4107_v48 = vld [vmem:[%s7924_s11 + $0xa8] sm:$0xff]  ;;  %6208 = vmatpush3.bf16.msra.mxu1 %v6207_v19 }
 0x6eb   :  { %v6209_v20 = vpack.c.bf16 %v4107_v48, %v4106_v17  ;;  %v4003_v17 = vrot.slane %v3994_v13, %v6813_v30  ;;  %v6259_v13 = vpack.c.bf16 %v4200_v63, %v4198_v38  ;;  %v4424_v38 = vld [vmem:[%s7931_s1 + $0x70] sm:$0xff]  ;;  %v4427_v63 = vld [vmem:[%s7931_s1 + $0x88] sm:$0xff] }
 0x6ed   :  { %6172 = vmatpush1.bf16.msra.mxu0 %v6171_v23  ;;  %v4108_v23 = vld [vmem:[%s7924_s11 + $0xb0] sm:$0xff]  ;;  %6210 = vmatprep.subr.bf16.mxu1 %v6209_v20 }
 0x6ee   :  { %6174 = vmatprep.subr.bf16.mxu0 %v6173_v24  ;;  %v4109_v24 = vld [vmem:[%s7924_s11 + $0xb8] sm:$0xff]  ;;  %6212 = vmatpush3.bf16.msra.mxu1 %v6211_v26  ;;  %v4229_v26 = vld [vmem:[%s7927_s18 + $0x28] sm:$0xff] }
 0x6ef   :  { %v6213_v27 = vpack.c.bf16 %v4109_v24, %v4108_v23  ;;  %v4226_v23 = vld [vmem:[%s7927_s18 + $0x10] sm:$0xff] }
 0x6f0   :  { %v6235_v34 = vpack.c.bf16 %v4226_v23, %v4224_v22 }
 0x6f1   :  { %6176 = vmatpush1.bf16.msra.mxu0 %v6175_v35  ;;  %v4110_v35 = vld [vmem:[%s7924_s11 + $0xc0] sm:$0xff]  ;;  %6214 = vmatprep.subr.bf16.mxu1 %v6213_v27  ;;  %v4231_v27 = vld [vmem:[%s7927_s18 + $0x38] sm:$0xff] }
 0x6f2   :  { %6178 = vmatprep.subr.bf16.mxu0 %v6177_v49  ;;  %v4111_v49 = vld [vmem:[%s7924_s11 + $0xc8] sm:$0xff]  ;;  %6216 = vmatpush3.bf16.msra.mxu1 %v6215_v37  ;;  %v4228_v37 = vld [vmem:[%s7927_s18 + $0x20] sm:$0xff] }
 0x6f3   :  { %v6217_v41 = vpack.c.bf16 %v4111_v49, %v4110_v35  ;;  %v6237_v49 = vpack.c.bf16 %v4231_v27, %v4229_v26  ;;  %v4208_v26 = vld [vmem:[%s7929_s22 + $0x50] sm:$0xff]  ;;  %v4211_v27 = vld [vmem:[%s7929_s22 + $0x68] sm:$0xff] }
 0x6f5   :  { %6180 = vmatpush1.bf16.msra.mxu0 %v6179_v51  ;;  %v4112_v51 = vld [vmem:[%s7924_s11 + $0xd0] sm:$0xff]  ;;  %6218 = vmatprep.subr.bf16.mxu1 %v6217_v41 }
 0x6f6   :  { %6182 = vmatprep.subr.bf16.mxu0 %v6181_v39  ;;  %v4113_v39 = vld [vmem:[%s7924_s11 + $0xd8] sm:$0xff]  ;;  %6220 = vmatpush3.bf16.msra.mxu1 %v6219_v52  ;;  %v4230_v41 = vld [vmem:[%s7927_s18 + $0x30] sm:$0xff] }
 0x6f7   :  { %v6221_v53 = vpack.c.bf16 %v4113_v39, %v4112_v51  ;;  %v4235_v51 = vld [vmem:[%s7927_s18 + $0x58] sm:$0xff]  ;;  %v6239_v39 = vpack.c.bf16 %v4230_v41, %v4228_v37  ;;  %v4212_v37 = vld [vmem:[%s7929_s22 + $0x70] sm:$0xff]  ;;  %v4215_v41 = vld [vmem:[%s7929_s22 + $0x88] sm:$0xff] }
 0x6f8   :  { %v6241_v52 = vpack.c.bf16 %v4235_v51, %v4233_v50 }
 0x6f9   :  { %6184 = vmatpush1.bf16.msra.mxu0 %v6183_v54  ;;  %v4096_v54 = vld [vmem:[%s7924_s11 + $0x50] sm:$0xff]  ;;  %6222 = vmatprep.subr.bf16.mxu1 %v6221_v53  ;;  %v4232_v53 = vld [vmem:[%s7927_s18 + $0x40] sm:$0xff] }
 0x6fa   :  { %6186 = vmatprep.subr.bf16.mxu0 %v6185_v57  ;;  %v6223_v56 = vpack.c.bf16 %v4097_v55, %v4096_v54  ;;  %v4234_v54 = vld [vmem:[%s7927_s18 + $0x50] sm:$0xff]  ;;  %v4237_v55 = vld [vmem:[%s7927_s18 + $0x68] sm:$0xff] }
 0x6fc   :  { %6224 = vmatpush3.bf16.msra.mxu1 %v6223_v56  ;;  %v4239_v56 = vld [vmem:[%s7927_s18 + $0x78] sm:$0xff] }
 0x6fd   :  { %6188 = vmatpush1.bf16.msra.mxu0 %v6187_v42 }
 0x6fe   :  { %6190 = vmatprep.subr.bf16.mxu0 %v6189_v43  ;;  %v3844_v43 = vld [vmem:[%s7926_s15] sm:$0x3] }
 0x6ff   :  { %v3849_v60 = vrot.slane %v3844_v43, %v6810_v29 }
 0x701   :  { %6192 = vmatpush1.bf16.msra.mxu0 %v6191_v61  ;;  %v3853_v61 = vrot.slane %v3844_v43, %v6813_v30 }
 0x702   :  { %6194 = vmatprep.subr.bf16.mxu0 %v6193_v0 }
 0x705   :  { %6196 = vmatpush1.bf16.msra.mxu0 %v6195_v3 }
 0x706   :  { %6198 = vmatprep.subr.bf16.mxu0 %v6197_v18  ;;  %v4114_v18 = vld [vmem:[%s7924_s11 + $0xe0] sm:$0xff] }
 0x707   :  { %v6225_v31 = vpack.c.bf16 %v4115_v5, %v4114_v18  ;;  %v4249_v18 = vld [vmem:[%s7927_s18 + $0xc8] sm:$0xf] }
 0x708   :  { %v4199_v5 = vld [vmem:[%s7929_s22 + $0x8] sm:$0xff] }
 0x709   :  { %6200 = vmatpush1.bf16.msra.mxu0 %v6199_v6  ;;  %v4098_v6 = vld [vmem:[%s7924_s11 + $0x60] sm:$0xff]  ;;  %6226 = vmatprep.subr.bf16.mxu1 %v6225_v31  ;;  %v4201_v31 = vld [vmem:[%s7929_s22 + $0x18] sm:$0xff] }
 0x70a   :  { %4057 = vmatprep.subr.mxu0 %v3993_v44  ;;  %v4099_v44 = vld [vmem:[%s7924_s11 + $0x68] sm:$0xff] }
 0x70d   :  { %4058 = vmatpush1.msra.mxu0 %v3992_v7  ;;  %v6227_v7 = vpack.c.bf16 %v4099_v44, %v4098_v6  ;;  %v4248_v6 = vld [vmem:[%s7927_s18 + $0xc0] sm:$0xf]  ;;  %v6257_v44 = vpack.c.bf16 %v4201_v31, %v4199_v5 }
 0x70f   :  { %6228 = vmatpush3.bf16.msra.mxu1 %v6227_v7 }
 0x710   :  { %6230 = vmatprep.subr.bf16.mxu1 %v6229_v32 }
 0x713   :  { %6232 = vmatpush3.bf16.msra.mxu1 %v6231_v11 }
 0x714   :  { %6234 = vmatprep.subr.bf16.mxu1 %v6233_v2 }
 0x7a3   :  { %v5251_v57 = vpop.f32.mrb[36].mxu0 }
 0x7a4   :  { %v5252_v58 = vpop.f32.mrb[37].mxu0 }
 0x7a5   :  { %v5253_v42 = vadd.f32 %v5252_v58, %v5251_v57  ;;  %v6243_v57 = vpack.c.bf16 %v4234_v54, %v4232_v53  ;;  %v4236_v58 = vld [vmem:[%s7927_s18 + $0x60] sm:$0xff]  ;;  %v4219_v53 = vld [vmem:[%s7929_s22 + $0xa8] sm:$0xff]  ;;  %v4221_v54 = vld [vmem:[%s7929_s22 + $0xb8] sm:$0xff] }
 0x7a7   :  { %v3826_v28 = vadd.f32 %v5253_v42, %v4676_v36  ;;  %v6245_v36 = vpack.c.bf16 %v4239_v56, %v4237_v55  ;;  %v4238_v42 = vld [vmem:[%s7927_s18 + $0x70] sm:$0xff]  ;;  %v6277_v56 = vpack.c.bf16 %v4221_v54, %v4219_v53 }
 0x7a8   :  { %v6247_v43 = vpack.c.bf16 %v4238_v42, %v4236_v58  ;;  %v4223_v42 = vld [vmem:[%s7929_s22 + $0xc8] sm:$0xf] }
 0x7a9   :  { %vm3829_vm12 = vcmp.ge.f32.partialorder %v3826_v28, 0.0  ;;  %v3830_v47 = vmul.f32 0.01, %v3826_v28 }
 0x7ab   :  { %v7735_v59 = vsel %vm3829_vm12, %v3826_v28, %v3830_v47  ;;  %v4241_v28 = vld [vmem:[%s7927_s18 + $0x88] sm:$0xff]  ;;  %v4243_v47 = vld [vmem:[%s7927_s18 + $0x98] sm:$0xff] }
 0x7ac   :  { %4562 = vst.msk [vmem:[#allocation3] sm:$0x3] %vm4561_vm14, %v7735_v59 }
 0x7af   :  { %v3933_v45 = vpop.f32.mrb[38].mxu0 }
 0x7b0   :  { %v3934_v62 = vadd.f32 %v3933_v45, %v3849_v60  ;;  %v3935_v25 = vpop.f32.mrb[39].mxu0  ;;  %v6249_v60 = vpack.c.bf16 %v4243_v47, %v4241_v28  ;;  %v4242_v45 = vld [vmem:[%s7927_s18 + $0x90] sm:$0xff]  ;;  %v4411_v28 = vld [vmem:[%s7931_s1 + $0x8] sm:$0xff]  ;;  %v4413_v47 = vld [vmem:[%s7931_s1 + $0x18] sm:$0xff] }
 0x7b1   :  { %v3936_v0 = vadd.f32 %v3935_v25, %v3853_v61  ;;  %v4240_v61 = vld [vmem:[%s7927_s18 + $0x80] sm:$0xff]  ;;  %v4245_v25 = vld [vmem:[%s7927_s18 + $0xa8] sm:$0xff] }
 0x7b2   :  { %v3940_v1 = vmul.f32 0.01, %v3934_v62  ;;  %vm3938_vm15 = vcmp.ge.f32.partialorder %v3934_v62, 0.0 }
 0x7b3   :  { %vm3939_vm0 = vcmp.ge.f32.partialorder %v3936_v0, 0.0  ;;  %v3941_v3 = vmul.f32 0.01, %v3936_v0 }
 0x7b4   :  { %v3942_v4 = vsel %vm3938_vm15, %v3934_v62, %v3940_v1  ;;  %v6251_v62 = vpack.c.bf16 %v4242_v45, %v4240_v61  ;;  %v4415_v61 = vld [vmem:[%s7931_s1 + $0x28] sm:$0xff]  ;;  %v4417_v45 = vld [vmem:[%s7931_s1 + $0x38] sm:$0xff] }
 0x7b5   :  { %v3943_v14 = vsel %vm3939_vm0, %v3936_v0, %v3941_v3  ;;  %v4247_v0 = vld [vmem:[%s7927_s18 + $0xb8] sm:$0xff]  ;;  %v4244_v3 = vld [vmem:[%s7927_s18 + $0xa0] sm:$0xff] }
 0x7b6   :  { %4680 = vmatprep.mubr.msk.f32.mxu0 %vm3639_vm3, %v3943_v14  ;;  %v6253_v1 = vpack.c.bf16 %v4247_v0, %v4245_v25  ;;  %v4246_v14 = vld [vmem:[%s7927_s18 + $0xb0] sm:$0xff]  ;;  %v6281_v25 = vpack.c.bf16 %v4413_v47, %v4411_v28 }
 0x7b7   :  { %4074 = vmatmul.mubr.f32.vlgmr.msra.gmra.mrb[40].mxu0 %v3942_v4  ;;  %v6255_v4 = vpack.c.bf16 %v4246_v14, %v4244_v3  ;;  %v4414_v3 = vld [vmem:[%s7931_s1 + $0x20] sm:$0xff]  ;;  %v4416_v14 = vld [vmem:[%s7931_s1 + $0x30] sm:$0xff] }
 0x7b8   :  { %v6287_v5 = vpack.c.bf16 %v4416_v14, %v4414_v3 }
 0x88a   :  { %v4075_v48 = vpop.f32.mrb[40].mxu0 }
 0x88b   :  { %v4076_v19 = vadd.f32 %v4075_v48, %v3999_v15  ;;  %v4077_v20 = vpop.f32.mrb[41].mxu0  ;;  %v6261_v15 = vpack.c.bf16 %v4205_v40, %v4203_v12  ;;  %v4204_v48 = vld [vmem:[%s7929_s22 + $0x30] sm:$0xff]  ;;  %v4426_v40 = vld [vmem:[%s7931_s1 + $0x80] sm:$0xff] }
 0x88c   :  { %v4078_v21 = vadd.f32 %v4077_v20, %v4003_v17  ;;  %v4202_v17 = vld [vmem:[%s7929_s22 + $0x20] sm:$0xff]  ;;  %v4207_v20 = vld [vmem:[%s7929_s22 + $0x48] sm:$0xff] }
 0x88d   :  { %v4082_v24 = vmul.f32 0.01, %v4076_v19  ;;  %vm4080_vm1 = vcmp.ge.f32.partialorder %v4076_v19, 0.0  ;;  %v6263_v22 = vpack.c.bf16 %v4204_v48, %v4202_v17 }
 0x88e   :  { %v4083_v33 = vmul.f32 0.01, %v4078_v21  ;;  %vm4081_vm2 = vcmp.ge.f32.partialorder %v4078_v21, 0.0 }
 0x88f   :  { %v4084_v16 = vsel %vm4080_vm1, %v4076_v19, %v4082_v24  ;;  %v4206_v24 = vld [vmem:[%s7929_s22 + $0x40] sm:$0xff] }
 0x890   :  { %v4085_v35 = vsel %vm4081_vm2, %v4078_v21, %v4083_v33  ;;  %v4209_v21 = vld [vmem:[%s7929_s22 + $0x58] sm:$0xff] }
 0x891   :  { %4189 = vmatprep.mubr.f32.mxu1 %v4085_v35  ;;  %v6265_v23 = vpack.c.bf16 %v4209_v21, %v4207_v20  ;;  %v4213_v33 = vld [vmem:[%s7929_s22 + $0x78] sm:$0xff]  ;;  %v4432_v20 = vld [vmem:[%s7931_s1 + $0xb0] sm:$0xff] }
 0x892   :  { %4190 = vmatmul.mubr.f32.vlgmr.msra.gmra.mrb[34].mxu1 %v4084_v16  ;;  %v6269_v35 = vpack.c.bf16 %v4213_v33, %v4211_v27  ;;  %v4217_v16 = vld [vmem:[%s7929_s22 + $0x98] sm:$0xff]  ;;  %v4531_v33 = vld [vmem:[%s7933_s2] sm:$0x3] }
 0x893   :  { %6236 = vmatpush1.bf16.msra.mxu1 %v6235_v34  ;;  %4323 = vmatprep.mubr.f32.mxu1 %v6453_v8  ;;  %v6267_v34 = vpack.c.bf16 %v4208_v26, %v4206_v24  ;;  %v6273_v51 = vpack.c.bf16 %v4217_v16, %v4215_v41  ;;  %v4515_v24 = vld [vmem:[%s7932_s28] sm:$0x3]  ;;  %v4540_v16 = vrot.slane %v4531_v33, %v6813_v30 }
 0x894   :  { %6238 = vmatprep.subr.bf16.mxu1 %v6237_v49  ;;  %v4210_v49 = vld [vmem:[%s7929_s22 + $0x60] sm:$0xff]  ;;  %v4520_v26 = vrot.slane %v4515_v24, %v6810_v29  ;;  %v4524_v27 = vrot.slane %v4515_v24, %v6813_v30 }
 0x895   :  { %v6271_v50 = vpack.c.bf16 %v4212_v37, %v4210_v49  ;;  %v4536_v37 = vrot.slane %v4531_v33, %v6810_v29 }
 0x897   :  { %6240 = vmatpush1.bf16.msra.mxu1 %v6239_v39  ;;  %v4214_v39 = vld [vmem:[%s7929_s22 + $0x80] sm:$0xff] }
 0x898   :  { %6242 = vmatprep.subr.bf16.mxu1 %v6241_v52  ;;  %v4216_v52 = vld [vmem:[%s7929_s22 + $0x90] sm:$0xff] }
 0x899   :  { %v6275_v55 = vpack.c.bf16 %v4216_v52, %v4214_v39 }
 0x89b   :  { %6244 = vmatpush1.bf16.msra.mxu1 %v6243_v57  ;;  %v4218_v57 = vld [vmem:[%s7929_s22 + $0xa0] sm:$0xff] }
 0x89c   :  { %6246 = vmatprep.subr.bf16.mxu1 %v6245_v36  ;;  %v4220_v36 = vld [vmem:[%s7929_s22 + $0xb0] sm:$0xff] }
 0x89d   :  { %v6279_v58 = vpack.c.bf16 %v4220_v36, %v4218_v57 }
 0x89f   :  { %6248 = vmatpush1.bf16.msra.mxu1 %v6247_v43  ;;  %v4410_v43 = vld [vmem:[%s7931_s1] sm:$0xff] }
 0x8a0   :  { %6250 = vmatprep.subr.bf16.mxu1 %v6249_v60  ;;  %v4412_v60 = vld [vmem:[%s7931_s1 + $0x10] sm:$0xff] }
 0x8a1   :  { %v6283_v0 = vpack.c.bf16 %v4412_v60, %v4410_v43 }
 0x8a3   :  { %6252 = vmatpush1.bf16.msra.mxu1 %v6251_v62  ;;  %v4222_v62 = vld [vmem:[%s7929_s22 + $0xc0] sm:$0xf] }
 0x8a4   :  { %6254 = vmatprep.subr.bf16.mxu1 %v6253_v1  ;;  %v6285_v1 = vpack.c.bf16 %v4417_v45, %v4415_v61 }
 0x8a7   :  { %6256 = vmatpush1.bf16.msra.mxu1 %v6255_v4  ;;  %v4419_v4 = vld [vmem:[%s7931_s1 + $0x48] sm:$0xff] }
 0x8a8   :  { %4682 = vmatprep.subr.msk.mxu1 %vm1588_vm13, %v4249_v18  ;;  %v4421_v18 = vld [vmem:[%s7931_s1 + $0x58] sm:$0xff] }
 0x8a9   :  { %v6289_v31 = vpack.c.bf16 %v4421_v18, %v4419_v4 }
 0x8ab   :  { %4683 = vmatpush1.msk.msra.mxu1 %vm1588_vm13, %v4248_v6  ;;  %v4418_v6 = vld [vmem:[%s7931_s1 + $0x40] sm:$0xff] }
 0x8ac   :  { %6258 = vmatprep.subr.bf16.mxu1 %v6257_v44  ;;  %v4420_v44 = vld [vmem:[%s7931_s1 + $0x50] sm:$0xff] }
 0x965   :  { %v5286_v7 = vpop.f32.mrb[34].mxu1 }
 0x966   :  { %v5287_v10 = vpop.f32.mrb[35].mxu1 }
 0x967   :  { %v5288_v32 = vadd.f32 %v5287_v10, %v5286_v7  ;;  %v4423_v7 = vld [vmem:[%s7931_s1 + $0x68] sm:$0xff] }
 0x969   :  { %v4192_v11 = vadd.f32 %v5288_v32, %v4681_v46  ;;  %v4425_v46 = vld [vmem:[%s7931_s1 + $0x78] sm:$0xff]  ;;  %v4422_v32 = vld [vmem:[%s7931_s1 + $0x60] sm:$0xff] }
 0x96a   :  { %v6293_v10 = vpack.c.bf16 %v4425_v46, %v4423_v7 }
 0x96b   :  { %vm4195_vm3 = vcmp.ge.f32.partialorder %v4192_v11, 0.0  ;;  %v4196_v2 = vmul.f32 0.01, %v4192_v11 }
 0x96d   :  { %v4197_v19 = vsel %vm4195_vm3, %v4192_v11, %v4196_v2  ;;  %v6295_v11 = vpack.c.bf16 %v4424_v38, %v4422_v32  ;;  %v4428_v2 = vld [vmem:[%s7931_s1 + $0x90] sm:$0xff] }
 0x96e   :  { %4684 = vmatmul.mubr.msk.f32.vlgmr.msra.gmra.mrb[36].mxu1 %vm3192_vm8, %v4197_v19  ;;  %4563 = vst.msk [vmem:[#allocation5] sm:$0x3] %vm4561_vm14, %v4197_v19  ;;  %v6299_v17 = vpack.c.bf16 %v4428_v2, %v4426_v40  ;;  %v4430_v19 = vld [vmem:[%s7931_s1 + $0xa0] sm:$0xff] }
 0x96f   :  { %6260 = vmatpush1.bf16.msra.mxu1 %v6259_v13  ;;  %4403 = vmatprep.mubr.f32.mxu1 %v6453_v8  ;;  %v4431_v13 = vld [vmem:[%s7931_s1 + $0xa8] sm:$0xff]  ;;  %v6303_v21 = vpack.c.bf16 %v4432_v20, %v4430_v19 }
 0x970   :  { %6262 = vmatprep.subr.bf16.mxu1 %v6261_v15  ;;  %v4433_v15 = vld [vmem:[%s7931_s1 + $0xb8] sm:$0xff] }
 0x971   :  { %v6301_v48 = vpack.c.bf16 %v4433_v15, %v4431_v13 }
 0x973   :  { %6264 = vmatpush1.bf16.msra.mxu1 %v6263_v22  ;;  %v4435_v22 = vld [vmem:[%s7931_s1 + $0xc8] sm:$0xf] }
 0x974   :  { %6266 = vmatprep.subr.bf16.mxu1 %v6265_v23  ;;  %v4434_v23 = vld [vmem:[%s7931_s1 + $0xc0] sm:$0xf] }
 0x977   :  { %6268 = vmatpush1.bf16.msra.mxu1 %v6267_v34 }
 0x978   :  { %6270 = vmatprep.subr.bf16.mxu1 %v6269_v35 }
 0x97b   :  { %6272 = vmatpush1.bf16.msra.mxu1 %v6271_v50 }
 0x97c   :  { %6274 = vmatprep.subr.bf16.mxu1 %v6273_v51 }
 0x97f   :  { %6276 = vmatpush1.bf16.msra.mxu1 %v6275_v55 }
 0x980   :  { %6278 = vmatprep.subr.bf16.mxu1 %v6277_v56 }
 0x983   :  { %6280 = vmatpush1.bf16.msra.mxu1 %v6279_v58 }
 0x984   :  { %4685 = vmatprep.subr.msk.mxu1 %vm1588_vm13, %v4223_v42 }
 0x987   :  { %4686 = vmatpush1.msk.msra.mxu1 %vm1588_vm13, %v4222_v62 }
 0x988   :  { %4687 = vmatmul.mubr.msk.f32.vlgmr.msra.gmra.mrb[36].mxu1 %vm3192_vm8, %v7735_v59  ;;  %6282 = vmatprep.subr.bf16.mxu1 %v6281_v25  ;;  %v6291_v59 = vpack.c.bf16 %v4420_v44, %v4418_v6 }
 0x989   :  { %6284 = vmatpush1.bf16.msra.mxu1 %v6283_v0  ;;  %4506 = vmatprep.mubr.f32.mxu1 %v6453_v8  ;;  %v4429_v8 = vld [vmem:[%s7931_s1 + $0x98] sm:$0xff] }
 0x98a   :  { %6286 = vmatprep.subr.bf16.mxu1 %v6285_v1  ;;  %v6297_v12 = vpack.c.bf16 %v4429_v8, %v4427_v63 }
 0x98d   :  { %6288 = vmatpush1.bf16.msra.mxu1 %v6287_v5 }
 0x98e   :  { %6290 = vmatprep.subr.bf16.mxu1 %v6289_v31 }
 0x991   :  { %6292 = vmatpush1.bf16.msra.mxu1 %v6291_v59 }
 0x992   :  { %6294 = vmatprep.subr.bf16.mxu1 %v6293_v10 }
 0x995   :  { %6296 = vmatpush1.bf16.msra.mxu1 %v6295_v11 }
 0x996   :  { %6298 = vmatprep.subr.bf16.mxu1 %v6297_v12 }
 0x999   :  { %6300 = vmatpush1.bf16.msra.mxu1 %v6299_v17 }
 0x99a   :  { %6302 = vmatprep.subr.bf16.mxu1 %v6301_v48 }
 0x99d   :  { %6304 = vmatpush1.bf16.msra.mxu1 %v6303_v21 }
 0x99e   :  { %4688 = vmatprep.subr.msk.mxu1 %vm1588_vm13, %v4435_v22 }
 0x9a1   :  { %4689 = vmatpush1.msk.msra.mxu1 %vm1588_vm13, %v4434_v23  ;;  %vm4546_vm13 = vcmask 287744  }
 0x9a2   :  { %4690 = vmatmul.mubr.msk.f32.vlgmr.msra.gmra.mrb[36].mxu1 %vm3192_vm8, %v7500_v9 }
 0xa75   :  { %v4508_v34 = vpop.f32.mrb[36].mxu1 }
 0xa76   :  { %v4527_v35 = vadd.f32 %v4520_v26, %v4508_v34  ;;  %v4510_v49 = vpop.f32.mrb[37].mxu1 }
 0xa77   :  { %v4528_v41 = vadd.f32 %v4524_v27, %v4510_v49 }
 0xa78   :  { %v4529_v50 = vmax.f32 %v4527_v35, 0.0 }
 0xa79   :  { %v4530_v51 = vmax.f32 %v4528_v41, 0.0 }
 0xa7a   :  { %v4543_v39 = vmul.f32 %v4536_v37, %v4529_v50 }
 0xa7b   :  { %v4544_v52 = vmul.f32 %v4540_v16, %v4530_v51 }
 0xa7c   :  { %v4545_v9 = vsel %vm3860_vm7, %v4543_v39, 0.0 }
 0xa7d   :  { %v4547_v53 = vsel %vm4546_vm13, %v4544_v52, 0.0 }
 0xa7e   :  { %v4548_v54 = vadd.f32 %v4547_v53, %v4545_v9 }
 0xa80   :  { %4549 = vadd.xlane.f32.xlu0 %v4548_v54 }
 0xa81   :  { %6371 = shalt.err (!%p6368_p4)
}
 0xa82   :  { %s6372_s21 = scalar_lea.hbm %s6685_s6, 32 }
 0xa83   :  { %p6373_p5 = scmp.ne.s32.totalorder %s6685_s6, %s6372_s21  ;;  %p6376_p6 = scmp.lt.u32.totalorder %s6372_s21, %s6685_s6 }
 0xa85   :  { %p6378_p7 = pnand %p6376_p6, %p6373_p5 }
 0xa87   :  { %6381 = shalt.err (!%p6378_p7)
}
 0xa88   :  { %4575 = dma.vmem_to_hbm [thread:$0]  %s4573_s5, 32, %s6685_s6, [#allocation4]  }
 0xa89   :  { %s6382_s25 = scalar_lea.vmem %s4583_s13, 32  ;;  %p6387_p9 = scmp.lt.s32.totalorder %s4583_s13, %s4583_s13 }
 0xa8a   :  { %p6383_p8 = scmp.ne.s32.totalorder %s4583_s13, %s6382_s25  ;;  %p6388_p10 = scmp.lt.s32.totalorder %s6382_s25, %s6382_s25 }
 0xa8c   :  { %p6389_p11 = por %p6388_p10, %p6387_p9 }
 0xa8e   :  { %p6390_p12 = pnand %p6389_p11, %p6383_p8 }
 0xa90   :  { %6393 = shalt.err (!%p6390_p12)
}
 0xa91   :  { %s6394_s29 = scalar_lea.hbm %s6690_s4, 32 }
 0xa92   :  { %p6395_p13 = scmp.ne.s32.totalorder %s6690_s4, %s6394_s29  ;;  %p6398_p0 = scmp.lt.u32.totalorder %s6394_s29, %s6690_s4 }
 0xa94   :  { %p6400_p1 = pnand %p6398_p0, %p6395_p13 }
 0xa96   :  { %6403 = shalt.err (!%p6400_p1)
}
 0xa97   :  { %4585 = dma.vmem_to_hbm [thread:$0]  %s4583_s13, 32, %s6690_s4, [#allocation6]   ;;  %v4691_v29 = vld [vmem:[#allocation2] ss:$0 sm:$0xff]  ;;  %vm4559_vm8 = vcmask 1024  }
 0xb0d   :  { %v4550_v30 = vpop.xlane.xlu0 %4549 }
 0xb0e   :  { %v4558_v55 = vadd.f32 %v4691_v29, %v4550_v30 }
 0xb10   :  { %4560 = vst.msk [vmem:[%s6680_s20] sm:$0x3] %vm4559_vm8, %v4558_v55 }
 0xb11   :  { %6404 = dma.done.wait [#allocation4], 32  }
 0xb12   :  { %6405 = vsyncadd [#allocation4], 4294967264 }
 0xb13   :  { %6406 = dma.done.wait [#allocation6], 32  }
 0xb14   :  { %6407 = vsyncadd [#allocation6], 4294967264 }
 0xb15   :  { %4594 = vsyncpa [#allocation4], 1 }
 0xb16   :  { %4595 = vsyncpa [#allocation6], 1 }

</bundles_post_ra>
